<compile_context>
chip_gen: v7x
topology: tpu7x:2x2x1
jax: 0.10.0
libtpu: 0.0.40
codegen_flags: <defaults>
</compile_context>

<pallas_src>
import functools

import jax
import jax.numpy as jnp
from jax.experimental import pallas as pl
from jax.experimental.pallas import tpu as pltpu


# -----------------------------------------------------------------------------
# Fused Pallas kernel
#   * one MXU matmul per tile on the combined 81-lane patch stream with a
#     block-diagonal weight: cols [:Cf] perceptual(output), col Cf disc logit,
#     cols [Cf+1:] perceptual(target)
#   * L1 from lane slices of the same tile (centre-tap mask applied in JAX on
#     the tiny row-reduced output, not per element in the kernel)
#   * every branch is reduced along the row axis in-kernel (sublane reduce on
#     the XLU/VALU, no big accumulator stores), so outputs are (num_cores,1,K)
# -----------------------------------------------------------------------------

def _fused_loss_kernel(x_ref, w_ref, b_ref, l1_ref, perc_ref, adv_ref,
                       *, cf, kf, kt):
    step = pl.program_id(1)

    @pl.when(step == 0)
    def _init():
        l1_ref[...] = jnp.zeros_like(l1_ref)
        perc_ref[...] = jnp.zeros_like(perc_ref)
        adv_ref[...] = jnp.zeros_like(adv_ref)

    x = x_ref[...]                                   # (tm, kf + kt) bf16 patches

    # Single fused matmul (block-diagonal weight), f32 accumulation on the MXU.
    res = jnp.dot(x, w_ref[...], preferred_element_type=jnp.float32) + b_ref[...]

    fo = jnp.maximum(res[:, :cf], 0.0)               # perceptual feats of output
    logit = res[:, cf:cf + 1]                        # discriminator logit
    ft = jnp.maximum(res[:, cf + 1:], 0.0)           # perceptual feats of target

    # Perceptual partial sum, row-reduced to (1, cf).
    d = fo - ft
    perc_ref[...] += jnp.sum(d * d, axis=0, keepdims=True)

    # BCEWithLogits vs all-ones target == softplus(-logit); row-reduced to (1,1).
    adv = jnp.maximum(-logit, 0.0) + jnp.log1p(jnp.exp(-jnp.abs(logit)))
    adv_ref[...] += jnp.sum(adv, axis=0, keepdims=True)

    # L1: |output_taps - target_taps| over all 9 taps, row-reduced to (1, kt);
    # the centre-tap lane mask is applied to this tiny partial sum in JAX.
    diff = x[:, :kt].astype(jnp.float32) - x[:, kf:kf + kt].astype(jnp.float32)
    l1_ref[...] += jnp.sum(jnp.abs(diff), axis=0, keepdims=True)


def _round_up(x, m):
    return ((x + m - 1) // m) * m


def _fused_loss_sums(patches, w, b, *, tm, num_cores, cf, kf, kt):
    M, K = patches.shape
    n_per_core = M // (num_cores * tm)
    assert M == num_cores * n_per_core * tm
    n_out = 2 * cf + 1

    kernel = functools.partial(_fused_loss_kernel, cf=cf, kf=kf, kt=kt)

    return pl.pallas_call(
        kernel,
        out_shape=(jax.ShapeDtypeStruct((num_cores, 1, kt), jnp.float32),
                   jax.ShapeDtypeStruct((num_cores, 1, cf), jnp.float32),
                   jax.ShapeDtypeStruct((num_cores, 1, 1), jnp.float32)),
        grid=(num_cores, n_per_core),
        in_specs=[
            pl.BlockSpec((tm, K), lambda c, i: (c * n_per_core + i, 0)),
            pl.BlockSpec((K, n_out), lambda c, i: (0, 0)),
            pl.BlockSpec((1, n_out), lambda c, i: (0, 0)),
        ],
        out_specs=[
            pl.BlockSpec((None, 1, kt), lambda c, i: (c, 0, 0)),
            pl.BlockSpec((None, 1, cf), lambda c, i: (c, 0, 0)),
            pl.BlockSpec((None, 1, 1), lambda c, i: (c, 0, 0)),
        ],
        compiler_params=pltpu.CompilerParams(
            dimension_semantics=("parallel", "arbitrary"),
        ),
    )(patches, w, b)


# -----------------------------------------------------------------------------
# Plain-JAX glue (im2col, parameter setup, loss combination)
# -----------------------------------------------------------------------------

def _im2col_3x3_same(x_nchw):
    """[B, C, H, W] -> [B*H*W, C*9] patches for a 3x3 'same' (pad=1) conv."""
    B, C, H, W = x_nchw.shape
    xp = jnp.pad(x_nchw, ((0, 0), (0, 0), (1, 1), (1, 1)))
    cols = [xp[:, :, dh:dh + H, dw:dw + W] for dh in range(3) for dw in range(3)]
    patches = jnp.stack(cols, axis=2)            # [B, C, 9, H, W]
    patches = patches.transpose(0, 3, 4, 1, 2)   # [B, H, W, C, 9]
    return patches.reshape(B * H * W, C * 9)


def _default_num_cores():
    # v7x has 2 TensorCores per chip; v5e/v6e have a single TensorCore, where a
    # "parallel" core axis is just a serial loop, so default to 1 there.
    try:
        kind = jax.devices()[0].device_kind.lower()
        if "7" in kind:
            return 2
    except Exception:
        pass
    return 1


def make_params(img_channels=4, feat_channels=8, seed=0):
    """Deterministic synthetic weights for the perceptual net and discriminator."""
    # TODO(synk): the real module uses a pretrained LPIPS(net='vgg') and an external
    # discriminator_model; both are replaced here with small deterministic 3x3 convs.
    k1, k2, k3, k4 = jax.random.split(jax.random.PRNGKey(seed), 4)
    C, Cf = img_channels, feat_channels
    w_perc = jax.random.normal(k1, (Cf, C, 3, 3), jnp.float32) * 0.1
    b_perc = jax.random.normal(k2, (Cf,), jnp.float32) * 0.1
    w_disc = jax.random.normal(k3, (1, C + 1, 3, 3), jnp.float32) * 0.1
    b_disc = jax.random.normal(k4, (1,), jnp.float32) * 0.1

    kt = C * 9                    # output / target patch width
    kf = (C + 1) * 9              # fake_input (output + src4) patch width
    K = kf + kt                   # combined patch-stream width

    w_perc_m = w_perc.reshape(Cf, kt).T          # (kt, Cf)
    w_disc_m = w_disc.reshape(1, kf).T           # (kf, 1)

    # Block-diagonal weight for the single fused matmul:
    #   rows [0, kt)      output taps | rows [kt, kf) src4 taps | rows [kf, K) target taps
    #   cols [0, Cf)      perceptual(output)
    #   col  Cf           discriminator logit on cat(output, src4)
    #   cols [Cf+1, 2Cf+1) perceptual(target)
    w = jnp.zeros((K, 2 * Cf + 1), jnp.float32)
    w = w.at[:kt, :Cf].set(w_perc_m)
    w = w.at[:kf, Cf:Cf + 1].set(w_disc_m)
    w = w.at[kf:, Cf + 1:].set(w_perc_m)
    b = jnp.concatenate([b_perc, b_disc, b_perc]).reshape(1, 2 * Cf + 1)

    return {
        "w": w.astype(jnp.bfloat16),   # (K, 2Cf+1) bf16 MXU operand
        "b": b,                        # (1, 2Cf+1) f32, added post-matmul
        "b_disc_scalar": b_disc[0],    # for pad-row correction
    }


def generator_loss(output, target, source, params,
                   l1_weight=1.0, perceptual_weight=1.0, adversarial_weight=0.05,
                   tm_max=4096, num_cores=None):
    B, C, H, W = output.shape
    M = B * H * W
    Cf = (params["w"].shape[1] - 1) // 2
    Kt = C * 9
    Kf = (C + 1) * 9

    if num_cores is None:
        num_cores = _default_num_cores()

    # One fused bf16 patch stream for cat(output, source[:,4:5], target): a single
    # DMA stream / VMEM landing buffer feeds L1, perceptual and adversarial terms.
    # bf16 halves HBM/DMA bytes; all accumulation stays f32 in-kernel.
    # TODO(synk): tap formation still happens as a JAX-side im2col (9x patch
    # inflation in HBM); in-kernel halo DMA over the raw 9-channel image would cut
    # HBM reads by ~5-9x at large image sizes.
    stacked = jnp.concatenate(
        [output, source[:, 4:5, :, :], target], axis=1).astype(jnp.bfloat16)
    patches = _im2col_3x3_same(stacked)          # (M, Kf + Kt) bf16

    # Large row tiles: with row-reduced outputs, per-tile VMEM is just the
    # double-buffered input tile (~tm*512 B), well under every generation's budget.
    tm = min(tm_max, max(256, _round_up(pl.cdiv(M, num_cores), 256)))
    M_pad = _round_up(M, num_cores * tm)
    if M_pad != M:
        patches = jnp.pad(patches, ((0, M_pad - M), (0, 0)))

    out_l1, out_perc, out_adv = _fused_loss_sums(
        patches, params["w"], params["b"],
        tm=tm, num_cores=num_cores, cf=Cf, kf=Kf, kt=Kt)

    # L1 uses only the centre tap (index 4 of each 3x3 window) per channel;
    # apply the mask to the tiny row-reduced partials here, not per element.
    center_mask = (jnp.arange(Kt) % 9 == 4).astype(jnp.float32)
    l1_sum = jnp.sum(out_l1 * center_mask)
    perc_sum = jnp.sum(out_perc)
    adv_sum = jnp.sum(out_adv)

    # Zero-padded rows contribute 0 to L1/perceptual (both perceptual column blocks
    # share b_perc, so their relu'd biases cancel) but softplus(-b_disc) each to the
    # adversarial sum; subtract that exact constant.
    if M_pad != M:
        bd = params["b_disc_scalar"]
        adv_sum = adv_sum - (M_pad - M) * (jnp.maximum(-bd, 0.0) +
                                           jnp.log1p(jnp.exp(-jnp.abs(bd))))

    l1 = l1_sum / (B * C * H * W)
    perc = perc_sum / (B * H * W * Cf)
    adv = adv_sum / (B * H * W)

    gen = l1_weight * l1 + perceptual_weight * perc + adversarial_weight * adv
    return gen, l1, perc, adv


if __name__ == "__main__":
    key = jax.random.PRNGKey(0)
    ko, kt_, ks = jax.random.split(key, 3)

    B, C, H, W = 2, 4, 16, 16          # output/target: [B, 4, H, W]
    SRC_C = 5                          # source must have >= 5 channels (uses channel 4)

    output = jax.random.normal(ko, (B, C, H, W), jnp.float32)
    target = jax.random.normal(kt_, (B, C, H, W), jnp.float32)
    source = jax.random.normal(ks, (B, SRC_C, H, W), jnp.float32)

    params = make_params(img_channels=C, feat_channels=8, seed=0)

    loss_fn = jax.jit(generator_loss)
    gen, l1, perc, adv = loss_fn(output, target, source, params)
    jax.block_until_ready((gen, l1, perc, adv))
    print("KERNEL_OK")
</pallas_src>

<mosaic_0001>
module attributes {stable_mosaic.version = 11 : i64} {
  func.func @_fused_loss_kernel(%arg0: i32, %arg1: i32, %arg2: memref<512x81xbf16, #tpu.memory_space<vmem>>, %arg3: memref<81x17xbf16, #tpu.memory_space<vmem>>, %arg4: memref<1x17xf32, #tpu.memory_space<vmem>>, %arg5: memref<1x1x36xf32, #tpu.memory_space<vmem>>, %arg6: memref<1x1x8xf32, #tpu.memory_space<vmem>>, %arg7: memref<1x1x1xf32, #tpu.memory_space<vmem>>) attributes {dimension_semantics = [#tpu.dimension_semantics<parallel>, #tpu.dimension_semantics<arbitrary>], iteration_bounds = array<i64: 1, 1>, scalar_prefetch = 0 : i64, scratch_operands = 0 : i64, tpu.core_type = #tpu.core_type<tc>, window_params = [{transform_indices = @transform_0, window_bounds = array<i64: 512, 81>}, {pipeline_mode = #tpu.pipeline_mode<synchronous>, transform_indices = @transform_1, window_bounds = array<i64: 81, 17>}, {pipeline_mode = #tpu.pipeline_mode<synchronous>, transform_indices = @transform_2, window_bounds = array<i64: 1, 17>}, {transform_indices = @transform_3, window_bounds = array<i64: 1, 1, 36>}, {transform_indices = @transform_4, window_bounds = array<i64: 1, 1, 8>}, {transform_indices = @transform_5, window_bounds = array<i64: 1, 1, 1>}]} {
    %c0_i32 = arith.constant 0 : i32
    %0 = arith.cmpi eq, %arg1, %c0_i32 : i32
    %1 = arith.extui %0 : i1 to i32
    %c0_i32_0 = arith.constant 0 : i32
    %2 = arith.cmpi ne, %1, %c0_i32_0 : i32
    scf.if %2 {
      %cst_32 = arith.constant 0.000000e+00 : f32
      %58 = vector.broadcast %cst_32 : f32 to vector<1x36xf32>
      %c0_33 = arith.constant 0 : index
      %c0_34 = arith.constant 0 : index
      %c0_35 = arith.constant 0 : index
      %59 = vector.load %arg5[%c0_33, %c0_34, %c0_35] : memref<1x1x36xf32, #tpu.memory_space<vmem>>, vector<1x1x36xf32>
      %60 = vector.shape_cast %59 : vector<1x1x36xf32> to vector<1x36xf32>
      %61 = vector.shape_cast %58 : vector<1x36xf32> to vector<1x1x36xf32>
      tpu.vector_store %arg5[%c0_33, %c0_34, %c0_35], %61 {strides = array<i32>} : memref<1x1x36xf32, #tpu.memory_space<vmem>>, vector<1x1x36xf32>,
      %cst_36 = arith.constant 0.000000e+00 : f32
      %62 = vector.broadcast %cst_36 : f32 to vector<1x8xf32>
      %c0_37 = arith.constant 0 : index
      %c0_38 = arith.constant 0 : index
      %c0_39 = arith.constant 0 : index
      %63 = vector.load %arg6[%c0_37, %c0_38, %c0_39] : memref<1x1x8xf32, #tpu.memory_space<vmem>>, vector<1x1x8xf32>
      %64 = vector.shape_cast %63 : vector<1x1x8xf32> to vector<1x8xf32>
      %65 = vector.shape_cast %62 : vector<1x8xf32> to vector<1x1x8xf32>
      tpu.vector_store %arg6[%c0_37, %c0_38, %c0_39], %65 {strides = array<i32>} : memref<1x1x8xf32, #tpu.memory_space<vmem>>, vector<1x1x8xf32>,
      %cst_40 = arith.constant 0.000000e+00 : f32
      %66 = vector.broadcast %cst_40 : f32 to vector<1x1xf32>
      %c0_41 = arith.constant 0 : index
      %c0_42 = arith.constant 0 : index
      %c0_43 = arith.constant 0 : index
      %67 = vector.load %arg7[%c0_41, %c0_42, %c0_43] : memref<1x1x1xf32, #tpu.memory_space<vmem>>, vector<1x1x1xf32>
      %68 = vector.shape_cast %67 : vector<1x1x1xf32> to vector<1x1xf32>
      %69 = vector.shape_cast %66 : vector<1x1xf32> to vector<1x1x1xf32>
      tpu.vector_store %arg7[%c0_41, %c0_42, %c0_43], %69 {strides = array<i32>} : memref<1x1x1xf32, #tpu.memory_space<vmem>>, vector<1x1x1xf32>,
    } else {
    }
    %c0 = arith.constant 0 : index
    %c0_1 = arith.constant 0 : index
    %3 = vector.load %arg2[%c0, %c0_1] : memref<512x81xbf16, #tpu.memory_space<vmem>>, vector<512x81xbf16>
    %c0_2 = arith.constant 0 : index
    %c0_3 = arith.constant 0 : index
    %4 = vector.load %arg3[%c0_2, %c0_3] : memref<81x17xbf16, #tpu.memory_space<vmem>>, vector<81x17xbf16>
    %cst = arith.constant dense<0.000000e+00> : vector<512x17xf32>
    %5 = tpu.matmul %3, %4, %cst {dimension_numbers = #tpu.dot_dimension_numbers<[1], [0], [0], [1], [0, 0, 1, 1], [], []>} : vector<512x81xbf16>, vector<81x17xbf16>, vector<512x17xf32> -> vector<512x17xf32>
    %c0_4 = arith.constant 0 : index
    %c0_5 = arith.constant 0 : index
    %6 = vector.load %arg4[%c0_4, %c0_5] : memref<1x17xf32, #tpu.memory_space<vmem>>, vector<1x17xf32>
    %7 = vector.broadcast %6 : vector<1x17xf32> to vector<512x17xf32>
    %8 = arith.addf %5, %7 : vector<512x17xf32>
    %9 = vector.extract_strided_slice %8 {offsets = [0, 0], sizes = [512, 8], strides = [1, 1]} : vector<512x17xf32> to vector<512x8xf32>
    %cst_6 = arith.constant 0.000000e+00 : f32
    %10 = vector.broadcast %cst_6 : f32 to vector<512x8xf32>
    %11 = arith.maximumf %9, %10 : vector<512x8xf32>
    %12 = vector.extract_strided_slice %8 {offsets = [0, 8], sizes = [512, 1], strides = [1, 1]} : vector<512x17xf32> to vector<512x1xf32>
    %13 = vector.extract_strided_slice %8 {offsets = [0, 9], sizes = [512, 8], strides = [1, 1]} : vector<512x17xf32> to vector<512x8xf32>
    %cst_7 = arith.constant 0.000000e+00 : f32
    %14 = vector.broadcast %cst_7 : f32 to vector<512x8xf32>
    %15 = arith.maximumf %13, %14 : vector<512x8xf32>
    %16 = arith.subf %11, %15 : vector<512x8xf32>
    %c0_8 = arith.constant 0 : index
    %c0_9 = arith.constant 0 : index
    %c0_10 = arith.constant 0 : index
    %17 = vector.load %arg6[%c0_8, %c0_9, %c0_10] : memref<1x1x8xf32, #tpu.memory_space<vmem>>, vector<1x1x8xf32>
    %18 = vector.shape_cast %17 : vector<1x1x8xf32> to vector<1x8xf32>
    %19 = arith.mulf %16, %16 : vector<512x8xf32>
    %cst_11 = arith.constant dense<0.000000e+00> : vector<8xf32>
    %20 = vector.multi_reduction <add>, %19, %cst_11 [0] : vector<512x8xf32> to vector<8xf32>
    %21 = vector.shape_cast %20 : vector<8xf32> to vector<1x8xf32>
    %22 = arith.addf %18, %21 : vector<1x8xf32>
    %c0_12 = arith.constant 0 : index
    %c0_13 = arith.constant 0 : index
    %c0_14 = arith.constant 0 : index
    %23 = vector.load %arg6[%c0_12, %c0_13, %c0_14] : memref<1x1x8xf32, #tpu.memory_space<vmem>>, vector<1x1x8xf32>
    %24 = vector.shape_cast %23 : vector<1x1x8xf32> to vector<1x8xf32>
    %25 = vector.shape_cast %22 : vector<1x8xf32> to vector<1x1x8xf32>
    tpu.vector_store %arg6[%c0_12, %c0_13, %c0_14], %25 {strides = array<i32>} : memref<1x1x8xf32, #tpu.memory_space<vmem>>, vector<1x1x8xf32>,
    %cst_15 = arith.constant 0.000000e+00 : f32
    %26 = vector.broadcast %cst_15 : f32 to vector<512x1xf32>
    %27 = arith.subf %26, %12 : vector<512x1xf32>
    %cst_16 = arith.constant 0.000000e+00 : f32
    %28 = vector.broadcast %cst_16 : f32 to vector<512x1xf32>
    %29 = arith.maximumf %27, %28 : vector<512x1xf32>
    %30 = math.absf %12 : vector<512x1xf32>
    %cst_17 = arith.constant 0.000000e+00 : f32
    %31 = vector.broadcast %cst_17 : f32 to vector<512x1xf32>
    %32 = arith.subf %31, %30 : vector<512x1xf32>
    %33 = math.exp %32 : vector<512x1xf32>
    %34 = math.log1p %33 : vector<512x1xf32>
    %35 = arith.addf %29, %34 : vector<512x1xf32>
    %c0_18 = arith.constant 0 : index
    %c0_19 = arith.constant 0 : index
    %c0_20 = arith.constant 0 : index
    %36 = vector.load %arg7[%c0_18, %c0_19, %c0_20] : memref<1x1x1xf32, #tpu.memory_space<vmem>>, vector<1x1x1xf32>
    %37 = vector.shape_cast %36 : vector<1x1x1xf32> to vector<1x1xf32>
    %cst_21 = arith.constant dense<0.000000e+00> : vector<1xf32>
    %38 = vector.multi_reduction <add>, %35, %cst_21 [0] : vector<512x1xf32> to vector<1xf32>
    %39 = vector.shape_cast %38 : vector<1xf32> to vector<1x1xf32>
    %40 = arith.addf %37, %39 : vector<1x1xf32>
    %c0_22 = arith.constant 0 : index
    %c0_23 = arith.constant 0 : index
    %c0_24 = arith.constant 0 : index
    %41 = vector.load %arg7[%c0_22, %c0_23, %c0_24] : memref<1x1x1xf32, #tpu.memory_space<vmem>>, vector<1x1x1xf32>
    %42 = vector.shape_cast %41 : vector<1x1x1xf32> to vector<1x1xf32>
    %43 = vector.shape_cast %40 : vector<1x1xf32> to vector<1x1x1xf32>
    tpu.vector_store %arg7[%c0_22, %c0_23, %c0_24], %43 {strides = array<i32>} : memref<1x1x1xf32, #tpu.memory_space<vmem>>, vector<1x1x1xf32>,
    %44 = vector.extract_strided_slice %3 {offsets = [0, 0], sizes = [512, 36], strides = [1, 1]} : vector<512x81xbf16> to vector<512x36xbf16>
    %45 = arith.extf %44 : vector<512x36xbf16> to vector<512x36xf32>
    %46 = vector.extract_strided_slice %3 {offsets = [0, 45], sizes = [512, 36], strides = [1, 1]} : vector<512x81xbf16> to vector<512x36xbf16>
    %47 = arith.extf %46 : vector<512x36xbf16> to vector<512x36xf32>
    %48 = arith.subf %45, %47 : vector<512x36xf32>
    %c0_25 = arith.constant 0 : index
    %c0_26 = arith.constant 0 : index
    %c0_27 = arith.constant 0 : index
    %49 = vector.load %arg5[%c0_25, %c0_26, %c0_27] : memref<1x1x36xf32, #tpu.memory_space<vmem>>, vector<1x1x36xf32>
    %50 = vector.shape_cast %49 : vector<1x1x36xf32> to vector<1x36xf32>
    %51 = math.absf %48 : vector<512x36xf32>
    %cst_28 = arith.constant dense<0.000000e+00> : vector<36xf32>
    %52 = vector.multi_reduction <add>, %51, %cst_28 [0] : vector<512x36xf32> to vector<36xf32>
    %53 = vector.shape_cast %52 : vector<36xf32> to vector<1x36xf32>
    %54 = arith.addf %50, %53 : vector<1x36xf32>
    %c0_29 = arith.constant 0 : index
    %c0_30 = arith.constant 0 : index
    %c0_31 = arith.constant 0 : index
    %55 = vector.load %arg5[%c0_29, %c0_30, %c0_31] : memref<1x1x36xf32, #tpu.memory_space<vmem>>, vector<1x1x36xf32>
    %56 = vector.shape_cast %55 : vector<1x1x36xf32> to vector<1x36xf32>
    %57 = vector.shape_cast %54 : vector<1x36xf32> to vector<1x1x36xf32>
    tpu.vector_store %arg5[%c0_29, %c0_30, %c0_31], %57 {strides = array<i32>} : memref<1x1x36xf32, #tpu.memory_space<vmem>>, vector<1x1x36xf32>,
    return
  }
  func.func @transform_0(%arg0: i32, %arg1: i32) -> (i32, i32) {
    %c1_i32 = arith.constant 1 : i32
    %0 = arith.muli %arg0, %c1_i32 : i32
    %1 = arith.addi %0, %arg1 : i32
    %c0_i32 = arith.constant 0 : i32
    %c0_i32_0 = arith.constant 0 : i32
    return %1, %c0_i32 : i32, i32
  }
  func.func @transform_1(%arg0: i32, %arg1: i32) -> (i32, i32) {
    %c0_i32 = arith.constant 0 : i32
    %c0_i32_0 = arith.constant 0 : i32
    %c0_i32_1 = arith.constant 0 : i32
    return %c0_i32, %c0_i32_0 : i32, i32
  }
  func.func @transform_2(%arg0: i32, %arg1: i32) -> (i32, i32) {
    %c0_i32 = arith.constant 0 : i32
    %c0_i32_0 = arith.constant 0 : i32
    %c0_i32_1 = arith.constant 0 : i32
    return %c0_i32, %c0_i32_0 : i32, i32
  }
  func.func @transform_3(%arg0: i32, %arg1: i32) -> (i32, i32, i32) {
    %c0_i32 = arith.constant 0 : i32
    %c0_i32_0 = arith.constant 0 : i32
    %c0_i32_1 = arith.constant 0 : i32
    return %arg0, %c0_i32, %c0_i32_0 : i32, i32, i32
  }
  func.func @transform_4(%arg0: i32, %arg1: i32) -> (i32, i32, i32) {
    %c0_i32 = arith.constant 0 : i32
    %c0_i32_0 = arith.constant 0 : i32
    %c0_i32_1 = arith.constant 0 : i32
    return %arg0, %c0_i32, %c0_i32_0 : i32, i32, i32
  }
  func.func @transform_5(%arg0: i32, %arg1: i32) -> (i32, i32, i32) {
    %c0_i32 = arith.constant 0 : i32
    %c0_i32_0 = arith.constant 0 : i32
    %c0_i32_1 = arith.constant 0 : i32
    return %arg0, %c0_i32, %c0_i32_0 : i32, i32, i32
  }
}

</mosaic_0001>

<bundles_post_ra>
// kernel: generator_loss.1
= control target key start
LH: loop header
LB: loop body
LE: loop exit
PB: predicated region body
PF: predicated region fallthrough
CT: control target
= control target key end

     0   :  { %vm326_vm0 = vcmask 662528   ;;  %vm423_vm1 = vcmask 1040384   ;;  %v3821_v15 = vmov 0   ;;  %s3822_s13 = smov 83   ;;  %s6697_s0 = inlined_call_operand.vmem [shape: bf16[512,81], index: 0, kind: input, shape index: {}]   ;;  %s6698_s1 = inlined_call_operand.vmem [shape: bf16[81,17], index: 1, kind: input, shape index: {}]   ;;  %s6699_s2 = inlined_call_operand.vmem [shape: f32[1,17], index: 2, kind: input, shape index: {}]   ;;  %s6700_s3 = inlined_call_operand.vmem [shape: f32[1,1,36], index: 3, kind: output, shape index: {0}]   ;;  %s6701_s4 = inlined_call_operand.vmem [shape: f32[1,1,8], index: 4, kind: output, shape index: {1}]   ;;  %s6702_s5 = inlined_call_operand.hbm [shape: f32[1,1,1], index: 5, kind: output, shape index: {2}]  }
   0x1   :  { %v3457_v0 = vld [vmem:[%s6698_s1] sm:$0xff]   ;;  %v3458_v1 = vld [vmem:[%s6698_s1 + $0x8] sm:$0xff]   ;;  %v3459_v2 = vld [vmem:[%s6698_s1 + $0x10] sm:$0xff]   ;;  %v425_v16 = vsel %vm423_vm1, 65535, %v3821_v15 }
   0x2   :  { %3207 = vmatprep.subr.bf16.mxu0 %v3457_v0  ;;  %3283 = vmatprep.subr.bf16.mxu1 %v3457_v0  ;;  %v3870_v3 = vld [vmem:[%s6697_s0] sm:$0xff]   ;;  %v3460_v7 = vld [vmem:[%s6698_s1 + $0x18] sm:$0xff]   ;;  %v3889_v8 = vld [vmem:[%s6697_s0 + $0x8] sm:$0xff]  }
   0x3   :  { %3208 = vmatpush3.bf16.msra.mxu0 %v3457_v0  ;;  %3289 = vmatpush3.bf16.msra.mxu1 %v3457_v0  ;;  %6944 = vst [vmem:[#allocation5_spill] sm:$0xff] %v3870_v3  ;;  %v3875_v4 = vld [vmem:[%s6697_s0 + $0x80] sm:$0xff]   ;;  %v6745_v5 = vunpack.c.l.bf16 %v3870_v3  ;;  %v6746_v6 = vunpack.c.h.bf16 %v3870_v3  ;;  %6946 = vst [vmem:[#allocation7_spill] sm:$0xff] %v3889_v8  ;;  %v6743_v10 = vunpack.c.l.bf16 %v3889_v8  ;;  %v3462_v12 = vld [vmem:[%s6698_s1 + $0x28] ss:$0 sps:$4 sm:$0x11]   ;;  %v6744_v14 = vunpack.c.h.bf16 %v3889_v8 }
   0x4   :  { %3209 = vmatprep.subr.bf16.mxu0 %v3458_v1  ;;  %3284 = vmatprep.subr.bf16.mxu1 %v3458_v1  ;;  %6945 = vst [vmem:[#allocation6_spill] sm:$0xff] %v3875_v4  ;;  %v3461_v11 = vld [vmem:[%s6698_s1 + $0x20] sm:$0xff]   ;;  %v3905_v13 = vld [vmem:[%s6697_s0 + $0x10] sm:$0xff]   ;;  %v3917_v19 = vld [vmem:[%s6697_s0 + $0x18] sm:$0xff]   ;;  %v427_v21 = vand.u32 %v3462_v12, %v425_v16 }
   0x5   :  { %3219 = vmatprep.mubr.msk.bf16.mxu0 %vm326_vm0, %v3870_v3  ;;  %3251 = vmatprep.mubr.msk.bf16.mxu1 %vm326_vm0, %v3875_v4  ;;  %v3302_v9 = vpack.i.bf16 %v6746_v6, %v6745_v5  ;;  %6947 = vst [vmem:[#allocation8_spill] sm:$0xff] %v3905_v13  ;;  %v6742_v17 = vunpack.c.l.bf16 %v3905_v13  ;;  %v3307_v18 = vpack.i.bf16 %v6744_v14, %v6743_v10  ;;  %6948 = vst [vmem:[#allocation9_spill] sm:$0xff] %v3917_v19  ;;  %v3923_v22 = vld [vmem:[%s6697_s0 + $0x20] sm:$0xff]  }
   0x6   :  { %v6741_v20 = vunpack.c.h.bf16 %v3905_v13  ;;  %6949 = vst [vmem:[#allocation10_spill] sm:$0xff] %v3923_v22  ;;  %v6739_v23 = vunpack.c.l.bf16 %v3917_v19 }
   0x7   :  { %3210 = vmatpush3.bf16.msra.mxu0 %v3458_v1  ;;  %3290 = vmatpush3.bf16.msra.mxu1 %v3458_v1 }
   0x8   :  { %3211 = vmatprep.subr.bf16.mxu0 %v3459_v2  ;;  %3285 = vmatprep.subr.bf16.mxu1 %v3459_v2 }
   0x9   :  { %3303 = vrot.lane.b32.xlu0 %v3302_v9, %s3822_s13 }
   0xb   :  { %3212 = vmatpush3.bf16.msra.mxu0 %v3459_v2  ;;  %3291 = vmatpush3.bf16.msra.mxu1 %v3459_v2 }
   0xc   :  { %3213 = vmatprep.subr.bf16.mxu0 %v3460_v7  ;;  %3286 = vmatprep.subr.bf16.mxu1 %v3460_v7 }
   0xf   :  { %3214 = vmatpush3.bf16.msra.mxu0 %v3460_v7  ;;  %3292 = vmatpush3.bf16.msra.mxu1 %v3460_v7 }
  0x10   :  { %3215 = vmatprep.subr.bf16.mxu0 %v3461_v11  ;;  %3287 = vmatprep.subr.bf16.mxu1 %v3461_v11 }
  0x11   :  { %11 = vsyncpa [#allocation3], 0  ;;  %v3929_v24 = vld [vmem:[%s6697_s0 + $0x28] sm:$0xff]   ;;  %3308 = vrot.lane.b32.xlu1 %v3307_v18, %s3822_s13  ;;  %v3312_v25 = vpack.i.bf16 %v6741_v20, %v6742_v17  ;;  %v6740_v26 = vunpack.c.h.bf16 %v3917_v19  ;;  %v6737_v27 = vunpack.c.l.bf16 %v3923_v22  ;;  %v6738_v28 = vunpack.c.h.bf16 %v3923_v22  ;;  %v3949_v32 = vld [vmem:[%s6697_s0 + $0x30] sm:$0xff]   ;;  %s3823_s21 = smov 119   ;;  %s3826_s26 = smov 120  }
  0x12   :  { %6950 = vst [vmem:[#allocation11_spill] sm:$0xff] %v3929_v24  ;;  %v6736_v29 = vunpack.c.l.bf16 %v3929_v24  ;;  %v6735_v30 = vunpack.c.h.bf16 %v3929_v24  ;;  %v3944_v31 = vld [vmem:[%s6697_s0 + $0x88] sm:$0xff]   ;;  %6952 = vst [vmem:[#allocation13_spill] sm:$0xff] %v3949_v32  ;;  %v3958_v34 = vld [vmem:[%s6697_s0 + $0x90] sm:$0xff]   ;;  %v6731_v36 = vunpack.c.l.bf16 %v3949_v32  ;;  %v6732_v37 = vunpack.c.h.bf16 %v3949_v32  ;;  %s3827_s27 = smov [#allocation2]  }
  0x13   :  { %3216 = vmatpush3.bf16.msra.mxu0 %v3461_v11  ;;  %3293 = vmatpush3.bf16.msra.mxu1 %v3461_v11  ;;  %6951 = vst [vmem:[#allocation12_spill] sm:$0xff] %v3944_v31  ;;  %v3317_v33 = vpack.i.bf16 %v6740_v26, %v6739_v23  ;;  %6953 = vst [vmem:[#allocation14_spill] sm:$0xff] %v3958_v34  ;;  %v3963_v35 = vld [vmem:[%s6697_s0 + $0x38] sm:$0xff]   ;;  %v3322_v38 = vpack.i.bf16 %v6738_v28, %v6737_v27  ;;  %v3982_v42 = vld [vmem:[%s6697_s0 + $0x40] sm:$0xff]   ;;  %vm2329_vm4 = vcmask 72768   ;;  %s3080_s28 = sshll.u32 %s3827_s27, 4  ;;  %s3081_s28 = int_to_ptr.vmem [resolvable:$true] %s3080_s28 }
  0x14   :  { %3217 = vmatprep.subr.bf16.mxu0 %v427_v21  ;;  %3288 = vmatprep.subr.bf16.mxu1 %v427_v21  ;;  %6954 = vst [vmem:[#allocation15_spill] sm:$0xff] %v3963_v35  ;;  %v3327_v39 = vpack.i.bf16 %v6735_v30, %v6736_v29  ;;  %v6730_v40 = vunpack.c.l.bf16 %v3963_v35  ;;  %v6729_v41 = vunpack.c.h.bf16 %v3963_v35  ;;  %6955 = vst [vmem:[#allocation16_spill] sm:$0xff] %v3982_v42  ;;  %v3987_v43 = vld [vmem:[%s6697_s0 + $0x48] sm:$0xff]   ;;  %v6728_v44 = vunpack.c.l.bf16 %v3982_v42  ;;  %v4014_v50 = vld [vmem:[%s6697_s0 + $0x98] sm:$0xff]   ;;  %s3797_s29 = scalar_lea.vmem %s3081_s28, 16  ;;  %s3801_s30 = scalar_lea.vmem %s3081_s28, 32 }
  0x15   :  { %3313 = vrot.lane.b32.xlu0 %v3312_v25, %s3822_s13  ;;  %3318 = vrot.lane.b32.xlu1 %v3317_v33, %s3822_s13  ;;  %6956 = vst [vmem:[#allocation17_spill] sm:$0xff] %v3987_v43  ;;  %v6727_v45 = vunpack.c.h.bf16 %v3982_v42  ;;  %v3332_v46 = vpack.i.bf16 %v6732_v37, %v6731_v36  ;;  %v6725_v48 = vunpack.c.l.bf16 %v3987_v43  ;;  %v6726_v49 = vunpack.c.h.bf16 %v3987_v43  ;;  %6957 = vst [vmem:[#allocation18_spill] sm:$0xff] %v4014_v50  ;;  %v4019_v51 = vld [vmem:[%s6697_s0 + $0x50] sm:$0xff]   ;;  %v4024_v52 = vld [vmem:[%s6697_s0 + $0xa0] sm:$0xff]   ;;  %p3798_p0 = scmp.ne.s32.totalorder %s3081_s28, %s3797_s29  ;;  %p3802_p1 = scmp.lt.s32.totalorder %s3081_s28, %s3081_s28 }
  0x16   :  { %v3337_v47 = vpack.i.bf16 %v6729_v41, %v6730_v40  ;;  %6958 = vst [vmem:[#allocation19_spill] sm:$0xff] %v4019_v51  ;;  %6959 = vst [vmem:[#allocation20_spill] sm:$0xff] %v4024_v52  ;;  %v4029_v53 = vld [vmem:[%s6697_s0 + $0x58] sm:$0xff]   ;;  %v6724_v55 = vunpack.c.l.bf16 %v4019_v51  ;;  %v6723_v57 = vunpack.c.h.bf16 %v4019_v51  ;;  %v4048_v60 = vld [vmem:[%s6697_s0 + $0x60] sm:$0xff]   ;;  %p3803_p2 = scmp.lt.s32.totalorder %s3801_s30, %s3797_s29 }
  0x17   :  { %3218 = vmatpush3.bf16.msra.mxu0 %v427_v21  ;;  %3294 = vmatpush3.bf16.msra.mxu1 %v427_v21  ;;  %6960 = vst [vmem:[#allocation21_spill] sm:$0xff] %v4029_v53  ;;  %v3342_v54 = vpack.i.bf16 %v6727_v45, %v6728_v44  ;;  %v3347_v56 = vpack.i.bf16 %v6726_v49, %v6725_v48  ;;  %v6722_v58 = vunpack.c.l.bf16 %v4029_v53  ;;  %v6721_v59 = vunpack.c.h.bf16 %v4029_v53  ;;  %v4053_v61 = vld [vmem:[%s6697_s0 + $0x68] sm:$0xff]   ;;  %v4083_v11 = vld [vmem:[%s6697_s0 + $0x70] sm:$0xff]   ;;  %v4091_v15 = vld [vmem:[%s6697_s0 + $0x78] sm:$0xff]  }
  0x18   :  { %6961 = vst [vmem:[#allocation22_spill] sm:$0xff] %v4048_v60  ;;  %6962 = vst [vmem:[#allocation23_spill] sm:$0xff] %v4053_v61  ;;  %v6720_v62 = vunpack.c.l.bf16 %v4048_v60  ;;  %v6719_v63 = vunpack.c.h.bf16 %v4048_v60  ;;  %v3352_v0 = vpack.i.bf16 %v6723_v57, %v6724_v55  ;;  %v6717_v2 = vunpack.c.l.bf16 %v4053_v61  ;;  %v93_v9 = vld [vmem:[%s6697_s0 + $0xa8] sm:$0xff]   ;;  %v95_v12 = vld [vmem:[%s6697_s0 + $0xb0] sm:$0xff]   ;;  %p3804_p3 = por %p3803_p2, %p3802_p1 }
  0x19   :  { %3323 = vrot.lane.b32.xlu0 %v3322_v38, %s3822_s13  ;;  %3328 = vrot.lane.b32.xlu1 %v3327_v39, %s3822_s13  ;;  %v3357_v1 = vpack.i.bf16 %v6721_v59, %v6722_v58  ;;  %v6718_v7 = vunpack.c.h.bf16 %v4053_v61  ;;  %6963 = vst [vmem:[#allocation24_spill] sm:$0xff] %v4083_v11  ;;  %6964 = vst [vmem:[#allocation25_spill] sm:$0xff] %v4091_v15  ;;  %v6716_v18 = vunpack.c.l.bf16 %v4083_v11  ;;  %v6715_v25 = vunpack.c.h.bf16 %v4083_v11 }
  0x1a   :  { %3220 = vmatmul.mubr.msk.bf16.vlgmr.msra.gmra.mrb[0].mxu0 %vm326_vm0, %v3889_v8  ;;  %3252 = vmatmul.mubr.msk.bf16.vlgmr.msra.gmra.mrb[0].mxu1 %vm326_vm0, %v3944_v31  ;;  %v3362_v16 = vpack.i.bf16 %v6719_v63, %v6720_v62  ;;  %v6703_v33 = vunpack.c.l.bf16 %v4091_v15  ;;  %v6714_v38 = vunpack.c.h.bf16 %v4091_v15  ;;  %v6713_v39 = vunpack.c.l.bf16 %v3875_v4  ;;  %p3805_p4 = pnand %p3804_p3, %p3798_p0 }
  0x1b   :  { %3223 = vmatprep.mubr.msk.bf16.mxu0 %vm326_vm0, %v3905_v13  ;;  %3255 = vmatprep.mubr.msk.bf16.mxu1 %vm326_vm0, %v3958_v34  ;;  %v3367_v21 = vpack.i.bf16 %v6718_v7, %v6717_v2 }
  0x1d   :  { %3333 = vrot.lane.b32.xlu0 %v3332_v46, %s3822_s13  ;;  %3338 = vrot.lane.b32.xlu1 %v3337_v47, %s3822_s13  ;;  %v6710_v46 = vunpack.c.h.bf16 %v3875_v4  ;;  %v3372_v47 = vpack.i.bf16 %v6715_v25, %v6716_v18 }
  0x21   :  { %3343 = vrot.lane.b32.xlu0 %v3342_v54, %s3822_s13  ;;  %3348 = vrot.lane.b32.xlu1 %v3347_v56, %s3822_s13  ;;  %v3377_v54 = vpack.i.bf16 %v6714_v38, %v6703_v33  ;;  %v6709_v56 = vunpack.c.l.bf16 %v3944_v31 }
  0x22   :  { %3224 = vmatmul.mubr.msk.bf16.gmra.mrb[4].mxu0 %vm326_vm0, %v3917_v19  ;;  %3256 = vmatmul.mubr.msk.bf16.gmra.mrb[4].mxu1 %vm326_vm0, %v4014_v50 }
  0x23   :  { %3227 = vmatprep.mubr.msk.bf16.mxu0 %vm326_vm0, %v3923_v22  ;;  %3259 = vmatprep.mubr.msk.bf16.mxu1 %vm326_vm0, %v4024_v52 }
  0x25   :  { %3353 = vrot.lane.b32.xlu0 %v3352_v0, %s3822_s13  ;;  %3358 = vrot.lane.b32.xlu1 %v3357_v1, %s3822_s13  ;;  %v6708_v0 = vunpack.c.h.bf16 %v3944_v31  ;;  %v97_v1 = vld [vmem:[%s6697_s0 + $0xb8] sm:$0xff]  }
  0x27   :  { %v3387_v33 = vpack.i.bf16 %v6708_v0, %v6709_v56 }
  0x29   :  { %3363 = vrot.lane.b32.xlu0 %v3362_v16, %s3822_s13  ;;  %3368 = vrot.lane.b32.xlu1 %v3367_v21, %s3822_s13  ;;  %v99_v16 = vld [vmem:[%s6697_s0 + $0xc0] sm:$0xff]   ;;  %v6705_v21 = vunpack.c.l.bf16 %v3958_v34 }
  0x2a   :  { %3228 = vmatmul.mubr.msk.bf16.gmra.mrb[8].mxu0 %vm326_vm0, %v3929_v24  ;;  %3260 = vmatmul.mubr.msk.bf16.gmra.mrb[8].mxu1 %vm326_vm0, %v93_v9  ;;  %v3382_v9 = vpack.i.bf16 %v6710_v46, %v6713_v39 }
  0x2b   :  { %3231 = vmatprep.mubr.msk.bf16.mxu0 %vm326_vm0, %v3949_v32  ;;  %3263 = vmatprep.mubr.msk.bf16.mxu1 %vm326_vm0, %v95_v12  ;;  %v6704_v12 = vunpack.c.h.bf16 %v3958_v34 }
  0x2d   :  { %3373 = vrot.lane.b32.xlu1 %v3372_v47, %s3822_s13  ;;  %3378 = vrot.lane.b32.xlu0 %v3377_v54, %s3822_s13  ;;  %v3392_v47 = vpack.i.bf16 %v6704_v12, %v6705_v21  ;;  %v101_v54 = vld [vmem:[%s6697_s0 + $0xc8] sm:$0xff]   ;;  %v4217_v12 = vld [vmem:[%s6699_s2] ss:$0 sm:$0xff] }
  0x31   :  { %3383 = vrot.lane.b32.xlu1 %v3382_v9, %s3822_s13  ;;  %3388 = vrot.lane.b32.xlu0 %v3387_v33, %s3822_s13  ;;  %v103_v9 = vld [vmem:[%s6697_s0 + $0xd0] sm:$0xff]   ;;  %v105_v33 = vld [vmem:[%s6697_s0 + $0xd8] sm:$0xff]  }
  0x32   :  { %3232 = vmatmul.mubr.msk.bf16.gmra.mrb[12].mxu0 %vm326_vm0, %v3963_v35  ;;  %3264 = vmatmul.mubr.msk.bf16.gmra.mrb[12].mxu1 %vm326_vm0, %v97_v1  ;;  %v107_v1 = vld [vmem:[%s6697_s0 + $0xe0] sm:$0xff]  }
  0x33   :  { %3235 = vmatprep.mubr.msk.bf16.mxu0 %vm326_vm0, %v3982_v42  ;;  %3267 = vmatprep.mubr.msk.bf16.mxu1 %vm326_vm0, %v99_v16  ;;  %v109_v16 = vld [vmem:[%s6697_s0 + $0xe8] sm:$0xff]  }
  0x35   :  { %3393 = vrot.lane.b32.xlu1 %v3392_v47, %s3822_s13  ;;  %v111_v47 = vld [vmem:[%s6697_s0 + $0xf0] sm:$0xff]  }
  0x3a   :  { %3236 = vmatmul.mubr.msk.bf16.gmra.mrb[16].mxu0 %vm326_vm0, %v3987_v43  ;;  %3268 = vmatmul.mubr.msk.bf16.gmra.mrb[16].mxu1 %vm326_vm0, %v101_v54  ;;  %v113_v54 = vld [vmem:[%s6697_s0 + $0xf8] sm:$0xff]  }
  0x3b   :  { %3239 = vmatprep.mubr.msk.bf16.mxu0 %vm326_vm0, %v4019_v51  ;;  %3271 = vmatprep.mubr.msk.bf16.mxu1 %vm326_vm0, %v103_v9  ;;  %v6707_v9 = vunpack.c.l.bf16 %v4024_v52 }
  0x42   :  { %3240 = vmatmul.mubr.msk.bf16.gmra.mrb[20].mxu0 %vm326_vm0, %v4029_v53  ;;  %3272 = vmatmul.mubr.msk.bf16.gmra.mrb[20].mxu1 %vm326_vm0, %v105_v33  ;;  %v6706_v33 = vunpack.c.h.bf16 %v4024_v52 }
  0x43   :  { %3243 = vmatprep.mubr.msk.bf16.mxu0 %vm326_vm0, %v4048_v60  ;;  %3275 = vmatprep.mubr.msk.bf16.mxu1 %vm326_vm0, %v107_v1 }
  0x44   :  { %v3402_v1 = vpack.i.bf16 %v6706_v33, %v6707_v9 }
  0x46   :  { %3403 = vrot.lane.b32.xlu1 %v3402_v1, %s3822_s13 }
  0x4a   :  { %3244 = vmatmul.mubr.msk.bf16.gmra.mrb[24].mxu0 %vm326_vm0, %v4053_v61  ;;  %3276 = vmatmul.mubr.msk.bf16.gmra.mrb[24].mxu1 %vm326_vm0, %v109_v16  ;;  %v6712_v16 = vunpack.c.l.bf16 %v4014_v50 }
  0x4b   :  { %3247 = vmatprep.mubr.msk.bf16.mxu0 %vm326_vm0, %v4083_v11  ;;  %3279 = vmatprep.mubr.msk.bf16.mxu1 %vm326_vm0, %v111_v47  ;;  %v6711_v47 = vunpack.c.h.bf16 %v4014_v50 }
  0x52   :  { %3248 = vmatmul.mubr.msk.bf16.gmra.mrb[28].mxu0 %vm326_vm0, %v4091_v15  ;;  %3280 = vmatmul.mubr.msk.bf16.gmra.mrb[28].mxu1 %vm326_vm0, %v113_v54  ;;  %v3397_v54 = vpack.i.bf16 %v6711_v47, %v6712_v16 }
  0x54   :  { %3398 = vrot.lane.b32.xlu0 %v3397_v54, %s3822_s13 }
  0xed   :  { %v3221_v21 = vpop.f32.mrb[0].mxu0  ;;  %v3253_v33 = vpop.f32.mrb[0].mxu1 }
  0xee   :  { %v4220_v1 = vadd.f32 %v3221_v21, %v4217_v12  ;;  %v4223_v9 = vadd.f32 %v3253_v33, %v4217_v12  ;;  %v591_v0 = vpop.f32.mrb[1].mxu1  ;;  %v463_v56 = vpop.f32.mrb[1].mxu0 }
  0xef   :  { %v4226_v46 = vadd.f32 %v4217_v12, %v591_v0  ;;  %v4229_v54 = vadd.f32 %v4217_v12, %v463_v56  ;;  %v3254_v47 = vpop.f32.mrb[2].mxu1  ;;  %v3222_v16 = vpop.f32.mrb[2].mxu0 }
  0xf0   :  { %6965 = vst [vmem:[#allocation26_spill] sm:$0xff] %v4220_v1  ;;  %6966 = vst [vmem:[#allocation27_spill] sm:$0xff] %v4223_v9  ;;  %v1434_v39 = vand.u32 2147483647, %v4220_v1  ;;  %v1466_v38 = vand.u32 2147483647, %v4223_v9  ;;  %v4236_v56 = vadd.f32 %v3254_v47, %v4217_v12  ;;  %v4239_v58 = vadd.f32 %v3222_v16, %v4217_v12 }
  0xf1   :  { %6967 = vst [vmem:[#allocation28_spill] sm:$0xff] %v4226_v46  ;;  %6968 = vst [vmem:[#allocation29_spill] sm:$0xff] %v4229_v54  ;;  %v1464_v21 = vand.u32 2147483647, %v4226_v46  ;;  %v1432_v25 = vand.u32 2147483647, %v4229_v54 }
  0xf2   :  { %v1498_v33 = vsub.f32 0.0, %v1434_v39  ;;  %v1530_v18 = vsub.f32 0.0, %v1466_v38  ;;  %v466_v2 = vpop.f32.mrb[3].mxu0  ;;  %v594_v7 = vpop.f32.mrb[3].mxu1  ;;  %6969 = vst [vmem:[#allocation30_spill] sm:$0xff] %v4236_v56  ;;  %6970 = vst [vmem:[#allocation31_spill] sm:$0xff] %v4239_v58 }
  0xf3   :  { %v1528_v63 = vsub.f32 0.0, %v1464_v21  ;;  %v1496_v0 = vsub.f32 0.0, %v1432_v25  ;;  %v4242_v48 = vadd.f32 %v4217_v12, %v466_v2  ;;  %v1467_v38 = vand.u32 2147483647, %v4236_v56 }
  0xf4   :  { %v1564_v62 = vmul.f32 1.442695, %v1498_v33  ;;  %v1628_v59 = vmul.f32 1.442695, %v1530_v18  ;;  %v4246_v25 = vadd.f32 %v4217_v12, %v594_v7  ;;  %v1435_v16 = vand.u32 2147483647, %v4239_v58 }
  0xf5   :  { %v1624_v57 = vmul.f32 1.442695, %v1528_v63  ;;  %v1560_v55 = vmul.f32 1.442695, %v1496_v0  ;;  %6971 = vst [vmem:[#allocation32_spill] sm:$0xff] %v4242_v48  ;;  %v3225_v49 = vpop.f32.mrb[4].mxu0 }
  0xf6   :  { %v3257_v39 = vpop.f32.mrb[4].mxu1  ;;  %3527 = vpow2.f32 %v1564_v62  ;;  %6972 = vst [vmem:[#allocation33_spill] sm:$0xff] %v4246_v25  ;;  %v4250_v47 = vpop.f32.mrb[5].mxu0  ;;  %v1433_v63 = vand.u32 2147483647, %v4242_v48  ;;  %v1531_v2 = vsub.f32 0.0, %v1467_v38 }
  0xf7   :  { %v4248_v18 = vpop.f32.mrb[5].mxu1  ;;  %3529 = vpow2.f32 %v1628_v59  ;;  %v4254_v21 = vpop.f32.mrb[6].mxu0  ;;  %v1499_v7 = vsub.f32 0.0, %v1435_v16  ;;  %v1465_v59 = vand.u32 2147483647, %v4246_v25  ;;  %v6733_v41 = vmax.f32 %v4220_v1, 0.0 }
  0xf8   :  { %3531 = vpow2.f32 %v1624_v57  ;;  %v4256_v33 = vpop.f32.mrb[6].mxu1  ;;  %v4258_v62 = vpop.f32.mrb[7].mxu0  ;;  %v1497_v0 = vsub.f32 0.0, %v1433_v63  ;;  %v1630_v44 = vmul.f32 1.442695, %v1531_v2  ;;  %v6734_v37 = vmax.f32 %v4229_v54, 0.0 }
  0xf9   :  { %3533 = vpow2.f32 %v1560_v55  ;;  %v4260_v45 = vpop.f32.mrb[7].mxu1  ;;  %v1566_v40 = vmul.f32 1.442695, %v1499_v7  ;;  %v1529_v57 = vsub.f32 0.0, %v1465_v59  ;;  %850 = vrot.lane.b32.xlu1 %v6733_v41, %s3823_s21  ;;  %v1306_v55 = vsub.f32 0.0, %v4220_v1 }
  0xfa   :  { %v1562_v36 = vmul.f32 1.442695, %v1497_v0  ;;  %3535 = vpow2.f32 %v1630_v44  ;;  %v1338_v38 = vsub.f32 0.0, %v4223_v9  ;;  %846 = vrot.lane.b32.xlu0 %v6734_v37, %s3823_s21  ;;  %v1336_v44 = vsub.f32 0.0, %v4226_v46 }
  0xfb   :  { %3537 = vpow2.f32 %v1566_v40  ;;  %v1626_v2 = vmul.f32 1.442695, %v1529_v57  ;;  %v4281_v0 = vadd.f32 %v3225_v49, %v4217_v12  ;;  %v4284_v59 = vadd.f32 %v3257_v39, %v4217_v12 }
  0xfc   :  { %3539 = vpow2.f32 %v1562_v36  ;;  %v1304_v37 = vsub.f32 0.0, %v4229_v54  ;;  %v1339_v30 = vsub.f32 0.0, %v4236_v56  ;;  %v6752_v36 = vmax.f32 %v4223_v9, 0.0 }
  0xfd   :  { %v4273_v16 = vpop.f32.mrb[8].mxu0  ;;  %v4275_v63 = vpop.f32.mrb[8].mxu1  ;;  %6973 = vst [vmem:[#allocation34_spill] sm:$0xff] %v4281_v0  ;;  %6974 = vst [vmem:[#allocation35_spill] sm:$0xff] %v4284_v59  ;;  %3541 = vpow2.f32 %v1626_v2  ;;  %v4299_v27 = vmax.f32 %v1306_v55, 0.0  ;;  %v4302_v28 = vmax.f32 %v1338_v38, 0.0  ;;  %v4330_v9 = vadd.f32 %v4217_v12, %v4248_v18 }
  0xfe   :  { %v4278_v7 = vpop.f32.mrb[9].mxu1  ;;  %v4286_v40 = vpop.f32.mrb[9].mxu0  ;;  %v1307_v23 = vsub.f32 0.0, %v4239_v58  ;;  %v4308_v20 = vmax.f32 %v1336_v44, 0.0  ;;  %v1305_v17 = vsub.f32 0.0, %v4242_v48  ;;  %v1337_v10 = vsub.f32 0.0, %v4246_v25  ;;  %914 = vrot.lane.b32.xlu1 %v6752_v36, %s3823_s21 }
  0xff   :  { %v4293_v57 = vpop.f32.mrb[10].mxu0  ;;  %v4295_v29 = vpop.f32.mrb[10].mxu1  ;;  %v1438_v38 = vand.u32 2147483647, %v4281_v0  ;;  %v1470_v14 = vand.u32 2147483647, %v4284_v59 }
 0x100   :  { %v4288_v41 = vpop.eup %3527  ;;  %v4319_v5 = vpop.f32.mrb[11].mxu0  ;;  %v4323_v44 = vmax.f32 %v1304_v37, 0.0  ;;  %v4325_v52 = vmax.f32 %v1339_v30, 0.0  ;;  %v1310_v50 = vsub.f32 0.0, %v4281_v0  ;;  %6975 = vst [vmem:[#allocation36_spill] sm:$0xff] %v4330_v9  ;;  %v4334_v31 = vmax.f32 %v1307_v23, 0.0 }
 0x101   :  { %v4297_v49 = vpop.eup %3529  ;;  %v1706_v39 = vadd.f32 1.0, %v4288_v41  ;;  %v4321_v6 = vpop.f32.mrb[11].mxu1  ;;  %v1709_v36 = vmul.f32 -0.5, %v4288_v41  ;;  %v4341_v37 = vmax.f32 %v1305_v17, 0.0  ;;  %v4343_v11 = vmax.f32 %v1337_v10, 0.0 }
 0x102   :  { %v4305_v26 = vpop.eup %3531  ;;  %v1994_v2 = vadd.f32 1.0, %v4297_v49  ;;  %v1997_v61 = vmul.f32 -0.5, %v4297_v49  ;;  %v1502_v23 = vsub.f32 0.0, %v1438_v38  ;;  %v1534_v1 = vsub.f32 0.0, %v1470_v14 }
 0x103   :  { %v4315_v55 = vpop.eup %3533  ;;  %3543 = vlog2.f32 %v1706_v39  ;;  %v1976_v30 = vadd.f32 1.0, %v4305_v26  ;;  %v1342_v17 = vsub.f32 0.0, %v4284_v59  ;;  %v1468_v53 = vand.u32 2147483647, %v4330_v9 }
 0x104   :  { %v1688_v34 = vadd.f32 1.0, %v4315_v55  ;;  %v4338_v15 = vpop.eup %3535  ;;  %3545 = vlog2.f32 %v1994_v2  ;;  %v4354_v2 = vmax.f32 %v1310_v50, 0.0  ;;  %v1710_v43 = vadd.f32 1.0, %v1709_v36 }
 0x105   :  { %v4336_v4 = vpop.f32.mrb[12].mxu0  ;;  %v4347_v39 = vpop.eup %3537  ;;  %v1712_v42 = vand.u32 2147483647, %v4288_v41  ;;  %v1691_v50 = vmul.f32 -0.5, %v4315_v55  ;;  %v2003_v35 = vadd.f32 1.0, %v4338_v15  ;;  %v1998_v32 = vadd.f32 1.0, %v1997_v61 }
 0x106   :  { %6976 = vst [vmem:[#allocation37_spill] sm:$0xff] %v4336_v4  ;;  %v4345_v18 = vpop.f32.mrb[13].mxu0  ;;  %3547 = vlog2.f32 %v1688_v34  ;;  %v4352_v60 = vpop.eup %3539  ;;  %v2000_v34 = vand.u32 2147483647, %v4297_v49  ;;  %v1715_v14 = vadd.f32 1.0, %v4347_v39  ;;  %v1979_v36 = vmul.f32 -0.5, %v4305_v26 }
 0x107   :  { %6977 = vst [vmem:[#allocation38_spill] sm:$0xff] %v4345_v18  ;;  %v4350_v54 = vpop.f32.mrb[14].mxu0  ;;  %v4364_v38 = vpop.eup %3541  ;;  %3549 = vlog2.f32 %v1976_v30  ;;  %v1697_v10 = vadd.f32 1.0, %v4352_v60  ;;  %v1572_v24 = vmul.f32 1.442695, %v1502_v23  ;;  %v2006_v30 = vmul.f32 -0.5, %v4338_v15 }
 0x108   :  { %6978 = vst [vmem:[#allocation39_spill] sm:$0xff] %v4350_v54  ;;  %v4359_v51 = vpop.f32.mrb[15].mxu0  ;;  %3551 = vlog2.f32 %v1715_v14  ;;  %v1636_v22 = vmul.f32 1.442695, %v1534_v1  ;;  %v1694_v19 = vand.u32 2147483647, %v4315_v55  ;;  %v1711_v1 = vmul.f32 %v4288_v41, %v1710_v43 }
 0x109   :  { %6979 = vst [vmem:[#allocation40_spill] sm:$0xff] %v4359_v51  ;;  %3553 = vlog2.f32 %v1697_v10  ;;  %v1985_v13 = vadd.f32 1.0, %v4364_v38  ;;  %vm4372_vm2 = vcmp.lt.f32.partialorder %v1712_v42, 0.0004427343  ;;  %v1718_v3 = vmul.f32 -0.5, %v4347_v39 }
 0x10a   :  { %v4378_v51 = vmax.f32 %v1342_v17, 0.0  ;;  %vm4383_vm3 = vcmp.lt.f32.partialorder %v2000_v34, 0.0004427343  ;;  %v1692_v10 = vadd.f32 1.0, %v1691_v50  ;;  %3555 = vlog2.f32 %v2003_v35 }
 0x10b   :  { %v4390_v54 = vmul.f32 %v4297_v49, %v1998_v32  ;;  %v1982_v18 = vand.u32 2147483647, %v4305_v26  ;;  %v1700_v17 = vmul.f32 -0.5, %v4352_v60  ;;  %3557 = vlog2.f32 %v1985_v13 }
 0x10c   :  { %v1980_v43 = vadd.f32 1.0, %v1979_v36  ;;  %vm4396_vm5 = vcmp.lt.f32.partialorder %v1694_v19, 0.0004427343  ;;  %3559 = vpow2.f32 %v1572_v24  ;;  %v1532_v35 = vsub.f32 0.0, %v1468_v53 }
 0x10d   :  { %v4380_v61 = vpop.f32.mrb[16].mxu0  ;;  %v3544_v14 = vpop.eup %3543  ;;  %v2007_v49 = vadd.f32 1.0, %v2006_v30  ;;  %v1719_v4 = vadd.f32 1.0, %v1718_v3  ;;  %3561 = vpow2.f32 %v1636_v22  ;;  %v1721_v19 = vand.u32 2147483647, %v4347_v39 }
 0x10e   :  { %6982 = vst [vmem:[#allocation41_spill] sm:$0xff] %v4380_v61  ;;  %v4387_v42 = vpop.f32.mrb[17].mxu0  ;;  %v3546_v41 = vpop.eup %3545  ;;  %v1708_v13 = vmul.f32 0.6931472, %v3544_v14  ;;  %v1632_v59 = vmul.f32 1.442695, %v1532_v35  ;;  %v4407_v24 = vadd.f32 %v4217_v12, %v4250_v47  ;;  %v4411_v53 = vadd.f32 %v4254_v21, %v4217_v12 }
 0x10f   :  { %6985 = vst [vmem:[#allocation42_spill] sm:$0xff] %v4387_v42  ;;  %v4394_v61 = vpop.f32.mrb[18].mxu0  ;;  %v2009_v42 = vand.u32 2147483647, %v4338_v15  ;;  %v1701_v36 = vadd.f32 1.0, %v1700_v17  ;;  %v4422_v47 = vmul.f32 %v4338_v15, %v2007_v49  ;;  %v1988_v35 = vmul.f32 -0.5, %v4364_v38 }
 0x110   :  { %6986 = vst [vmem:[#allocation43_spill] sm:$0xff] %v4394_v61  ;;  %v4400_v50 = vpop.f32.mrb[19].mxu0  ;;  %v3548_v32 = vpop.eup %3547  ;;  %v1693_v61 = vmul.f32 %v4315_v55, %v1692_v10  ;;  %6990 = vst [vmem:[#allocation45_spill] sm:$0xff] %v4407_v24  ;;  %v1703_v22 = vand.u32 2147483647, %v4352_v60  ;;  %3563 = vpow2.f32 %v1632_v59  ;;  %v1981_v10 = vmul.f32 %v4305_v26, %v1980_v43 }
 0x111   :  { %6989 = vst [vmem:[#allocation44_spill] sm:$0xff] %v4400_v50  ;;  %v1690_v0 = vmul.f32 0.6931472, %v3548_v32  ;;  %6991 = vst [vmem:[#allocation46_spill] sm:$0xff] %v4411_v53  ;;  %v3550_v30 = vpop.eup %3549  ;;  %v1996_v50 = vmul.f32 0.6931472, %v3546_v41  ;;  %v1720_v59 = vmul.f32 %v4347_v39, %v1719_v4  ;;  %v1702_v15 = vmul.f32 %v4352_v60, %v1701_v36 }
 0x112   :  { %v3552_v55 = vpop.eup %3551  ;;  %vm4417_vm6 = vcmp.lt.f32.partialorder %v1982_v18, 0.0004427343  ;;  %v1436_v21 = vand.u32 2147483647, %v4407_v24  ;;  %v1439_v26 = vand.u32 2147483647, %v4411_v53 }
 0x113   :  { %v1696_v3 = vsel %vm4396_vm5, %v1693_v61, %v1690_v0  ;;  %v3554_v41 = vpop.eup %3553  ;;  %v1714_v0 = vsel %vm4372_vm2, %v1711_v1, %v1708_v13  ;;  %v1717_v61 = vmul.f32 0.6931472, %v3552_v55  ;;  %v2002_v8 = vsel %vm4383_vm3, %v4390_v54, %v1996_v50 }
 0x114   :  { %v2264_v43 = vadd.f32 %v1696_v3, %v4323_v44  ;;  %v1699_v34 = vmul.f32 0.6931472, %v3554_v41  ;;  %v3556_v49 = vpop.eup %3555  ;;  %vm4441_vm7 = vcmp.lt.f32.partialorder %v2009_v42, 0.0004427343  ;;  %vm4445_vm8 = vcmp.lt.f32.partialorder %v1721_v19, 0.0004427343 }
 0x115   :  { %v4425_v17 = vpop.f32.mrb[20].mxu0  ;;  %vm1704_vm9 = vcmp.lt.f32.partialorder %v1703_v22, 0.0004427343  ;;  %v1500_v44 = vsub.f32 0.0, %v1436_v21  ;;  %v3558_v60 = vpop.eup %3557  ;;  %v2266_v1 = vadd.f32 %v1714_v0, %v4299_v27  ;;  %v1978_v13 = vmul.f32 0.6931472, %v3550_v30 }
 0x116   :  { %v4431_v18 = vpop.f32.mrb[21].mxu0  ;;  %v1723_v36 = vsel %vm4445_vm8, %v1720_v59, %v1717_v61  ;;  %v1705_v3 = vsel %vm1704_vm9, %v1702_v15, %v1699_v34  ;;  %v4452_v23 = vpop.eup %3559  ;;  %v1991_v42 = vand.u32 2147483647, %v4364_v38  ;;  %v6998_v50 = vsub.f32 0.0, %v4330_v9 }
 0x117   :  { %v4436_v32 = vpop.f32.mrb[22].mxu0  ;;  %v2265_v54 = vadd.f32 %v1705_v3, %v4341_v37  ;;  %v1503_v22 = vsub.f32 0.0, %v1439_v26  ;;  %v4460_v55 = vpop.eup %3561  ;;  %v2298_v27 = vadd.f32 %v2002_v8, %v4302_v28  ;;  %v2330_v30 = vsel %vm2329_vm4, %v2264_v43, 0.0 }
 0x118   :  { %v4458_v19 = vmax.f32 %v6998_v50, 0.0  ;;  %v1989_v21 = vadd.f32 1.0, %v1988_v35  ;;  %v1742_v41 = vadd.f32 1.0, %v4452_v23  ;;  %v2267_v0 = vadd.f32 %v1723_v36, %v4334_v31  ;;  %v4468_v34 = vpop.f32.mrb[23].mxu0 }
 0x119   :  { %v2331_v37 = vsel %vm2329_vm4, %v2265_v54, 0.0  ;;  %v2030_v61 = vadd.f32 1.0, %v4460_v55  ;;  %v1568_v59 = vmul.f32 1.442695, %v1500_v44  ;;  %v2333_v26 = vsel %vm2329_vm4, %v2266_v1, 0.0 }
 0x11a   :  { %v1984_v15 = vsel %vm4417_vm6, %v1981_v10, %v1978_v13  ;;  %v2005_v28 = vmul.f32 0.6931472, %v3556_v49  ;;  %v2332_v8 = vadd.f32 %v2331_v37, %v2330_v30  ;;  %v4473_v43 = vpop.eup %3563  ;;  %v1987_v35 = vmul.f32 0.6931472, %v3558_v60 }
 0x11b   :  { %3565 = vlog2.f32 %v1742_v41  ;;  %v1574_v39 = vmul.f32 1.442695, %v1503_v22  ;;  %v4477_v31 = vadd.f32 %v4256_v33, %v4217_v12  ;;  %v1990_v44 = vmul.f32 %v4364_v38, %v1989_v21 }
 0x11c   :  { %v2334_v36 = vadd.f32 %v2333_v26, %v2332_v8  ;;  %vm4480_vm10 = vcmp.lt.f32.partialorder %v1991_v42, 0.0004427343  ;;  %3567 = vlog2.f32 %v2030_v61  ;;  %v4485_v10 = vsel %vm2329_vm4, %v2298_v27, 0.0 }
 0x11d   :  { %6999 = vst [vmem:[#allocation47_spill] sm:$0xff] %v4477_v31  ;;  %7002 = vst [vmem:[#allocation48_spill] sm:$0xff] %v4485_v10  ;;  %v2296_v14 = vadd.f32 %v1984_v15, %v4308_v20  ;;  %v2335_v49 = vsel %vm2329_vm4, %v2267_v0, 0.0  ;;  %3569 = vpow2.f32 %v1568_v59  ;;  %v2011_v33 = vsel %vm4441_vm7, %v4422_v47, %v2005_v28  ;;  %v4496_v13 = vpop.f32.mrb[24].mxu0 }
 0x11e   :  { %v2012_v60 = vadd.f32 1.0, %v4473_v43  ;;  %v1308_v38 = vsub.f32 0.0, %v4407_v24  ;;  %v4494_v1 = vadd.f32 %v2335_v49, %v2334_v36  ;;  %v1993_v54 = vsel %vm4480_vm10, %v1990_v44, %v1987_v35  ;;  %v4502_v50 = vpop.f32.mrb[25].mxu0 }
 0x11f   :  { %v1745_v20 = vmul.f32 -0.5, %v4452_v23  ;;  %3571 = vpow2.f32 %v1574_v39  ;;  %v1471_v42 = vand.u32 2147483647, %v4477_v31  ;;  %v2033_v47 = vmul.f32 -0.5, %v4460_v55 }
 0x120   :  { %v6797_v4 = vmax.f32 %v4226_v46, 0.0  ;;  %v4508_v22 = vadd.f32 %v4217_v12, %v4258_v62  ;;  %v4512_v27 = vadd.f32 %v4217_v12, %v4260_v45  ;;  %v2299_v30 = vadd.f32 %v2011_v33, %v4325_v52 }
 0x121   :  { %v1311_v21 = vsub.f32 0.0, %v4411_v53  ;;  %v1535_v41 = vsub.f32 0.0, %v1471_v42  ;;  %v6798_v0 = vmax.f32 %v4239_v58, 0.0  ;;  %v2297_v37 = vadd.f32 %v1993_v54, %v4343_v11 }
 0x122   :  { %7003 = vst [vmem:[#allocation49_spill] sm:$0xff] %v4508_v22  ;;  %7004 = vst [vmem:[#allocation50_spill] sm:$0xff] %v4512_v27  ;;  %3573 = vlog2.f32 %v2012_v60  ;;  %910 = vrot.lane.b32.xlu0 %v6797_v4, %s3823_s21  ;;  %v1437_v62 = vand.u32 2147483647, %v4508_v22  ;;  %v1469_v61 = vand.u32 2147483647, %v4512_v27  ;;  %v4529_v11 = vadd.f32 %v4273_v16, %v4217_v12 }
 0x123   :  { %v1746_v45 = vadd.f32 1.0, %v1745_v20  ;;  %v1748_v59 = vand.u32 2147483647, %v4452_v23  ;;  %v1638_v52 = vmul.f32 1.442695, %v1535_v41  ;;  %852 = vrot.lane.b32.xlu1 %v6798_v0, %s3823_s21  ;;  %v2034_v26 = vadd.f32 1.0, %v2033_v47 }
 0x124   :  { %7005 = vst [vmem:[#allocation51_spill] sm:$0xff] %v4529_v11  ;;  %v2015_v15 = vmul.f32 -0.5, %v4473_v43  ;;  %v1501_v28 = vsub.f32 0.0, %v1437_v62  ;;  %v6799_v8 = vmax.f32 %v4242_v48, 0.0  ;;  %v4534_v39 = vsel %vm2329_vm4, %v2296_v14, 0.0 }
 0x125   :  { %v3566_v35 = vpop.eup %3565  ;;  %7006 = vst [vmem:[#allocation52_spill] sm:$0xff] %v4534_v39  ;;  %3575 = vpow2.f32 %v1638_v52  ;;  %v1533_v36 = vsub.f32 0.0, %v1469_v61  ;;  %v1442_v44 = vand.u32 2147483647, %v4529_v11  ;;  %v4538_v49 = vsel %vm2329_vm4, %v2299_v30, 0.0 }
 0x126   :  { %v3568_v3 = vpop.eup %3567  ;;  %7007 = vst [vmem:[#allocation53_spill] sm:$0xff] %v4538_v49  ;;  %v4540_v16 = vmax.f32 %v1308_v38, 0.0  ;;  %v4542_v33 = vmax.f32 %v1311_v21, 0.0  ;;  %v1570_v60 = vmul.f32 1.442695, %v1501_v28  ;;  %848 = vrot.lane.b32.xlu0 %v6799_v8, %s3823_s21  ;;  %v4550_v14 = vsel %vm2329_vm4, %v2297_v37, 0.0 }
 0x127   :  { %v4547_v54 = vpop.eup %3569  ;;  %7008 = vst [vmem:[#allocation54_spill] sm:$0xff] %v4550_v14  ;;  %vm4552_vm11 = vcmp.lt.f32.partialorder %v1748_v59, 0.0004427343  ;;  %v2036_v42 = vand.u32 2147483647, %v4460_v55  ;;  %v4557_v38 = vpop.f32.mrb[26].mxu0  ;;  %v1747_v47 = vmul.f32 %v4452_v23, %v1746_v45  ;;  %v2035_v30 = vmul.f32 %v4460_v55, %v2034_v26 }
 0x128   :  { %v2016_v21 = vadd.f32 1.0, %v2015_v15  ;;  %v1724_v41 = vadd.f32 1.0, %v4547_v54  ;;  %3577 = vpow2.f32 %v1570_v60  ;;  %v1634_v37 = vmul.f32 1.442695, %v1533_v36 }
 0x129   :  { %v4562_v62 = vpop.eup %3571  ;;  %v1506_v61 = vsub.f32 0.0, %v1442_v44  ;;  %v4566_v59 = vadd.f32 %v4275_v63, %v4217_v12  ;;  %v1744_v52 = vmul.f32 0.6931472, %v3566_v35  ;;  %v2032_v28 = vmul.f32 0.6931472, %v3568_v3  ;;  %v4582_v44 = vpop.f32.mrb[27].mxu0 }
 0x12a   :  { %3579 = vlog2.f32 %v1724_v41  ;;  %v1751_v4 = vadd.f32 1.0, %v4562_v62  ;;  %vm4569_vm12 = vcmp.lt.f32.partialorder %v2036_v42, 0.0004427343  ;;  %v2018_v55 = vand.u32 2147483647, %v4473_v43 }
 0x12b   :  { %7011 = vst [vmem:[#allocation55_spill] sm:$0xff] %v4566_v59  ;;  %v1343_v45 = vsub.f32 0.0, %v4477_v31  ;;  %v4577_v26 = vadd.f32 %v4217_v12, %v4278_v7  ;;  %v2017_v63 = vmul.f32 %v4473_v43, %v2016_v21  ;;  %v1309_v35 = vsub.f32 0.0, %v4508_v22 }
 0x12c   :  { %v3574_v15 = vpop.eup %3573  ;;  %3581 = vlog2.f32 %v1751_v4  ;;  %v1341_v36 = vsub.f32 0.0, %v4512_v27  ;;  %v1314_v3 = vsub.f32 0.0, %v4529_v11  ;;  %v1580_v60 = vmul.f32 1.442695, %v1506_v61 }
 0x12d   :  { %7014 = vst [vmem:[#allocation56_spill] sm:$0xff] %v4577_v26  ;;  %3583 = vpow2.f32 %v1634_v37  ;;  %v4587_v42 = vadd.f32 %v4217_v12, %v4286_v40  ;;  %v1750_v7 = vsel %vm4552_vm11, %v1747_v47, %v1744_v52  ;;  %v2038_v43 = vsel %vm4569_vm12, %v2035_v30, %v2032_v28 }
 0x12e   :  { %v1727_v4 = vmul.f32 -0.5, %v4547_v54  ;;  %v1474_v21 = vand.u32 2147483647, %v4566_v59  ;;  %v2014_v37 = vmul.f32 0.6931472, %v3574_v15  ;;  %3585 = vpow2.f32 %v1580_v60 }
 0x12f   :  { %7015 = vst [vmem:[#allocation57_spill] sm:$0xff] %v4587_v42  ;;  %v4595_v41 = vpop.eup %3575  ;;  %v1472_v61 = vand.u32 2147483647, %v4577_v26  ;;  %v6800_v0 = vmax.f32 %v4236_v56, 0.0  ;;  %vm4599_vm13 = vcmp.lt.f32.partialorder %v2018_v55, 0.0004427343  ;;  %v2270_v52 = vadd.f32 %v1750_v7, %v4354_v2 }
 0x130   :  { %v4603_v20 = vmax.f32 %v1343_v45, 0.0  ;;  %v4605_v47 = vmax.f32 %v1309_v35, 0.0  ;;  %v1538_v30 = vsub.f32 0.0, %v1474_v21  ;;  %v2039_v28 = vadd.f32 1.0, %v4595_v41 }
 0x131   :  { %v4609_v23 = vmax.f32 %v1341_v36, 0.0  ;;  %916 = vrot.lane.b32.xlu1 %v6800_v0, %s3823_s21  ;;  %v1440_v55 = vand.u32 2147483647, %v4587_v42  ;;  %v2302_v15 = vadd.f32 %v2038_v43, %v4378_v51  ;;  %v1730_v45 = vand.u32 2147483647, %v4547_v54 }
 0x132   :  { %v4617_v60 = vmax.f32 %v1314_v3, 0.0  ;;  %v1536_v35 = vsub.f32 0.0, %v1472_v61  ;;  %v4619_v21 = vpop.eup %3577  ;;  %v2020_v2 = vsel %vm4599_vm13, %v2017_v63, %v2014_v37  ;;  %v1728_v36 = vadd.f32 1.0, %v1727_v4 }
 0x133   :  { %v1504_v7 = vsub.f32 0.0, %v1440_v55  ;;  %v4625_v8 = vadd.f32 %v4293_v57, %v4217_v12  ;;  %v1754_v56 = vmul.f32 -0.5, %v4562_v62  ;;  %v1733_v51 = vadd.f32 1.0, %v4619_v21 }
 0x134   :  { %v3580_v0 = vpop.eup %3579  ;;  %v1346_v3 = vsub.f32 0.0, %v4566_v59  ;;  %v1644_v43 = vmul.f32 1.442695, %v1538_v30  ;;  %v4631_v61 = vsel %vm2329_vm4, %v2270_v52, 0.0  ;;  %3587 = vlog2.f32 %v2039_v28  ;;  %v4698_v59 = vpop.f32.mrb[12].mxu1 }
 0x135   :  { %7018 = vst [vmem:[#allocation58_spill] sm:$0xff] %v4625_v8  ;;  %v1726_v46 = vmul.f32 0.6931472, %v3580_v0  ;;  %v1576_v63 = vmul.f32 1.442695, %v1504_v7  ;;  %v2300_v37 = vadd.f32 %v2020_v2, %v4458_v19  ;;  %3589 = vlog2.f32 %v1733_v51 }
 0x136   :  { %v3582_v4 = vpop.eup %3581  ;;  %v1640_v57 = vmul.f32 1.442695, %v1536_v35  ;;  %v1443_v40 = vand.u32 2147483647, %v4625_v8  ;;  %v4638_v58 = vsel %vm2329_vm4, %v2302_v15, 0.0  ;;  %v1729_v30 = vmul.f32 %v4547_v54, %v1728_v36 }
 0x137   :  { %v4635_v55 = vpop.eup %3583  ;;  %7019 = vst [vmem:[#allocation59_spill] sm:$0xff] %v4638_v58  ;;  %vm4641_vm14 = vcmp.lt.f32.partialorder %v1730_v45, 0.0004427343  ;;  %v1757_v0 = vand.u32 2147483647, %v4562_v62  ;;  %v1755_v28 = vadd.f32 1.0, %v1754_v56  ;;  %3591 = vpow2.f32 %v1644_v43 }
 0x138   :  { %v2042_v19 = vmul.f32 -0.5, %v4595_v41  ;;  %v2021_v35 = vadd.f32 1.0, %v4635_v55  ;;  %v4648_v2 = vpop.eup %3585  ;;  %v1732_v15 = vsel %vm4641_vm14, %v1729_v30, %v1726_v46  ;;  %v1736_v7 = vmul.f32 -0.5, %v4619_v21  ;;  %v4696_v58 = vpop.f32.mrb[28].mxu0 }
 0x139   :  { %3593 = vpow2.f32 %v1576_v63  ;;  %v1507_v54 = vsub.f32 0.0, %v1443_v40  ;;  %v4654_v45 = vsel %vm2329_vm4, %v2300_v37, 0.0  ;;  %v1753_v36 = vmul.f32 0.6931472, %v3582_v4 }
 0x13a   :  { %7022 = vst [vmem:[#allocation60_spill] sm:$0xff] %v4654_v45  ;;  %v4656_v51 = vmax.f32 %v1346_v3, 0.0  ;;  %3595 = vpow2.f32 %v1640_v57  ;;  %vm4658_vm15 = vcmp.lt.f32.partialorder %v1757_v0, 0.0004427343  ;;  %v2045_v43 = vand.u32 2147483647, %v4595_v41 }
 0x13b   :  { %v1778_v52 = vadd.f32 1.0, %v4648_v2  ;;  %v1344_v46 = vsub.f32 0.0, %v4577_v26  ;;  %v2268_v63 = vadd.f32 %v1732_v15, %v4540_v16  ;;  %v1756_v40 = vmul.f32 %v4562_v62, %v1755_v28 }
 0x13c   :  { %3597 = vlog2.f32 %v2021_v35  ;;  %v1582_v37 = vmul.f32 1.442695, %v1507_v54  ;;  %v2043_v4 = vadd.f32 1.0, %v2042_v19  ;;  %v1737_v3 = vadd.f32 1.0, %v1736_v7 }
 0x13d   :  { %3599 = vlog2.f32 %v1778_v52  ;;  %v4669_v57 = vadd.f32 %v4295_v29, %v4217_v12  ;;  %v1759_v30 = vsel %vm4658_vm15, %v1756_v40, %v1753_v36  ;;  %v1739_v0 = vand.u32 2147483647, %v4619_v21 }
 0x13e   :  { %3601 = vpow2.f32 %v1582_v37  ;;  %v6807_v48 = vmax.f32 %v4246_v25, 0.0  ;;  %v3588_v16 = vpop.eup %3587  ;;  %vm4675_vm0 = vcmp.lt.f32.partialorder %v2045_v43, 0.0004427343  ;;  %v2024_v28 = vmul.f32 -0.5, %v4635_v55 }
 0x13f   :  { %7025 = vst [vmem:[#allocation61_spill] sm:$0xff] %v4669_v57  ;;  %v4680_v19 = vmax.f32 %v1344_v46, 0.0  ;;  %v1312_v29 = vsub.f32 0.0, %v4587_v42  ;;  %v3590_v35 = vpop.eup %3589  ;;  %v2337_v15 = vsel %vm2329_vm4, %v2268_v63, 0.0  ;;  %v1781_v7 = vmul.f32 -0.5, %v4648_v2 }
 0x140   :  { %v1315_v54 = vsub.f32 0.0, %v4625_v8  ;;  %v1475_v36 = vand.u32 2147483647, %v4669_v57  ;;  %912 = vrot.lane.b32.xlu0 %v6807_v48, %s3823_s21  ;;  %v2271_v56 = vadd.f32 %v1759_v30, %v4542_v33  ;;  %v1735_v43 = vmul.f32 0.6931472, %v3590_v35  ;;  %v4706_v35 = vpop.f32.mrb[13].mxu1 }
 0x141   :  { %v1738_v52 = vmul.f32 %v4619_v21, %v1737_v3  ;;  %v2027_v46 = vand.u32 2147483647, %v4635_v55  ;;  %v4693_v40 = vpop.eup %3591  ;;  %v2041_v63 = vmul.f32 0.6931472, %v3588_v16  ;;  %v2044_v37 = vmul.f32 %v4595_v41, %v2043_v4  ;;  %v4704_v3 = vpop.f32.mrb[29].mxu0 }
 0x142   :  { %vm1740_vm1 = vcmp.lt.f32.partialorder %v1739_v0, 0.0004427343  ;;  %v2338_v48 = vadd.f32 %v2337_v15, %v4494_v1  ;;  %v2025_v30 = vadd.f32 1.0, %v2024_v28  ;;  %v1784_v21 = vand.u32 2147483647, %v4648_v2 }
 0x143   :  { %v4700_v45 = vpop.eup %3593  ;;  %v1741_v33 = vsel %vm1740_vm1, %v1738_v52, %v1735_v43  ;;  %v1782_v4 = vadd.f32 1.0, %v1781_v7  ;;  %v1539_v25 = vsub.f32 0.0, %v1475_v36  ;;  %v2343_v49 = vsel %vm2329_vm4, %v2271_v56, 0.0 }
 0x144   :  { %v4708_v16 = vpop.eup %3595  ;;  %v2269_v41 = vadd.f32 %v1741_v33, %v4605_v47  ;;  %v1760_v0 = vadd.f32 1.0, %v4700_v45  ;;  %vm4713_vm2 = vcmp.lt.f32.partialorder %v2027_v46, 0.0004427343  ;;  %v4717_v28 = vmax.f32 %v1312_v29, 0.0 }
 0x145   :  { %v4719_v15 = vmax.f32 %v1315_v54, 0.0  ;;  %v2047_v52 = vsel %vm4675_vm0, %v2044_v37, %v2041_v63  ;;  %v2066_v7 = vadd.f32 1.0, %v4693_v40  ;;  %v1347_v36 = vsub.f32 0.0, %v4669_v57 }
 0x146   :  { %v3598_v43 = vpop.eup %3597  ;;  %v2339_v47 = vsel %vm2329_vm4, %v2269_v41, 0.0  ;;  %v2026_v46 = vmul.f32 %v4635_v55, %v2025_v30  ;;  %vm4727_vm3 = vcmp.lt.f32.partialorder %v1784_v21, 0.0004427343  ;;  %v2048_v29 = vadd.f32 1.0, %v4708_v16 }
 0x147   :  { %v3600_v33 = vpop.eup %3599  ;;  %v2340_v56 = vadd.f32 %v2339_v47, %v2338_v48  ;;  %v1783_v62 = vmul.f32 %v4648_v2, %v1782_v4  ;;  %3603 = vlog2.f32 %v1760_v0  ;;  %v1646_v63 = vmul.f32 1.442695, %v1539_v25  ;;  %v4746_v2 = vpop.f32.mrb[14].mxu1 }
 0x148   :  { %v4732_v54 = vpop.eup %3601  ;;  %v4737_v37 = vadd.f32 %v4217_v12, %v4319_v5  ;;  %v2303_v48 = vadd.f32 %v2047_v52, %v4603_v20  ;;  %v2069_v30 = vmul.f32 -0.5, %v4693_v40  ;;  %v2072_v21 = vand.u32 2147483647, %v4693_v40  ;;  %7033 = vst [vmem:[#allocation63_spill] sm:$0xff] %v4746_v2  ;;  %v4751_v4 = vpop.f32.mrb[30].mxu0  ;;  %v7041_v2 = vld [vmem:[#allocation38_spill] sm:$0xff] }
 0x149   :  { %v2342_v55 = vadd.f32 %v4631_v61, %v2340_v56  ;;  %v2023_v41 = vmul.f32 0.6931472, %v3598_v43  ;;  %3605 = vlog2.f32 %v2066_v7  ;;  %v2051_v47 = vmul.f32 -0.5, %v4708_v16  ;;  %7034 = vst [vmem:[#allocation64_spill] sm:$0xff] %v4751_v4  ;;  %v7036_v43 = vld [vmem:[#allocation35_spill] sm:$0xff] }
 0x14a   :  { %7032 = vst [vmem:[#allocation62_spill] sm:$0xff] %v4737_v37  ;;  %v4744_v57 = vmax.f32 %v1347_v36, 0.0  ;;  %v1780_v25 = vmul.f32 0.6931472, %v3600_v33  ;;  %3607 = vlog2.f32 %v2048_v29  ;;  %v1787_v20 = vadd.f32 1.0, %v4732_v54 }
 0x14b   :  { %v4748_v5 = vadd.f32 %v2343_v49, %v2342_v55  ;;  %3609 = vpow2.f32 %v1646_v63  ;;  %v1441_v61 = vand.u32 2147483647, %v4737_v37  ;;  %v4756_v0 = vadd.f32 %v4217_v12, %v4321_v6  ;;  %v7037_v49 = vld [vmem:[#allocation34_spill] sm:$0xff]  ;;  %v7038_v6 = vld [vmem:[#allocation37_spill] sm:$0xff] }
 0x14c   :  { %v6812_v52 = vmax.f32 %v7036_v43, 0.0  ;;  %v2070_v7 = vadd.f32 1.0, %v2069_v30  ;;  %v1763_v36 = vmul.f32 -0.5, %v4700_v45  ;;  %v1313_v33 = vsub.f32 0.0, %v4737_v37 }
 0x14d   :  { %7035 = vst [vmem:[#allocation65_spill] sm:$0xff] %v4756_v0  ;;  %v2054_v29 = vand.u32 2147483647, %v4708_v16  ;;  %v1505_v55 = vsub.f32 0.0, %v1441_v61  ;;  %v1473_v63 = vand.u32 2147483647, %v4756_v0  ;;  %v4769_v14 = vadd.f32 %v7038_v6, %v4217_v12 }
 0x14e   :  { %922 = vrot.lane.b32.xlu1 %v6812_v52, %s3823_s21  ;;  %v2029_v30 = vsel %vm4713_vm2, %v2026_v46, %v2023_v41  ;;  %v2052_v39 = vadd.f32 1.0, %v2051_v47  ;;  %3611 = vlog2.f32 %v1787_v20  ;;  %v1790_v56 = vmul.f32 -0.5, %v4732_v54 }
 0x14f   :  { %7039 = vst [vmem:[#allocation37_spill] sm:$0xff] %v4769_v14  ;;  %v7040_v61 = vmax.f32 %v7037_v49, 0.0  ;;  %v1786_v4 = vsel %vm4727_vm3, %v1783_v62, %v1780_v25  ;;  %v1578_v43 = vmul.f32 1.442695, %v1505_v55  ;;  %v6814_v52 = vmax.f32 %v4411_v53, 0.0 }
 0x150   :  { %v4782_v6 = vadd.f32 %v4217_v12, %v7041_v2  ;;  %v4785_v1 = vsel %vm2329_vm4, %v2303_v48, 0.0  ;;  %v1764_v46 = vadd.f32 1.0, %v1763_v36  ;;  %v1766_v41 = vand.u32 2147483647, %v4700_v45 }
 0x151   :  { %858 = vrot.lane.b32.xlu0 %v7040_v61, %s3823_s21  ;;  %7043 = vst [vmem:[#allocation66_spill] sm:$0xff] %v4785_v1  ;;  %v1446_v47 = vand.u32 2147483647, %v4769_v14  ;;  %v3604_v20 = vpop.eup %3603  ;;  %v2301_v61 = vadd.f32 %v2029_v30, %v4609_v23  ;;  %vm4790_vm5 = vcmp.lt.f32.partialorder %v2072_v21, 0.0004427343  ;;  %3613 = vpow2.f32 %v1578_v43 }
 0x152   :  { %7042 = vst [vmem:[#allocation38_spill] sm:$0xff] %v4782_v6  ;;  %v1537_v62 = vsub.f32 0.0, %v1473_v63  ;;  %860 = vrot.lane.b32.xlu1 %v6814_v52, %s3823_s21  ;;  %v2274_v48 = vadd.f32 %v1786_v4, %v4617_v60  ;;  %v2071_v2 = vmul.f32 %v4693_v40, %v2070_v7  ;;  %v1791_v25 = vadd.f32 1.0, %v1790_v56  ;;  %v7050_v40 = vld [vmem:[#allocation39_spill] sm:$0xff]  ;;  %v7057_v60 = vld [vmem:[#allocation41_spill] sm:$0xff] }
 0x153   :  { %v1793_v36 = vand.u32 2147483647, %v4732_v54  ;;  %v3606_v55 = vpop.eup %3605  ;;  %v2053_v23 = vmul.f32 %v4708_v16, %v2052_v39  ;;  %vm4801_vm6 = vcmp.lt.f32.partialorder %v2054_v29, 0.0004427343  ;;  %v1510_v43 = vsub.f32 0.0, %v1446_v47 }
 0x154   :  { %v1444_v63 = vand.u32 2147483647, %v4782_v6  ;;  %v3608_v30 = vpop.eup %3607  ;;  %v1762_v53 = vmul.f32 0.6931472, %v3604_v20  ;;  %v1765_v52 = vmul.f32 %v4700_v45, %v1764_v46  ;;  %vm4807_vm7 = vcmp.lt.f32.partialorder %v1766_v41, 0.0004427343 }
 0x155   :  { %v4813_v4 = vadd.f32 %v7050_v40, %v4217_v12  ;;  %v4815_v39 = vpop.eup %3609  ;;  %v4818_v16 = vsel %vm2329_vm4, %v2301_v61, 0.0  ;;  %v4820_v7 = vmax.f32 %v1313_v33, 0.0  ;;  %v1642_v56 = vmul.f32 1.442695, %v1537_v62 }
 0x156   :  { %7052 = vst [vmem:[#allocation67_spill] sm:$0xff] %v4818_v16  ;;  %v1588_v29 = vmul.f32 1.442695, %v1510_v43  ;;  %v4823_v47 = vsel %vm2329_vm4, %v2274_v48, 0.0  ;;  %v2068_v45 = vmul.f32 0.6931472, %v3606_v55  ;;  %v1792_v46 = vmul.f32 %v4732_v54, %v1791_v25 }
 0x157   :  { %7051 = vst [vmem:[#allocation39_spill] sm:$0xff] %v4813_v4  ;;  %vm4826_vm8 = vcmp.lt.f32.partialorder %v1793_v36, 0.0004427343  ;;  %v2050_v12 = vmul.f32 0.6931472, %v3608_v30  ;;  %v1345_v20 = vsub.f32 0.0, %v4756_v0  ;;  %v1768_v33 = vsel %vm4807_vm7, %v1765_v52, %v1762_v53 }
 0x158   :  { %3615 = vpow2.f32 %v1588_v29  ;;  %v1508_v61 = vsub.f32 0.0, %v1444_v63  ;;  %v3612_v40 = vpop.eup %3611  ;;  %v2075_v62 = vadd.f32 1.0, %v4815_v39  ;;  %v1447_v48 = vand.u32 2147483647, %v4813_v4  ;;  %v4839_v25 = vld [vmem:[%s6699_s2] ss:$0 sm:$0xff] }
 0x159   :  { %v6815_v55 = vmax.f32 %v4407_v24, 0.0  ;;  %3617 = vpow2.f32 %v1642_v56  ;;  %v7055_v36 = vld [vmem:[#allocation40_spill] sm:$0xff]  ;;  %v6817_v63 = vmax.f32 %v4477_v31, 0.0  ;;  %v2074_v53 = vsel %vm4790_vm5, %v2071_v2, %v2068_v45  ;;  %v4856_v29 = vpop.f32.mrb[31].mxu0 }
 0x15a   :  { %v1584_v54 = vmul.f32 1.442695, %v1508_v61  ;;  %v4843_v43 = vadd.f32 %v4839_v25, %v7055_v36  ;;  %v1511_v52 = vsub.f32 0.0, %v1447_v48  ;;  %v4854_v56 = vadd.f32 %v4839_v25, %v7057_v60  ;;  %7059 = vst [vmem:[#allocation68_spill] sm:$0xff] %v4856_v29  ;;  %v4858_v61 = vpop.f32.mrb[15].mxu1 }
 0x15b   :  { %854 = vrot.lane.b32.xlu0 %v6815_v55, %s3823_s21  ;;  %7060 = vst [vmem:[#allocation69_spill] sm:$0xff] %v4858_v61  ;;  %v4860_v36 = vpop.eup %3613  ;;  %v2056_v10 = vsel %vm4801_vm6, %v2053_v23, %v2050_v12  ;;  %v1789_v2 = vmul.f32 0.6931472, %v3612_v40  ;;  %924 = vrot.lane.b32.xlu1 %v6817_v63, %s3823_s21  ;;  %v2272_v48 = vadd.f32 %v1768_v33, %v4717_v28  ;;  %v2078_v60 = vmul.f32 -0.5, %v4815_v39 }
 0x15c   :  { %7056 = vst [vmem:[#allocation40_spill] sm:$0xff] %v4843_v43  ;;  %7058 = vst [vmem:[#allocation41_spill] sm:$0xff] %v4854_v56  ;;  %3619 = vpow2.f32 %v1584_v54  ;;  %v1445_v45 = vand.u32 2147483647, %v4843_v43  ;;  %v1769_v55 = vadd.f32 1.0, %v4860_v36  ;;  %v2306_v49 = vadd.f32 %v2074_v53, %v4656_v51 }
 0x15d   :  { %v1590_v30 = vmul.f32 1.442695, %v1511_v52  ;;  %3621 = vlog2.f32 %v2075_v62  ;;  %v1450_v23 = vand.u32 2147483647, %v4854_v56  ;;  %v2304_v12 = vadd.f32 %v2056_v10, %v4680_v19 }
 0x15e   :  { %v1509_v21 = vsub.f32 0.0, %v1445_v45  ;;  %3623 = vlog2.f32 %v1769_v55  ;;  %v1318_v40 = vsub.f32 0.0, %v4769_v14  ;;  %v1316_v54 = vsub.f32 0.0, %v4782_v6  ;;  %v7062_v55 = vld [vmem:[#allocation42_spill] sm:$0xff] }
 0x15f   :  { %v7061_v28 = vmax.f32 %v4330_v9, 0.0  ;;  %v1795_v33 = vsel %vm4826_vm8, %v1792_v46, %v1789_v2  ;;  %3625 = vpow2.f32 %v1590_v30  ;;  %v1514_v62 = vsub.f32 0.0, %v1450_v23 }
 0x160   :  { %v1586_v51 = vmul.f32 1.442695, %v1509_v21  ;;  %v2345_v53 = vsel %vm2329_vm4, %v2272_v48, 0.0  ;;  %v2079_v52 = vadd.f32 1.0, %v2078_v60  ;;  %v2081_v19 = vand.u32 2147483647, %v4815_v39 }
 0x161   :  { %918 = vrot.lane.b32.xlu0 %v7061_v28, %s3823_s21  ;;  %v4885_v10 = vadd.f32 %v4839_v25, %v7062_v55  ;;  %v1772_v63 = vmul.f32 -0.5, %v4860_v36  ;;  %v1319_v28 = vsub.f32 0.0, %v4813_v4  ;;  %v1596_v46 = vmul.f32 1.442695, %v1514_v62 }
 0x162   :  { %v4887_v45 = vpop.eup %3615  ;;  %3627 = vpow2.f32 %v1586_v51  ;;  %v4892_v41 = vsel %vm2329_vm4, %v2306_v49, 0.0  ;;  %v2275_v30 = vadd.f32 %v1795_v33, %v4719_v15  ;;  %v4895_v2 = vmax.f32 %v1345_v20, 0.0 }
 0x163   :  { %7063 = vst [vmem:[#allocation42_spill] sm:$0xff] %v4885_v10  ;;  %7064 = vst [vmem:[#allocation70_spill] sm:$0xff] %v4892_v41  ;;  %v1814_v48 = vadd.f32 1.0, %v4887_v45  ;;  %v4898_v60 = vpop.eup %3617  ;;  %v4901_v21 = vsel %vm2329_vm4, %v2304_v12, 0.0  ;;  %v4903_v23 = vmax.f32 %v1318_v40, 0.0  ;;  %v4905_v55 = vmax.f32 %v1316_v54, 0.0 }
 0x164   :  { %7065 = vst [vmem:[#allocation71_spill] sm:$0xff] %v4901_v21  ;;  %3629 = vpow2.f32 %v1596_v46  ;;  %v2346_v51 = vadd.f32 %v2345_v53, %v4748_v5  ;;  %v4909_v49 = vmul.f32 %v4815_v39, %v2079_v52  ;;  %v1775_v15 = vand.u32 2147483647, %v4860_v36  ;;  %v7068_v46 = vld [vmem:[#allocation43_spill] sm:$0xff] }
 0x165   :  { %v1448_v20 = vand.u32 2147483647, %v4885_v10  ;;  %vm4915_vm9 = vcmp.lt.f32.partialorder %v2081_v19, 0.0004427343  ;;  %v1773_v12 = vadd.f32 1.0, %v1772_v63  ;;  %v4919_v40 = vmax.f32 %v1319_v28, 0.0 }
 0x166   :  { %v4913_v33 = vpop.eup %3619  ;;  %v6824_v54 = vmax.f32 %v4508_v22, 0.0  ;;  %v4924_v5 = vadd.f32 %v4839_v25, %v7068_v46  ;;  %v4927_v39 = vsel %vm2329_vm4, %v2275_v30, 0.0  ;;  %v2057_v53 = vadd.f32 1.0, %v4898_v60 }
 0x167   :  { %3631 = vlog2.f32 %v1814_v48  ;;  %v1796_v52 = vadd.f32 1.0, %v4913_v33  ;;  %v3622_v19 = vpop.eup %3621  ;;  %v1317_v31 = vsub.f32 0.0, %v4843_v43  ;;  %v1322_v63 = vsub.f32 0.0, %v4854_v56 }
 0x168   :  { %7069 = vst [vmem:[#allocation43_spill] sm:$0xff] %v4924_v5  ;;  %v1512_v28 = vsub.f32 0.0, %v1448_v20  ;;  %856 = vrot.lane.b32.xlu1 %v6824_v54, %s3823_s21  ;;  %v1451_v46 = vand.u32 2147483647, %v4924_v5  ;;  %v3624_v9 = vpop.eup %3623  ;;  %vm4937_vm10 = vcmp.lt.f32.partialorder %v1775_v15, 0.0004427343  ;;  %v1774_v20 = vmul.f32 %v4860_v36, %v1773_v12 }
 0x169   :  { %v2060_v48 = vmul.f32 -0.5, %v4898_v60  ;;  %3633 = vlog2.f32 %v1796_v52  ;;  %v6826_v24 = vmax.f32 %v4512_v27, 0.0  ;;  %v4943_v0 = vpop.eup %3625  ;;  %v1771_v41 = vmul.f32 0.6931472, %v3624_v9 }
 0x16a   :  { %v1817_v22 = vmul.f32 -0.5, %v4887_v45  ;;  %v1592_v54 = vmul.f32 1.442695, %v1512_v28  ;;  %3635 = vlog2.f32 %v2057_v53  ;;  %v1799_v21 = vmul.f32 -0.5, %v4913_v33 }
 0x16b   :  { %v1823_v15 = vadd.f32 1.0, %v4943_v0  ;;  %v1515_v1 = vsub.f32 0.0, %v1451_v46  ;;  %920 = vrot.lane.b32.xlu0 %v6826_v24, %s3823_s21  ;;  %v1777_v9 = vsel %vm4937_vm10, %v1774_v20, %v1771_v41  ;;  %v2063_v36 = vand.u32 2147483647, %v4898_v60  ;;  %v4961_v46 = vpop.f32.mrb[16].mxu1 }
 0x16c   :  { %v4952_v52 = vpop.eup %3627  ;;  %v1320_v12 = vsub.f32 0.0, %v4885_v10  ;;  %3637 = vpow2.f32 %v1592_v54  ;;  %v4958_v53 = vmul.f32 0.6931472, %v3622_v19  ;;  %v2273_v28 = vadd.f32 %v1777_v9, %v4820_v7  ;;  %7072 = vst [vmem:[#allocation72_spill] sm:$0xff] %v4961_v46  ;;  %v4971_v7 = vpop.f32.mrb[17].mxu1 }
 0x16d   :  { %v2061_v16 = vadd.f32 1.0, %v2060_v48  ;;  %3639 = vlog2.f32 %v1823_v15  ;;  %v1818_v24 = vadd.f32 1.0, %v1817_v22  ;;  %v1820_v61 = vand.u32 2147483647, %v4887_v45  ;;  %7073 = vst [vmem:[#allocation73_spill] sm:$0xff] %v4971_v7  ;;  %v4976_v9 = vpop.f32.mrb[18].mxu1 }
 0x16e   :  { %v4963_v27 = vpop.eup %3629  ;;  %v1802_v41 = vand.u32 2147483647, %v4913_v33  ;;  %v1805_v30 = vadd.f32 1.0, %v4952_v52  ;;  %v2347_v20 = vsel %vm2329_vm4, %v2273_v28, 0.0  ;;  %v1800_v54 = vadd.f32 1.0, %v1799_v21  ;;  %7074 = vst [vmem:[#allocation74_spill] sm:$0xff] %v4976_v9 }
 0x16f   :  { %v4969_v19 = vmax.f32 %v1317_v31, 0.0  ;;  %v1598_v10 = vmul.f32 1.442695, %v1515_v1  ;;  %v2348_v48 = vadd.f32 %v2347_v20, %v2346_v51  ;;  %v4973_v15 = vmax.f32 %v1322_v63, 0.0  ;;  %v7075_v1 = vld [vmem:[#allocation44_spill] sm:$0xff]  ;;  %v5044_v9 = vpop.f32.mrb[19].mxu1 }
 0x170   :  { %3641 = vlog2.f32 %v1805_v30  ;;  %v1850_v22 = vadd.f32 1.0, %v4963_v27  ;;  %v1826_v31 = vmul.f32 -0.5, %v4943_v0  ;;  %v4983_v21 = vmax.f32 %v1320_v12, 0.0 }
 0x171   :  { %v3632_v46 = vpop.eup %3631  ;;  %v4987_v51 = vadd.f32 %v4839_v25, %v7075_v1  ;;  %v2350_v63 = vadd.f32 %v4823_v47, %v2348_v48  ;;  %v4991_v30 = vmul.f32 %v4898_v60, %v2061_v16  ;;  %v1819_v20 = vmul.f32 %v4887_v45, %v1818_v24 }
 0x172   :  { %vm4994_vm11 = vcmp.lt.f32.partialorder %v1820_v61, 0.0004427343  ;;  %vm4998_vm12 = vcmp.lt.f32.partialorder %v2063_v36, 0.0004427343  ;;  %v1801_v12 = vmul.f32 %v4913_v33, %v1800_v54  ;;  %vm5003_vm13 = vcmp.lt.f32.partialorder %v1802_v41, 0.0004427343 }
 0x173   :  { %7076 = vst [vmem:[#allocation44_spill] sm:$0xff] %v4987_v51  ;;  %v3634_v28 = vpop.eup %3633  ;;  %v1808_v16 = vmul.f32 -0.5, %v4952_v52  ;;  %3643 = vpow2.f32 %v1598_v10  ;;  %v1816_v47 = vmul.f32 0.6931472, %v3632_v46  ;;  %v2352_v61 = vadd.f32 %v4927_v39, %v2350_v63 }
 0x174   :  { %v1798_v24 = vmul.f32 0.6931472, %v3634_v28  ;;  %3645 = vlog2.f32 %v1850_v22  ;;  %v3636_v45 = vpop.eup %3635  ;;  %v1827_v60 = vadd.f32 1.0, %v1826_v31  ;;  %v1829_v36 = vand.u32 2147483647, %v4943_v0 }
 0x175   :  { %v1449_v48 = vand.u32 2147483647, %v4987_v51  ;;  %v6829_v33 = vmax.f32 %v4625_v8, 0.0  ;;  %v1811_v10 = vand.u32 2147483647, %v4952_v52  ;;  %v1853_v46 = vmul.f32 -0.5, %v4963_v27 }
 0x176   :  { %v5012_v41 = vpop.eup %3637  ;;  %v1804_v54 = vsel %vm5003_vm13, %v1801_v12, %v1798_v24  ;;  %v6830_v39 = vmax.f32 %v4529_v11, 0.0  ;;  %v1809_v31 = vadd.f32 1.0, %v1808_v16  ;;  %v5026_v1 = vadd.f32 %v4839_v25, %v4425_v17 }
 0x177   :  { %v3640_v22 = vpop.eup %3639  ;;  %v2276_v28 = vadd.f32 %v1804_v54, %v4905_v55  ;;  %v1832_v63 = vadd.f32 1.0, %v5012_v41  ;;  %868 = vrot.lane.b32.xlu1 %v6829_v33, %s3823_s21  ;;  %v1822_v12 = vsel %vm4994_vm11, %v1819_v20, %v1816_v47  ;;  %v1513_v29 = vsub.f32 0.0, %v1449_v48 }
 0x178   :  { %7083 = vst [vmem:[#allocation75_spill] sm:$0xff] %v5026_v1  ;;  %v1825_v24 = vmul.f32 0.6931472, %v3640_v22  ;;  %866 = vrot.lane.b32.xlu0 %v6830_v39, %s3823_s21  ;;  %v5035_v55 = vadd.f32 %v4839_v25, %v4431_v18  ;;  %v5037_v16 = vmul.f32 0.6931472, %v3636_v45  ;;  %v1828_v54 = vmul.f32 %v4943_v0, %v1827_v60 }
 0x179   :  { %vm5040_vm14 = vcmp.lt.f32.partialorder %v1829_v36, 0.0004427343  ;;  %3647 = vlog2.f32 %v1832_v63  ;;  %v2353_v47 = vsel %vm2329_vm4, %v2276_v28, 0.0  ;;  %vm5047_vm15 = vcmp.lt.f32.partialorder %v1811_v10, 0.0004427343 }
 0x17a   :  { %v3642_v20 = vpop.eup %3641  ;;  %v1854_v18 = vadd.f32 1.0, %v1853_v46  ;;  %v1594_v22 = vmul.f32 1.442695, %v1513_v29  ;;  %v2278_v45 = vadd.f32 %v1822_v12, %v4903_v23  ;;  %v1810_v0 = vmul.f32 %v4952_v52, %v1809_v31 }
 0x17b   :  { %v1807_v33 = vmul.f32 0.6931472, %v3642_v20  ;;  %v1454_v60 = vand.u32 2147483647, %v5026_v1  ;;  %v1831_v36 = vsel %vm5040_vm14, %v1828_v54, %v1825_v24  ;;  %v1835_v63 = vmul.f32 -0.5, %v5012_v41 }
 0x17c   :  { %3649 = vpow2.f32 %v1594_v22  ;;  %v1452_v10 = vand.u32 2147483647, %v5035_v55  ;;  %v2354_v39 = vadd.f32 %v2353_v47, %v2352_v61  ;;  %v6833_v46 = vmax.f32 %v4737_v37, 0.0 }
 0x17d   :  { %v5058_v28 = vpop.eup %3643  ;;  %v1813_v29 = vsel %vm5047_vm15, %v1810_v0, %v1807_v33  ;;  %v1518_v23 = vsub.f32 0.0, %v1454_v60  ;;  %v7088_v31 = vsel %vm4915_vm9, %v4909_v49, %v4958_v53  ;;  %v2065_v61 = vsel %vm4998_vm12, %v4991_v30, %v5037_v16 }
 0x17e   :  { %v3646_v52 = vpop.eup %3645  ;;  %v5069_v12 = vadd.f32 %v7088_v31, %v4744_v57  ;;  %v2277_v24 = vadd.f32 %v1813_v29, %v4969_v19  ;;  %v1859_v33 = vadd.f32 1.0, %v5058_v28  ;;  %v2279_v54 = vadd.f32 %v1831_v36, %v4919_v40  ;;  %864 = vrot.lane.b32.xlu1 %v6833_v46, %s3823_s21  ;;  %v5111_v29 = vpop.f32.mrb[20].mxu1 }
 0x17f   :  { %v1855_v17 = vmul.f32 %v4963_v27, %v1854_v18  ;;  %v1856_v62 = vand.u32 2147483647, %v4963_v27  ;;  %v1604_v20 = vmul.f32 1.442695, %v1518_v23  ;;  %v2357_v57 = vsel %vm2329_vm4, %v2278_v45, 0.0 }
 0x180   :  { %v2355_v49 = vsel %vm2329_vm4, %v2277_v24, 0.0  ;;  %v1838_v53 = vand.u32 2147483647, %v5012_v41  ;;  %v1516_v19 = vsub.f32 0.0, %v1452_v10  ;;  %v1852_v30 = vmul.f32 0.6931472, %v3646_v52 }
 0x181   :  { %v2356_v7 = vadd.f32 %v2355_v49, %v2354_v39  ;;  %v1836_v16 = vadd.f32 1.0, %v1835_v63  ;;  %3651 = vlog2.f32 %v1859_v33  ;;  %v5088_v27 = vadd.f32 %v4839_v25, %v4436_v32  ;;  %v5122_v33 = vpop.f32.mrb[21].mxu1  ;;  %v3304_v49 = vpop.permute.xlu0 %3303 }
 0x182   :  { %3653 = vpow2.f32 %v1604_v20  ;;  %v1600_v40 = vmul.f32 1.442695, %v1516_v19  ;;  %v6835_v47 = vmax.f32 %v4587_v42, 0.0  ;;  %v2359_v18 = vsel %vm2329_vm4, %v2279_v54, 0.0 }
 0x183   :  { %7089 = vst [vmem:[#allocation76_spill] sm:$0xff] %v5088_v27  ;;  %v3648_v48 = vpop.eup %3647  ;;  %v2358_v22 = vadd.f32 %v2357_v57, %v2356_v7  ;;  %v5094_v45 = vadd.f32 %v4839_v25, %v4468_v34  ;;  %v6832_v39 = vmax.f32 %v4813_v4, 0.0  ;;  %v1455_v60 = vand.u32 2147483647, %v5088_v27 }
 0x184   :  { %v1834_v0 = vmul.f32 0.6931472, %v3648_v48  ;;  %3655 = vpow2.f32 %v1600_v40  ;;  %862 = vrot.lane.b32.xlu0 %v6835_v47, %s3823_s21  ;;  %v6831_v32 = vmax.f32 %v4577_v26, 0.0  ;;  %vm5102_vm0 = vcmp.lt.f32.partialorder %v1856_v62, 0.0004427343  ;;  %v7102_v47 = vld [vmem:[#allocation7_spill] sm:$0xff] }
 0x185   :  { %7090 = vst [vmem:[#allocation77_spill] sm:$0xff] %v5094_v45  ;;  %v1837_v63 = vmul.f32 %v5012_v41, %v1836_v16  ;;  %v2360_v34 = vadd.f32 %v2359_v18, %v2358_v22  ;;  %v1453_v10 = vand.u32 2147483647, %v5094_v45  ;;  %876 = vrot.lane.b32.xlu1 %v6832_v39, %s3823_s21  ;;  %v1858_v52 = vsel %vm5102_vm0, %v1855_v17, %v1852_v30  ;;  %v5129_v17 = vpop.f32.mrb[22].mxu1 }
 0x186   :  { %v5113_v23 = vpop.eup %3649  ;;  %vm5117_vm1 = vcmp.lt.f32.partialorder %v1838_v53, 0.0004427343  ;;  %v1323_v41 = vsub.f32 0.0, %v4924_v5  ;;  %v1519_v24 = vsub.f32 0.0, %v1455_v60  ;;  %v2305_v54 = vadd.f32 %v2065_v61, %v4895_v2 }
 0x187   :  { %v1840_v62 = vsel %vm5117_vm1, %v1837_v63, %v1834_v0  ;;  %v1321_v20 = vsub.f32 0.0, %v4987_v51  ;;  %v1841_v57 = vadd.f32 1.0, %v5113_v23  ;;  %v1862_v53 = vmul.f32 -0.5, %v5058_v28 }
 0x188   :  { %v1326_v19 = vsub.f32 0.0, %v5026_v1  ;;  %v1606_v7 = vmul.f32 1.442695, %v1519_v24  ;;  %v1517_v30 = vsub.f32 0.0, %v1453_v10  ;;  %926 = vrot.lane.b32.xlu0 %v6831_v32, %s3823_s21  ;;  %v2282_v2 = vadd.f32 %v1858_v52, %v4973_v15 }
 0x189   :  { %v1865_v61 = vand.u32 2147483647, %v5058_v28  ;;  %3657 = vlog2.f32 %v1841_v57  ;;  %v1324_v16 = vsub.f32 0.0, %v5035_v55  ;;  %v2280_v40 = vadd.f32 %v1840_v62, %v4983_v21 }
 0x18a   :  { %3659 = vpow2.f32 %v1606_v7  ;;  %v1602_v48 = vmul.f32 1.442695, %v1517_v30  ;;  %v3306_v18 = vunpack.i.h.bf16 %v3304_v49  ;;  %v5142_v0 = vsel %vm2329_vm4, %v5069_v12, 0.0 }
 0x18b   :  { %v3652_v22 = vpop.eup %3651  ;;  %v5145_v60 = vsel %vm2329_vm4, %v2305_v54, 0.0  ;;  %v1387_v36 = vmax.f32 %v1323_v41, 0.0  ;;  %v1844_v15 = vmul.f32 -0.5, %v5113_v23  ;;  %v1863_v10 = vadd.f32 1.0, %v1862_v53 }
 0x18c   :  { %v5148_v63 = vpop.eup %3653  ;;  %v1385_v52 = vmax.f32 %v1321_v20, 0.0  ;;  %3661 = vpow2.f32 %v1602_v48  ;;  %v5152_v21 = vadd.f32 %v4839_v25, %v4496_v13  ;;  %v1847_v31 = vand.u32 2147483647, %v5113_v23  ;;  %v7097_v13 = vld [vmem:[#allocation5_spill] sm:$0xff] }
 0x18d   :  { %v5155_v24 = vmax.f32 %v1326_v19, 0.0  ;;  %v5157_v12 = vmax.f32 %v1324_v16, 0.0  ;;  %v3305_v54 = vunpack.i.l.bf16 %v3304_v49  ;;  %v5162_v41 = vsel %vm2329_vm4, %v2282_v2, 0.0 }
 0x18e   :  { %v5159_v62 = vpop.eup %3655  ;;  %v2361_v57 = vsel %vm2329_vm4, %v2280_v40, 0.0  ;;  %vm5165_vm2 = vcmp.lt.f32.partialorder %v1865_v61, 0.0004427343  ;;  %v7098_v53 = vunpack.c.h.bf16 %v7097_v13  ;;  %v1861_v30 = vmul.f32 0.6931472, %v3652_v22 }
 0x18f   :  { %v1845_v19 = vadd.f32 1.0, %v1844_v15  ;;  %v1886_v16 = vadd.f32 1.0, %v5148_v63  ;;  %v1868_v49 = vadd.f32 1.0, %v5159_v62  ;;  %v1864_v48 = vmul.f32 %v5058_v28, %v1863_v10  ;;  %v3309_v10 = vpop.permute.xlu1 %3308 }
 0x190   :  { %v2805_v7 = vsub.f32 %v7098_v53, %v3306_v18  ;;  %vm2933_vm3 = vcmask 293888   ;;  %v1458_v40 = vand.u32 2147483647, %v5152_v21  ;;  %v2362_v61 = vadd.f32 %v2361_v57, %v2360_v34 }
 0x191   :  { %vm5176_vm5 = vcmp.lt.f32.partialorder %v1847_v31, 0.0004427343  ;;  %3663 = vlog2.f32 %v1868_v49  ;;  %v7101_v18 = vunpack.c.l.bf16 %v7097_v13  ;;  %v5184_v39 = vadd.f32 %v4839_v25, %v4502_v50  ;;  %v5190_v49 = vpop.f32.mrb[23].mxu1 }
 0x192   :  { %v2870_v15 = vand.u32 2147483647, %v2805_v7  ;;  %v1522_v53 = vsub.f32 0.0, %v1458_v40  ;;  %v6834_v28 = vmax.f32 %v4843_v43, 0.0  ;;  %v1867_v34 = vsel %vm5165_vm2, %v1864_v48, %v1861_v30 }
 0x193   :  { %v2804_v22 = vsub.f32 %v7101_v18, %v3305_v54  ;;  %v3658_v46 = vpop.eup %3657  ;;  %v1846_v31 = vmul.f32 %v5113_v23, %v1845_v19  ;;  %3665 = vlog2.f32 %v1886_v16  ;;  %v3311_v57 = vunpack.i.h.bf16 %v3309_v10 }
 0x194   :  { %v5192_v54 = vpop.eup %3659  ;;  %v1843_v13 = vmul.f32 0.6931472, %v3658_v46  ;;  %v1871_v7 = vmul.f32 -0.5, %v5159_v62  ;;  %v1612_v50 = vmul.f32 1.442695, %v1522_v53  ;;  %872 = vrot.lane.b32.xlu1 %v6834_v28, %s3823_s21  ;;  %v6838_v40 = vmax.f32 %v4769_v14, 0.0 }
 0x195   :  { %v1889_v20 = vmul.f32 -0.5, %v5148_v63  ;;  %v1895_v23 = vadd.f32 1.0, %v5192_v54  ;;  %v2869_v30 = vand.u32 2147483647, %v2804_v22  ;;  %v1456_v19 = vand.u32 2147483647, %v5184_v39 }
 0x196   :  { %v5202_v16 = vpop.eup %3661  ;;  %v2283_v48 = vadd.f32 %v1867_v34, %v1387_v36  ;;  %v1849_v46 = vsel %vm5176_vm5, %v1846_v31, %v1843_v13  ;;  %v1892_v18 = vand.u32 2147483647, %v5148_v63  ;;  %3667 = vpow2.f32 %v1612_v50  ;;  %874 = vrot.lane.b32.xlu0 %v6838_v40, %s3823_s21 }
 0x197   :  { %v2281_v53 = vadd.f32 %v1849_v46, %v1385_v52  ;;  %v1874_v28 = vand.u32 2147483647, %v5159_v62  ;;  %v7103_v22 = vunpack.c.h.bf16 %v7102_v47  ;;  %v3310_v26 = vunpack.i.l.bf16 %v3309_v10 }
 0x198   :  { %v1872_v4 = vadd.f32 1.0, %v1871_v7  ;;  %v1877_v36 = vadd.f32 1.0, %v5202_v16  ;;  %v2935_v32 = vsel %vm2933_vm3, %v2870_v15, 0.0  ;;  %v1520_v34 = vsub.f32 0.0, %v1456_v19 }
 0x199   :  { %v2807_v2 = vsub.f32 %v7103_v22, %v3311_v57  ;;  %v2363_v31 = vsel %vm2329_vm4, %v2281_v53, 0.0  ;;  %3669 = vlog2.f32 %v1895_v23  ;;  %v2934_v13 = vsel %vm2933_vm3, %v2869_v30, 0.0 }
 0x19a   :  { %v5219_v52 = vadd.f32 %v4839_v25, %v4557_v38  ;;  %v2367_v50 = vsel %vm2329_vm4, %v2283_v48, 0.0  ;;  %v2364_v46 = vadd.f32 %v2363_v31, %v2362_v61  ;;  %v1890_v57 = vadd.f32 1.0, %v1889_v20 }
 0x19b   :  { %3671 = vlog2.f32 %v1877_v36  ;;  %v3664_v10 = vpop.eup %3663  ;;  %vm5222_vm6 = vcmp.lt.f32.partialorder %v1874_v28, 0.0004427343  ;;  %v1608_v15 = vmul.f32 1.442695, %v1520_v34  ;;  %v2872_v19 = vand.u32 2147483647, %v2807_v2 }
 0x19c   :  { %7104 = vst [vmem:[#allocation5_spill] sm:$0xff] %v5219_v52  ;;  %v7107_v23 = vunpack.c.l.bf16 %v7102_v47  ;;  %v2366_v30 = vadd.f32 %v5162_v41, %v2364_v46  ;;  %v1870_v22 = vmul.f32 0.6931472, %v3664_v10  ;;  %v1873_v38 = vmul.f32 %v5159_v62, %v1872_v4  ;;  %v5232_v36 = vpop.f32.mrb[24].mxu1 }
 0x19d   :  { %v2936_v40 = vadd.f32 %v2935_v32, %v2934_v13  ;;  %v3666_v48 = vpop.eup %3665  ;;  %v1880_v61 = vmul.f32 -0.5, %v5202_v16  ;;  %3673 = vpow2.f32 %v1608_v15  ;;  %v1459_v28 = vand.u32 2147483647, %v5219_v52  ;;  %v5241_v4 = vpop.f32.mrb[25].mxu1 }
 0x19e   :  { %v2806_v53 = vsub.f32 %v7107_v23, %v3310_v26  ;;  %v1876_v2 = vsel %vm5222_vm6, %v1873_v38, %v1870_v22  ;;  %v2368_v47 = vadd.f32 %v2367_v50, %v2366_v30  ;;  %v1898_v26 = vmul.f32 -0.5, %v5192_v54 }
 0x19f   :  { %v5239_v41 = vadd.f32 %v4839_v25, %v4582_v44  ;;  %v2284_v62 = vadd.f32 %v1876_v2, %v5157_v12  ;;  %v2939_v32 = vsel %vm2933_vm3, %v2872_v19, 0.0  ;;  %v1523_v31 = vsub.f32 0.0, %v1459_v28 }
 0x1a0   :  { %v2871_v20 = vand.u32 2147483647, %v2806_v53  ;;  %v5246_v13 = vpop.eup %3667  ;;  %v1888_v46 = vmul.f32 0.6931472, %v3666_v48  ;;  %v6839_v7 = vmax.f32 %v4924_v5, 0.0  ;;  %v1327_v15 = vsub.f32 0.0, %v5088_v27 }
 0x1a1   :  { %v1457_v50 = vand.u32 2147483647, %v5239_v41  ;;  %v2369_v44 = vsel %vm2329_vm4, %v2284_v62, 0.0  ;;  %v1881_v23 = vadd.f32 1.0, %v1880_v61  ;;  %v1883_v12 = vand.u32 2147483647, %v5202_v16 }
 0x1a2   :  { %v2937_v34 = vsel %vm2933_vm3, %v2871_v20, 0.0  ;;  %v1891_v19 = vmul.f32 %v5148_v63, %v1890_v57  ;;  %v2370_v53 = vadd.f32 %v2369_v44, %v2368_v47  ;;  %v1614_v22 = vmul.f32 1.442695, %v1523_v31  ;;  %884 = vrot.lane.b32.xlu1 %v6839_v7, %s3823_s21 }
 0x1a3   :  { %v2938_v10 = vadd.f32 %v2937_v34, %v2936_v40  ;;  %v3670_v40 = vpop.eup %3669  ;;  %vm5259_vm7 = vcmp.lt.f32.partialorder %v1892_v18, 0.0004427343  ;;  %v1899_v48 = vadd.f32 1.0, %v1898_v26  ;;  %v7110_v61 = vsub.f32 0.0, %v5094_v45  ;;  %v3314_v26 = vpop.permute.xlu0 %3313 }
 0x1a4   :  { %v1922_v28 = vadd.f32 1.0, %v5246_v13  ;;  %v1894_v57 = vsel %vm5259_vm7, %v1891_v19, %v1888_v46  ;;  %v1901_v2 = vand.u32 2147483647, %v5192_v54  ;;  %3675 = vpow2.f32 %v1614_v22  ;;  %v5271_v34 = vpop.f32.mrb[26].mxu1 }
 0x1a5   :  { %v5254_v30 = vadd.f32 %v2939_v32, %v2938_v10  ;;  %v1389_v20 = vmax.f32 %v7110_v61, 0.0  ;;  %v3672_v63 = vpop.eup %3671  ;;  %v1521_v47 = vsub.f32 0.0, %v1457_v50  ;;  %v1882_v18 = vmul.f32 %v5202_v16, %v1881_v23 }
 0x1a6   :  { %v1879_v62 = vmul.f32 0.6931472, %v3672_v63  ;;  %vm1884_vm8 = vcmp.lt.f32.partialorder %v1883_v12, 0.0004427343  ;;  %v1330_v32 = vsub.f32 0.0, %v5152_v21  ;;  %v1328_v10 = vsub.f32 0.0, %v5184_v39 }
 0x1a7   :  { %v1897_v31 = vmul.f32 0.6931472, %v3670_v40  ;;  %v1610_v44 = vmul.f32 1.442695, %v1521_v47  ;;  %v6840_v38 = vmax.f32 %v4782_v6, 0.0  ;;  %v5275_v46 = vpop.eup %3673  ;;  %v2286_v19 = vadd.f32 %v1894_v57, %v5155_v24  ;;  %v7121_v6 = vld [vmem:[#allocation63_spill] sm:$0xff] }
 0x1a8   :  { %v1900_v50 = vmul.f32 %v5192_v54, %v1899_v48  ;;  %v1885_v22 = vsel %vm1884_vm8, %v1882_v18, %v1879_v62  ;;  %3677 = vlog2.f32 %v1922_v28  ;;  %v1904_v23 = vadd.f32 1.0, %v5275_v46  ;;  %v7115_v18 = vld [vmem:[#allocation8_spill] sm:$0xff] }
 0x1a9   :  { %v2285_v16 = vadd.f32 %v1885_v22, %v1389_v20  ;;  %v3315_v12 = vunpack.i.l.bf16 %v3314_v26  ;;  %870 = vrot.lane.b32.xlu0 %v6840_v38, %s3823_s21  ;;  %v5285_v40 = vadd.f32 %v4839_v25, %v4696_v58  ;;  %vm5287_vm9 = vcmp.lt.f32.partialorder %v1901_v2, 0.0004427343 }
 0x1aa   :  { %v1925_v24 = vmul.f32 -0.5, %v5246_v13  ;;  %3679 = vpow2.f32 %v1610_v44  ;;  %v5294_v54 = vadd.f32 %v4839_v25, %v4698_v59  ;;  %v1391_v48 = vmax.f32 %v1327_v15, 0.0 }
 0x1ab   :  { %7111 = vst [vmem:[#allocation7_spill] sm:$0xff] %v5285_v40  ;;  %v1903_v20 = vsel %vm5287_vm9, %v1900_v50, %v1897_v31  ;;  %3681 = vlog2.f32 %v1904_v23  ;;  %v1331_v28 = vsub.f32 0.0, %v5219_v52  ;;  %v2371_v58 = vsel %vm2329_vm4, %v2285_v16, 0.0 }
 0x1ac   :  { %7114 = vst [vmem:[#allocation78_spill] sm:$0xff] %v5294_v54  ;;  %v5300_v63 = vmax.f32 %v1330_v32, 0.0  ;;  %v1928_v57 = vand.u32 2147483647, %v5246_v13  ;;  %v3316_v2 = vunpack.i.h.bf16 %v3314_v26  ;;  %v2373_v47 = vsel %vm2329_vm4, %v2286_v19, 0.0 }
 0x1ad   :  { %v1392_v62 = vmax.f32 %v1328_v10, 0.0  ;;  %v7116_v59 = vunpack.c.l.bf16 %v7115_v18  ;;  %v1462_v15 = vand.u32 2147483647, %v5285_v40  ;;  %v2287_v22 = vadd.f32 %v1903_v20, %v1391_v48 }
 0x1ae   :  { %v1926_v31 = vadd.f32 1.0, %v1925_v24  ;;  %v1907_v50 = vmul.f32 -0.5, %v5275_v46  ;;  %v1478_v23 = vand.u32 2147483647, %v5294_v54  ;;  %v5309_v16 = vpop.eup %3675  ;;  %v2372_v32 = vadd.f32 %v2371_v58, %v2370_v53 }
 0x1af   :  { %v2808_v44 = vsub.f32 %v7116_v59, %v3315_v12  ;;  %v5311_v61 = vmax.f32 %v1331_v28, 0.0  ;;  %v1526_v26 = vsub.f32 0.0, %v1462_v15  ;;  %v5315_v10 = vadd.f32 %v4839_v25, %v4704_v3 }
 0x1b0   :  { %vm5317_vm10 = vcmp.lt.f32.partialorder %v1928_v57, 0.0004427343  ;;  %v1931_v12 = vadd.f32 1.0, %v5309_v16  ;;  %v7119_v24 = vunpack.c.h.bf16 %v7115_v18  ;;  %v5326_v20 = vadd.f32 %v4839_v25, %v4706_v35 }
 0x1b1   :  { %v1329_v53 = vsub.f32 0.0, %v5239_v41  ;;  %v2873_v28 = vand.u32 2147483647, %v2808_v44  ;;  %v1620_v58 = vmul.f32 1.442695, %v1526_v26  ;;  %v1542_v59 = vsub.f32 0.0, %v1478_v23 }
 0x1b2   :  { %v2809_v48 = vsub.f32 %v7119_v24, %v3316_v2  ;;  %7120 = vst [vmem:[#allocation8_spill] sm:$0xff] %v5326_v20  ;;  %v3678_v3 = vpop.eup %3677  ;;  %v2375_v57 = vsel %vm2329_vm4, %v2287_v22, 0.0  ;;  %v1927_v15 = vmul.f32 %v5246_v13, %v1926_v31  ;;  %v1908_v7 = vadd.f32 1.0, %v1907_v50 }
 0x1b3   :  { %v1910_v38 = vand.u32 2147483647, %v5275_v46  ;;  %v2374_v5 = vadd.f32 %v2373_v47, %v2372_v32  ;;  %3683 = vlog2.f32 %v1931_v12  ;;  %v1652_v2 = vmul.f32 1.442695, %v1542_v59 }
 0x1b4   :  { %v1460_v18 = vand.u32 2147483647, %v5315_v10  ;;  %v5333_v35 = vpop.eup %3679  ;;  %v2874_v24 = vand.u32 2147483647, %v2809_v48  ;;  %v1334_v44 = vsub.f32 0.0, %v5285_v40  ;;  %3685 = vpow2.f32 %v1620_v58 }
 0x1b5   :  { %v1476_v23 = vand.u32 2147483647, %v5326_v20  ;;  %v3682_v26 = vpop.eup %3681  ;;  %v1924_v22 = vmul.f32 0.6931472, %v3678_v3  ;;  %v1913_v13 = vadd.f32 1.0, %v5333_v35  ;;  %v2941_v31 = vsel %vm2933_vm3, %v2873_v28, 0.0 }
 0x1b6   :  { %3687 = vpow2.f32 %v1652_v2  ;;  %v1906_v47 = vmul.f32 0.6931472, %v3682_v26  ;;  %v1909_v50 = vmul.f32 %v5275_v46, %v1908_v7  ;;  %v1524_v32 = vsub.f32 0.0, %v1460_v18 }
 0x1b7   :  { %v1540_v12 = vsub.f32 0.0, %v1476_v23  ;;  %vm1911_vm11 = vcmp.lt.f32.partialorder %v1910_v38, 0.0004427343  ;;  %v2376_v59 = vadd.f32 %v2375_v57, %v2374_v5  ;;  %3689 = vlog2.f32 %v1913_v13  ;;  %v5352_v5 = vpop.f32.mrb[27].mxu1 }
 0x1b8   :  { %v6845_v48 = vmax.f32 %v4987_v51, 0.0  ;;  %v1912_v58 = vsel %vm1911_vm11, %v1909_v50, %v1906_v47  ;;  %v1616_v14 = vmul.f32 1.442695, %v1524_v32  ;;  %v5343_v3 = vadd.f32 %v4839_v25, %v7121_v6 }
 0x1b9   :  { %v1648_v43 = vmul.f32 1.442695, %v1540_v12  ;;  %v1930_v28 = vsel %vm5317_vm10, %v1927_v15, %v1924_v22  ;;  %v2288_v2 = vadd.f32 %v1912_v58, %v1392_v62  ;;  %v1934_v7 = vmul.f32 -0.5, %v5309_v16  ;;  %v3319_v22 = vpop.permute.xlu1 %3318 }
 0x1ba   :  { %7122 = vst [vmem:[#allocation63_spill] sm:$0xff] %v5343_v3  ;;  %v2942_v46 = vadd.f32 %v2941_v31, %v5254_v30  ;;  %880 = vrot.lane.b32.xlu1 %v6845_v48, %s3823_s21  ;;  %v1916_v38 = vmul.f32 -0.5, %v5333_v35  ;;  %v1350_v57 = vsub.f32 0.0, %v5294_v54  ;;  %3691 = vpow2.f32 %v1616_v14  ;;  %v3324_v54 = vpop.permute.xlu0 %3323 }
 0x1bb   :  { %v1479_v6 = vand.u32 2147483647, %v5343_v3  ;;  %v2377_v19 = vsel %vm2329_vm4, %v2288_v2, 0.0  ;;  %v1937_v62 = vand.u32 2147483647, %v5309_v16  ;;  %v2943_v15 = vsel %vm2933_vm3, %v2874_v24, 0.0 }
 0x1bc   :  { %3693 = vpow2.f32 %v1648_v43  ;;  %v2290_v30 = vadd.f32 %v1930_v28, %v5300_v63  ;;  %v2378_v18 = vadd.f32 %v2377_v19, %v2376_v59  ;;  %v1332_v23 = vsub.f32 0.0, %v5315_v10 }
 0x1bd   :  { %v1543_v26 = vsub.f32 0.0, %v1479_v6  ;;  %v3684_v13 = vpop.eup %3683  ;;  %v1935_v31 = vadd.f32 1.0, %v1934_v7  ;;  %v1393_v47 = vmax.f32 %v1329_v53, 0.0  ;;  %v5362_v14 = vmax.f32 %v1334_v44, 0.0  ;;  %v7123_v7 = vld [vmem:[#allocation64_spill] sm:$0xff]  ;;  %v5378_v44 = vpop.f32.mrb[28].mxu1 }
 0x1be   :  { %v1348_v50 = vsub.f32 0.0, %v5326_v20  ;;  %v5365_v32 = vpop.eup %3685  ;;  %v1917_v12 = vadd.f32 1.0, %v1916_v38  ;;  %v5367_v58 = vadd.f32 %v2943_v15, %v2942_v46  ;;  %v5369_v43 = vmax.f32 %v1350_v57, 0.0  ;;  %7125 = vst [vmem:[#allocation79_spill] sm:$0xff] %v5378_v44  ;;  %v5388_v19 = vpop.f32.mrb[29].mxu1 }
 0x1bf   :  { %v1654_v63 = vmul.f32 1.442695, %v1543_v26  ;;  %v1919_v59 = vand.u32 2147483647, %v5333_v35  ;;  %v3321_v28 = vunpack.i.h.bf16 %v3319_v22  ;;  %v3320_v2 = vunpack.i.l.bf16 %v3319_v22  ;;  %7128 = vst [vmem:[#allocation80_spill] sm:$0xff] %v5388_v19 }
 0x1c0   :  { %v5371_v24 = vpop.eup %3687  ;;  %v5376_v53 = vadd.f32 %v4839_v25, %v7123_v7  ;;  %v2381_v6 = vsel %vm2329_vm4, %v2290_v30, 0.0  ;;  %vm5381_vm12 = vcmp.lt.f32.partialorder %v1937_v62, 0.0004427343  ;;  %v5385_v38 = vmax.f32 %v1332_v23, 0.0  ;;  %v7129_v23 = vld [vmem:[#allocation9_spill] sm:$0xff] }
 0x1c1   :  { %v1351_v57 = vsub.f32 0.0, %v5343_v3  ;;  %v3690_v15 = vpop.eup %3689  ;;  %v1936_v26 = vmul.f32 %v5309_v16, %v1935_v31  ;;  %v1958_v22 = vadd.f32 1.0, %v5365_v32  ;;  %v5392_v7 = vmax.f32 %v1348_v50, 0.0 }
 0x1c2   :  { %7124 = vst [vmem:[#allocation64_spill] sm:$0xff] %v5376_v53  ;;  %3695 = vpow2.f32 %v1654_v63  ;;  %v1933_v48 = vmul.f32 0.6931472, %v3684_v13  ;;  %v1915_v30 = vmul.f32 0.6931472, %v3690_v15  ;;  %v1918_v62 = vmul.f32 %v5333_v35, %v1917_v12 }
 0x1c3   :  { %v2102_v51 = vadd.f32 1.0, %v5371_v24  ;;  %vm1920_vm13 = vcmp.lt.f32.partialorder %v1919_v59, 0.0004427343  ;;  %v7130_v8 = vunpack.c.h.bf16 %v7129_v23  ;;  %v7131_v37 = vunpack.c.l.bf16 %v7129_v23 }
 0x1c4   :  { %v1463_v16 = vand.u32 2147483647, %v5376_v53  ;;  %v3692_v31 = vpop.eup %3691  ;;  %v1921_v20 = vsel %vm1920_vm13, %v1918_v62, %v1915_v30  ;;  %v5401_v50 = vmax.f32 %v1351_v57, 0.0  ;;  %v1335_v13 = vsub.f32 0.0, %v5376_v53 }
 0x1c5   :  { %v2811_v11 = vsub.f32 %v7130_v8, %v3321_v28  ;;  %v2810_v42 = vsub.f32 %v7131_v37, %v3320_v2  ;;  %v6853_v63 = vmax.f32 %v4854_v56, 0.0  ;;  %v2289_v12 = vadd.f32 %v1921_v20, %v1393_v47  ;;  %v7132_v2 = vld [vmem:[#allocation68_spill] sm:$0xff] }
 0x1c6   :  { %v5405_v35 = vpop.eup %3693  ;;  %3697 = vlog2.f32 %v1958_v22  ;;  %v1961_v59 = vmul.f32 -0.5, %v5365_v32  ;;  %v1940_v8 = vadd.f32 1.0, %v3692_v31  ;;  %v1939_v37 = vsel %vm5381_vm12, %v1936_v26, %v1933_v48 }
 0x1c7   :  { %3699 = vlog2.f32 %v2102_v51  ;;  %v2084_v28 = vadd.f32 1.0, %v5405_v35  ;;  %882 = vrot.lane.b32.xlu0 %v6853_v63, %s3823_s21  ;;  %v5416_v57 = vadd.f32 %v4839_v25, %v7132_v2  ;;  %v2379_v20 = vsel %vm2329_vm4, %v2289_v12, 0.0 }
 0x1c8   :  { %3701 = vlog2.f32 %v1940_v8  ;;  %v2876_v47 = vand.u32 2147483647, %v2811_v11  ;;  %v1527_v15 = vsub.f32 0.0, %v1463_v16  ;;  %v2380_v22 = vadd.f32 %v2379_v20, %v2378_v18  ;;  %v5426_v11 = vld [vmem:[%s6699_s2] ss:$0 sm:$0xff]  ;;  %v7134_v18 = vld [vmem:[#allocation69_spill] sm:$0xff] }
 0x1c9   :  { %7133 = vst [vmem:[#allocation9_spill] sm:$0xff] %v5416_v57  ;;  %v1964_v46 = vand.u32 2147483647, %v5365_v32  ;;  %v2105_v51 = vmul.f32 -0.5, %v5371_v24  ;;  %v2875_v48 = vand.u32 2147483647, %v2810_v42  ;;  %v2291_v26 = vadd.f32 %v1939_v37, %v5311_v61 }
 0x1ca   :  { %v1962_v30 = vadd.f32 1.0, %v1961_v59  ;;  %v1943_v62 = vmul.f32 -0.5, %v3692_v31  ;;  %v1622_v23 = vmul.f32 1.442695, %v1527_v15  ;;  %v2382_v63 = vadd.f32 %v2381_v6, %v2380_v22 }
 0x1cb   :  { %3703 = vlog2.f32 %v2084_v28  ;;  %v1461_v25 = vand.u32 2147483647, %v5416_v57  ;;  %v5430_v16 = vadd.f32 %v5426_v11, %v7134_v18  ;;  %v2108_v42 = vand.u32 2147483647, %v5371_v24 }
 0x1cc   :  { %v5432_v12 = vpop.eup %3695  ;;  %v2947_v61 = vsel %vm2933_vm3, %v2876_v47, 0.0  ;;  %3705 = vpow2.f32 %v1622_v23  ;;  %v6855_v6 = vmax.f32 %v5088_v27, 0.0  ;;  %v2106_v59 = vadd.f32 1.0, %v2105_v51  ;;  %v5444_v47 = vpop.f32.mrb[30].mxu1 }
 0x1cd   :  { %7135 = vst [vmem:[#allocation68_spill] sm:$0xff] %v5430_v16  ;;  %v1946_v8 = vand.u32 2147483647, %v3692_v31  ;;  %v2111_v37 = vadd.f32 1.0, %v5432_v12  ;;  %v2945_v28 = vsel %vm2933_vm3, %v2875_v48, 0.0  ;;  %v1944_v2 = vadd.f32 1.0, %v1943_v62 }
 0x1ce   :  { %v2087_v20 = vmul.f32 -0.5, %v5405_v35  ;;  %v1525_v15 = vsub.f32 0.0, %v1461_v25  ;;  %v1477_v22 = vand.u32 2147483647, %v5430_v16  ;;  %892 = vrot.lane.b32.xlu1 %v6855_v6, %s3823_s21  ;;  %7136 = vst [vmem:[#allocation69_spill] sm:$0xff] %v5444_v47  ;;  %v2383_v23 = vsel %vm2329_vm4, %v2291_v26, 0.0 }
 0x1cf   :  { %v1963_v51 = vmul.f32 %v5365_v32, %v1962_v30  ;;  %vm5448_vm14 = vcmp.lt.f32.partialorder %v1964_v46, 0.0004427343  ;;  %v5452_v48 = vmax.f32 %v1335_v13, 0.0  ;;  %vm5454_vm15 = vcmp.lt.f32.partialorder %v2108_v42, 0.0004427343 }
 0x1d0   :  { %v3698_v62 = vpop.eup %3697  ;;  %v2946_v27 = vadd.f32 %v2945_v28, %v5367_v58  ;;  %v1618_v6 = vmul.f32 1.442695, %v1525_v15  ;;  %v1541_v56 = vsub.f32 0.0, %v1477_v22  ;;  %v2107_v26 = vmul.f32 %v5371_v24, %v2106_v59  ;;  %v7143_v28 = vld [vmem:[#allocation42_spill] sm:$0xff]  ;;  %v7144_v22 = vld [vmem:[#allocation72_spill] sm:$0xff]  ;;  %v5470_v59 = vpop.f32.mrb[31].mxu1 }
 0x1d1   :  { %v3700_v47 = vpop.eup %3699  ;;  %vm5460_vm0 = vcmp.lt.f32.partialorder %v1946_v8, 0.0004427343  ;;  %v2090_v46 = vand.u32 2147483647, %v5405_v35  ;;  %3707 = vlog2.f32 %v2111_v37  ;;  %v1945_v30 = vmul.f32 %v3692_v31, %v1944_v2 }
 0x1d2   :  { %v3702_v13 = vpop.eup %3701  ;;  %v2088_v42 = vadd.f32 1.0, %v2087_v20  ;;  %3709 = vpow2.f32 %v1618_v6  ;;  %v1650_v3 = vmul.f32 1.442695, %v1541_v56  ;;  %v1960_v44 = vmul.f32 0.6931472, %v3698_v62 }
 0x1d3   :  { %v1942_v58 = vmul.f32 0.6931472, %v3702_v13  ;;  %v6861_v15 = vmax.f32 %v7143_v28, 0.0  ;;  %v5468_v24 = vadd.f32 %v5426_v11, %v7144_v22  ;;  %v2384_v8 = vadd.f32 %v2383_v23, %v2382_v63  ;;  %v7149_v22 = vld [vmem:[#allocation10_spill] sm:$0xff] }
 0x1d4   :  { %v2114_v19 = vmul.f32 -0.5, %v5432_v12  ;;  %3711 = vpow2.f32 %v1650_v3  ;;  %v3326_v37 = vunpack.i.h.bf16 %v3324_v54  ;;  %v2104_v2 = vmul.f32 0.6931472, %v3700_v47 }
 0x1d5   :  { %7145 = vst [vmem:[#allocation72_spill] sm:$0xff] %v5468_v24  ;;  %v3704_v31 = vpop.eup %3703  ;;  %v1948_v56 = vsel %vm5460_vm0, %v1945_v30, %v1942_v58  ;;  %v3325_v6 = vunpack.i.l.bf16 %v3324_v54  ;;  %878 = vrot.lane.b32.xlu0 %v6861_v15, %s3823_s21  ;;  %v1482_v20 = vand.u32 2147483647, %v5468_v24  ;;  %vm5482_vm1 = vcmp.lt.f32.partialorder %v2090_v46, 0.0004427343  ;;  %v7148_v30 = vld [vmem:[#allocation73_spill] sm:$0xff] }
 0x1d6   :  { %v5479_v62 = vpop.eup %3705  ;;  %v2292_v63 = vadd.f32 %v1948_v56, %v5385_v38  ;;  %v2948_v3 = vadd.f32 %v2947_v61, %v2946_v27  ;;  %v1333_v47 = vsub.f32 0.0, %v5416_v57  ;;  %v1966_v54 = vsel %vm5448_vm14, %v1963_v51, %v1960_v44 }
 0x1d7   :  { %v2089_v32 = vmul.f32 %v5405_v35, %v2088_v42  ;;  %v1967_v13 = vadd.f32 1.0, %v5479_v62  ;;  %v5493_v58 = vadd.f32 %v5426_v11, %v7148_v30  ;;  %v2115_v46 = vadd.f32 1.0, %v2114_v19 }
 0x1d8   :  { %v2385_v38 = vsel %vm2329_vm4, %v2292_v63, 0.0  ;;  %v7150_v56 = vunpack.c.h.bf16 %v7149_v22  ;;  %v1546_v27 = vsub.f32 0.0, %v1482_v20  ;;  %v2110_v61 = vsel %vm5454_vm15, %v2107_v26, %v2104_v2  ;;  %v7152_v20 = vld [vmem:[#allocation74_spill] sm:$0xff] }
 0x1d9   :  { %v5500_v18 = vadd.f32 %v2385_v38, %v2384_v8  ;;  %v2086_v44 = vmul.f32 0.6931472, %v3704_v31  ;;  %v7151_v35 = vunpack.c.l.bf16 %v7149_v22  ;;  %v2117_v42 = vand.u32 2147483647, %v5432_v12 }
 0x1da   :  { %v2813_v15 = vsub.f32 %v7150_v56, %v3326_v37  ;;  %v5505_v30 = vmax.f32 %v1333_v47, 0.0  ;;  %v1349_v63 = vsub.f32 0.0, %v5430_v16  ;;  %v1660_v19 = vmul.f32 1.442695, %v1546_v27 }
 0x1db   :  { %v2812_v51 = vsub.f32 %v7151_v35, %v3325_v6  ;;  %v3708_v28 = vpop.eup %3707  ;;  %v2294_v37 = vadd.f32 %v1966_v54, %v5362_v14  ;;  %3713 = vlog2.f32 %v1967_v13  ;;  %v1480_v25 = vand.u32 2147483647, %v5493_v58 }
 0x1dc   :  { %v6864_v26 = vmax.f32 %v5094_v45, 0.0  ;;  %v5511_v8 = vpop.eup %3709  ;;  %v2310_v31 = vadd.f32 %v2110_v61, %v5369_v43  ;;  %v2116_v2 = vmul.f32 %v5432_v12, %v2115_v46  ;;  %v2878_v6 = vand.u32 2147483647, %v2813_v15 }
 0x1dd   :  { %v5517_v47 = vadd.f32 %v5426_v11, %v7152_v20  ;;  %v2092_v38 = vsel %vm5482_vm1, %v2089_v32, %v2086_v44  ;;  %v1949_v14 = vadd.f32 1.0, %v5511_v8  ;;  %v2877_v54 = vand.u32 2147483647, %v2812_v51 }
 0x1de   :  { %v1354_v13 = vsub.f32 0.0, %v5468_v24  ;;  %888 = vrot.lane.b32.xlu1 %v6864_v26, %s3823_s21  ;;  %v5526_v43 = vpop.eup %3711  ;;  %v2113_v12 = vmul.f32 0.6931472, %v3708_v28  ;;  %3715 = vpow2.f32 %v1660_v19  ;;  %v1544_v15 = vsub.f32 0.0, %v1480_v25  ;;  %v3329_v19 = vpop.permute.xlu1 %3328 }
 0x1df   :  { %7153 = vst [vmem:[#allocation73_spill] sm:$0xff] %v5517_v47  ;;  %v1483_v46 = vand.u32 2147483647, %v5517_v47  ;;  %vm5529_vm2 = vcmp.lt.f32.partialorder %v2117_v42, 0.0004427343  ;;  %v1970_v23 = vmul.f32 -0.5, %v5479_v62  ;;  %3717 = vlog2.f32 %v1949_v14 }
 0x1e0   :  { %v5534_v32 = vmax.f32 %v1349_v63, 0.0  ;;  %v5537_v56 = vsel %vm2329_vm4, %v2294_v37, 0.0  ;;  %v5540_v27 = vsel %vm2329_vm4, %v2310_v31, 0.0  ;;  %v2093_v28 = vadd.f32 1.0, %v5526_v43 }
 0x1e1   :  { %v1656_v61 = vmul.f32 1.442695, %v1544_v15  ;;  %v2308_v44 = vadd.f32 %v2092_v38, %v5392_v7  ;;  %v2951_v35 = vsel %vm2933_vm3, %v2878_v6, 0.0  ;;  %v2949_v51 = vsel %vm2933_vm3, %v2877_v54, 0.0 }
 0x1e2   :  { %v1547_v42 = vsub.f32 0.0, %v1483_v46  ;;  %v2119_v63 = vsel %vm5529_vm2, %v2116_v2, %v2113_v12  ;;  %v1973_v37 = vand.u32 2147483647, %v5479_v62  ;;  %v1952_v25 = vmul.f32 -0.5, %v5511_v8 }
 0x1e3   :  { %v5550_v31 = vmax.f32 %v1354_v13, 0.0  ;;  %v1971_v20 = vadd.f32 1.0, %v1970_v23  ;;  %3719 = vpow2.f32 %v1656_v61  ;;  %v6863_v7 = vmax.f32 %v5026_v1, 0.0 }
 0x1e4   :  { %v1662_v14 = vmul.f32 1.442695, %v1547_v42  ;;  %3721 = vlog2.f32 %v2093_v28  ;;  %v2950_v6 = vadd.f32 %v2949_v51, %v2948_v3  ;;  %v3330_v38 = vunpack.i.l.bf16 %v3329_v19 }
 0x1e5   :  { %v5555_v54 = vadd.f32 %v5426_v11, %v5044_v9  ;;  %v3714_v15 = vpop.eup %3713  ;;  %v2311_v2 = vadd.f32 %v2119_v63, %v5401_v50  ;;  %v1352_v12 = vsub.f32 0.0, %v5493_v58  ;;  %890 = vrot.lane.b32.xlu0 %v6863_v7, %s3823_s21  ;;  %v6866_v13 = vmax.f32 %v5219_v52, 0.0  ;;  %v7159_v63 = vld [vmem:[#allocation11_spill] sm:$0xff] }
 0x1e6   :  { %3723 = vpow2.f32 %v1662_v14  ;;  %v5564_v46 = vsel %vm2329_vm4, %v2308_v44, 0.0  ;;  %v1953_v3 = vadd.f32 1.0, %v1952_v25  ;;  %v2096_v22 = vmul.f32 -0.5, %v5526_v43 }
 0x1e7   :  { %7156 = vst [vmem:[#allocation10_spill] sm:$0xff] %v5555_v54  ;;  %v1481_v9 = vand.u32 2147483647, %v5555_v54  ;;  %v1972_v23 = vmul.f32 %v5479_v62, %v1971_v20  ;;  %vm5569_vm5 = vcmp.lt.f32.partialorder %v1973_v37, 0.0004427343  ;;  %v3331_v61 = vunpack.i.h.bf16 %v3329_v19  ;;  %900 = vrot.lane.b32.xlu1 %v6866_v13, %s3823_s21 }
 0x1e8   :  { %v1955_v28 = vand.u32 2147483647, %v5511_v8  ;;  %v3716_v44 = vpop.eup %3715  ;;  %v1969_v51 = vmul.f32 0.6931472, %v3714_v15  ;;  %v2952_v42 = vadd.f32 %v2951_v35, %v2950_v6  ;;  %v7160_v25 = vunpack.c.l.bf16 %v7159_v63 }
 0x1e9   :  { %v1545_v7 = vsub.f32 0.0, %v1481_v9  ;;  %v3718_v26 = vpop.eup %3717  ;;  %v5580_v62 = vsel %vm2329_vm4, %v2311_v2, 0.0  ;;  %v2099_v37 = vand.u32 2147483647, %v5526_v43  ;;  %v5583_v20 = vmax.f32 %v1352_v12, 0.0  ;;  %v3334_v9 = vpop.permute.xlu0 %3333 }
 0x1ea   :  { %v2814_v14 = vsub.f32 %v7160_v25, %v3330_v38  ;;  %v1355_v19 = vsub.f32 0.0, %v5517_v47  ;;  %v1951_v1 = vmul.f32 0.6931472, %v3718_v26  ;;  %v1954_v13 = vmul.f32 %v5511_v8, %v1953_v3 }
 0x1eb   :  { %v2097_v52 = vadd.f32 1.0, %v2096_v22  ;;  %v1658_v15 = vmul.f32 1.442695, %v1545_v7  ;;  %vm1956_vm6 = vcmp.lt.f32.partialorder %v1955_v28, 0.0004427343  ;;  %v2138_v35 = vadd.f32 1.0, %v3716_v44 }
 0x1ec   :  { %v7161_v6 = vunpack.c.h.bf16 %v7159_v63  ;;  %v6872_v2 = vmax.f32 %v5035_v55, 0.0  ;;  %v1975_v25 = vsel %vm5569_vm5, %v1972_v23, %v1969_v51  ;;  %v1957_v12 = vsel %vm1956_vm6, %v1954_v13, %v1951_v1 }
 0x1ed   :  { %v2879_v45 = vand.u32 2147483647, %v2814_v14  ;;  %3725 = vpow2.f32 %v1658_v15  ;;  %v5592_v47 = vpop.eup %3719  ;;  %v2293_v26 = vadd.f32 %v1957_v12, %v5505_v30  ;;  %v2141_v8 = vmul.f32 -0.5, %v3716_v44  ;;  %v7165_v15 = vld [vmem:[#allocation13_spill] sm:$0xff] }
 0x1ee   :  { %v2815_v38 = vsub.f32 %v7161_v6, %v3331_v61  ;;  %v5595_v7 = vmax.f32 %v1355_v19, 0.0  ;;  %v3336_v3 = vunpack.i.h.bf16 %v3334_v9  ;;  %886 = vrot.lane.b32.xlu0 %v6872_v2, %s3823_s21  ;;  %v3722_v22 = vpop.eup %3721  ;;  %v2098_v28 = vmul.f32 %v5526_v43, %v2097_v52 }
 0x1ef   :  { %vm5601_vm7 = vcmp.lt.f32.partialorder %v2099_v37, 0.0004427343  ;;  %v2120_v1 = vadd.f32 1.0, %v5592_v47  ;;  %v3335_v13 = vunpack.i.l.bf16 %v3334_v9  ;;  %v2295_v30 = vadd.f32 %v1975_v25, %v5452_v48 }
 0x1f0   :  { %v5606_v50 = vpop.eup %3723  ;;  %v2387_v61 = vsel %vm2329_vm4, %v2293_v26, 0.0  ;;  %3727 = vlog2.f32 %v2138_v35  ;;  %v2880_v51 = vand.u32 2147483647, %v2815_v38  ;;  %v2953_v52 = vsel %vm2933_vm3, %v2879_v45, 0.0 }
 0x1f1   :  { %v2388_v63 = vadd.f32 %v2387_v61, %v5500_v18  ;;  %3729 = vlog2.f32 %v2120_v1  ;;  %v5614_v43 = vadd.f32 %v5426_v11, %v5111_v29  ;;  %v2142_v14 = vadd.f32 1.0, %v2141_v8 }
 0x1f2   :  { %v2144_v37 = vand.u32 2147483647, %v3716_v44  ;;  %v2147_v19 = vadd.f32 1.0, %v5606_v50  ;;  %v7166_v6 = vunpack.c.h.bf16 %v7165_v15  ;;  %v2095_v35 = vmul.f32 0.6931472, %v3722_v22 }
 0x1f3   :  { %7164 = vst [vmem:[#allocation74_spill] sm:$0xff] %v5614_v43  ;;  %v2390_v9 = vadd.f32 %v5537_v56, %v2388_v63  ;;  %v7167_v18 = vunpack.c.l.bf16 %v7165_v15  ;;  %v2391_v45 = vsel %vm2329_vm4, %v2295_v30, 0.0  ;;  %v2123_v29 = vmul.f32 -0.5, %v5592_v47  ;;  %v7173_v15 = vld [vmem:[#allocation54_spill] sm:$0xff] }
 0x1f4   :  { %v2817_v48 = vsub.f32 %v7166_v6, %v3336_v3  ;;  %v2955_v12 = vsel %vm2933_vm3, %v2880_v51, 0.0  ;;  %v2954_v26 = vadd.f32 %v2953_v52, %v2952_v42  ;;  %3731 = vlog2.f32 %v2147_v19  ;;  %v7171_v42 = vld [vmem:[#allocation52_spill] sm:$0xff] }
 0x1f5   :  { %v2816_v25 = vsub.f32 %v7167_v18, %v3335_v13  ;;  %v2392_v8 = vadd.f32 %v2391_v45, %v2390_v9  ;;  %v1486_v1 = vand.u32 2147483647, %v5614_v43  ;;  %v5629_v56 = vadd.f32 %v5426_v11, %v5122_v33 }
 0x1f6   :  { %v5631_v3 = vmul.f32 %v3716_v44, %v2142_v14  ;;  %vm5633_vm8 = vcmp.lt.f32.partialorder %v2144_v37, 0.0004427343  ;;  %v2882_v13 = vand.u32 2147483647, %v2817_v48  ;;  %v6871_v30 = vmax.f32 %v5239_v41, 0.0 }
 0x1f7   :  { %7168 = vst [vmem:[#allocation11_spill] sm:$0xff] %v5629_v56  ;;  %v5638_v61 = vpop.eup %3725  ;;  %v2394_v51 = vadd.f32 %v7171_v42, %v2392_v8  ;;  %v2101_v63 = vsel %vm5601_vm7, %v2098_v28, %v2095_v35  ;;  %v2126_v52 = vand.u32 2147483647, %v5592_v47  ;;  %v2881_v33 = vand.u32 2147483647, %v2816_v25  ;;  %v7174_v8 = vld [vmem:[#allocation48_spill] sm:$0xff] }
 0x1f8   :  { %v2124_v19 = vadd.f32 1.0, %v2123_v29  ;;  %v2129_v44 = vadd.f32 1.0, %v5638_v61  ;;  %v1550_v14 = vsub.f32 0.0, %v1486_v1  ;;  %896 = vrot.lane.b32.xlu1 %v6871_v30, %s3823_s21  ;;  %v5650_v37 = vadd.f32 %v5426_v11, %v5129_v17 }
 0x1f9   :  { %v2396_v6 = vadd.f32 %v7173_v15, %v2394_v51  ;;  %v2150_v23 = vmul.f32 -0.5, %v5606_v50  ;;  %v2956_v28 = vadd.f32 %v2955_v12, %v2954_v26  ;;  %v1484_v48 = vand.u32 2147483647, %v5629_v56 }
 0x1fa   :  { %7172 = vst [vmem:[#allocation13_spill] sm:$0xff] %v5650_v37  ;;  %v3728_v9 = vpop.eup %3727  ;;  %v2309_v35 = vadd.f32 %v2101_v63, %v5534_v32  ;;  %v2153_v18 = vand.u32 2147483647, %v5606_v50  ;;  %v2959_v25 = vsel %vm2933_vm3, %v2882_v13, 0.0  ;;  %v1358_v45 = vsub.f32 0.0, %v5614_v43  ;;  %v3339_v63 = vpop.permute.xlu1 %3338  ;;  %v7177_v13 = vld [vmem:[#allocation53_spill] sm:$0xff] }
 0x1fb   :  { %v3730_v29 = vpop.eup %3729  ;;  %v2398_v17 = vadd.f32 %v7174_v8, %v2396_v6  ;;  %vm5660_vm9 = vcmp.lt.f32.partialorder %v2126_v52, 0.0004427343  ;;  %3733 = vlog2.f32 %v2129_v44  ;;  %v1548_v12 = vsub.f32 0.0, %v1484_v48 }
 0x1fc   :  { %v2125_v26 = vmul.f32 %v5592_v47, %v2124_v19  ;;  %v2957_v42 = vsel %vm2933_vm3, %v2881_v33, 0.0  ;;  %v1668_v32 = vmul.f32 1.442695, %v1550_v14  ;;  %v1487_v51 = vand.u32 2147483647, %v5650_v37  ;;  %v7180_v19 = vld [vmem:[#allocation60_spill] sm:$0xff] }
 0x1fd   :  { %v2400_v15 = vadd.f32 %v7177_v13, %v2398_v17  ;;  %v2140_v30 = vmul.f32 0.6931472, %v3728_v9  ;;  %v2151_v2 = vadd.f32 1.0, %v2150_v23  ;;  %v1664_v38 = vmul.f32 1.442695, %v1548_v12 }
 0x1fe   :  { %v2122_v6 = vmul.f32 0.6931472, %v3730_v29  ;;  %vm5668_vm10 = vcmp.lt.f32.partialorder %v2153_v18, 0.0004427343  ;;  %v1551_v44 = vsub.f32 0.0, %v1487_v51  ;;  %v6873_v48 = vmax.f32 %v5152_v21, 0.0  ;;  %v3732_v47 = vpop.eup %3731  ;;  %v5702_v1 = vpop.permute.xlu1 %3348 }
 0x1ff   :  { %v2402_v33 = vadd.f32 %v7180_v19, %v2400_v15  ;;  %v2132_v14 = vmul.f32 -0.5, %v5638_v61  ;;  %3735 = vpow2.f32 %v1664_v38  ;;  %v3340_v8 = vunpack.i.l.bf16 %v3339_v63  ;;  %v7181_v18 = vld [vmem:[#allocation67_spill] sm:$0xff] }
 0x200   :  { %3737 = vpow2.f32 %v1668_v32  ;;  %v1670_v17 = vmul.f32 1.442695, %v1551_v44  ;;  %v3341_v9 = vunpack.i.h.bf16 %v3339_v63  ;;  %898 = vrot.lane.b32.xlu0 %v6873_v48, %s3823_s21  ;;  %v5680_v23 = vadd.f32 %v5426_v11, %v5190_v49  ;;  %v7182_v38 = vld [vmem:[#allocation55_spill] sm:$0xff] }
 0x201   :  { %v2404_v29 = vadd.f32 %v7181_v18, %v2402_v33  ;;  %v2146_v12 = vsel %vm5633_vm8, %v5631_v3, %v2140_v30  ;;  %v2958_v51 = vadd.f32 %v2957_v42, %v2956_v28  ;;  %v6874_v13 = vmax.f32 %v7182_v38, 0.0  ;;  %v7183_v19 = vld [vmem:[#allocation59_spill] sm:$0xff]  ;;  %v7187_v42 = vld [vmem:[#allocation66_spill] sm:$0xff] }
 0x202   :  { %v2128_v32 = vsel %vm5660_vm9, %v2125_v26, %v2122_v6  ;;  %v2149_v63 = vmul.f32 0.6931472, %v3732_v47  ;;  %v2152_v15 = vmul.f32 %v5606_v50, %v2151_v2  ;;  %v1356_v44 = vsub.f32 0.0, %v5629_v56  ;;  %v7184_v48 = vld [vmem:[#allocation15_spill] sm:$0xff] }
 0x203   :  { %v2406_v49 = vadd.f32 %v7183_v19, %v2404_v29  ;;  %3739 = vpow2.f32 %v1670_v17  ;;  %v7185_v33 = vunpack.c.l.bf16 %v7184_v48  ;;  %v1485_v22 = vand.u32 2147483647, %v5680_v23  ;;  %930 = vrot.lane.b32.xlu1 %v6874_v13, %s3823_s21  ;;  %v7189_v19 = vld [vmem:[#allocation71_spill] sm:$0xff] }
 0x204   :  { %v2314_v3 = vadd.f32 %v2146_v12, %v5550_v31  ;;  %v2133_v30 = vadd.f32 1.0, %v2132_v14  ;;  %v7186_v28 = vunpack.c.h.bf16 %v7184_v48  ;;  %v6875_v50 = vmax.f32 %v5184_v39, 0.0  ;;  %v3344_v12 = vpop.permute.xlu0 %3343 }
 0x205   :  { %v2818_v18 = vsub.f32 %v7185_v33, %v3340_v8  ;;  %v3734_v26 = vpop.eup %3733  ;;  %v2408_v6 = vadd.f32 %v7187_v42, %v2406_v49  ;;  %v7188_v47 = vsub.f32 0.0, %v5555_v54  ;;  %v2135_v17 = vand.u32 2147483647, %v5638_v61 }
 0x206   :  { %v2819_v2 = vsub.f32 %v7186_v28, %v3341_v9  ;;  %v5708_v29 = vmax.f32 %v1358_v45, 0.0  ;;  %v2419_v31 = vsel %vm2329_vm4, %v2309_v35, 0.0  ;;  %v2312_v14 = vadd.f32 %v2128_v32, %v5583_v20  ;;  %894 = vrot.lane.b32.xlu0 %v6875_v50, %s3823_s21 }
 0x207   :  { %v1417_v8 = vmax.f32 %v7188_v47, 0.0  ;;  %v2960_v48 = vadd.f32 %v2959_v25, %v2958_v51  ;;  %v1549_v9 = vsub.f32 0.0, %v1485_v22  ;;  %v2410_v49 = vadd.f32 %v7189_v19, %v2408_v6  ;;  %v5724_v51 = vpop.permute.xlu1 %3358 }
 0x208   :  { %v2155_v33 = vsel %vm5668_vm10, %v2152_v15, %v2149_v63  ;;  %v5718_v28 = vmax.f32 %v1356_v44, 0.0  ;;  %v2883_v45 = vand.u32 2147483647, %v2818_v18  ;;  %v5721_v42 = vsel %vm2329_vm4, %v2314_v3, 0.0 }
 0x209   :  { %v2131_v35 = vmul.f32 0.6931472, %v3734_v26  ;;  %v2134_v20 = vmul.f32 %v5638_v61, %v2133_v30  ;;  %v2884_v25 = vand.u32 2147483647, %v2819_v2  ;;  %v3736_v32 = vpop.eup %3735  ;;  %v2412_v22 = vadd.f32 %v5145_v60, %v2410_v49  ;;  %v5735_v30 = vpop.permute.xlu0 %3353  ;;  %v7192_v2 = vld [vmem:[#allocation70_spill] sm:$0xff] }
 0x20a   :  { %vm5727_vm11 = vcmp.lt.f32.partialorder %v2135_v17, 0.0004427343  ;;  %v1666_v52 = vmul.f32 1.442695, %v1549_v9  ;;  %v3345_v63 = vunpack.i.l.bf16 %v3344_v12  ;;  %v5731_v15 = vpop.eup %3737  ;;  %v2425_v44 = vsel %vm2329_vm4, %v2312_v14, 0.0 }
 0x20b   :  { %v2315_v18 = vadd.f32 %v2155_v33, %v5595_v7  ;;  %v2156_v3 = vadd.f32 1.0, %v3736_v32  ;;  %v3346_v61 = vunpack.i.h.bf16 %v3344_v12  ;;  %v2414_v26 = vadd.f32 %v7192_v2, %v2412_v22  ;;  %v5747_v14 = vpop.permute.xlu1 %3368 }
 0x20c   :  { %v2177_v60 = vmul.f32 -0.5, %v5731_v15  ;;  %v2961_v47 = vsel %vm2933_vm3, %v2883_v45, 0.0  ;;  %3741 = vpow2.f32 %v1666_v52  ;;  %v2137_v17 = vsel %vm5727_vm11, %v2134_v20, %v2131_v35  ;;  %v7193_v45 = vld [vmem:[#allocation16_spill] sm:$0xff] }
 0x20d   :  { %3743 = vlog2.f32 %v2156_v3  ;;  %v2963_v9 = vsel %vm2933_vm3, %v2884_v25, 0.0  ;;  %v5745_v7 = vadd.f32 %v5426_v11, %v5232_v36  ;;  %v5749_v12 = vpop.eup %3739  ;;  %v2416_v19 = vadd.f32 %v5142_v0, %v2414_v26  ;;  %v5760_v52 = vpop.permute.xlu0 %3363 }
 0x20e   :  { %v2159_v49 = vmul.f32 -0.5, %v3736_v32  ;;  %v7194_v22 = vunpack.c.l.bf16 %v7193_v45  ;;  %v5756_v35 = vsel %vm2329_vm4, %v2315_v18, 0.0  ;;  %v2174_v20 = vadd.f32 1.0, %v5731_v15 }
 0x20f   :  { %v2962_v25 = vadd.f32 %v2961_v47, %v2960_v48  ;;  %v2418_v3 = vadd.f32 %v5564_v46, %v2416_v19  ;;  %v2313_v2 = vadd.f32 %v2137_v17, %v1417_v8  ;;  %v2178_v0 = vadd.f32 1.0, %v2177_v60  ;;  %v5777_v60 = vpop.permute.xlu1 %3373 }
 0x210   :  { %v2820_v6 = vsub.f32 %v7194_v22, %v3345_v63  ;;  %v7195_v26 = vunpack.c.h.bf16 %v7193_v45  ;;  %v2162_v50 = vand.u32 2147483647, %v3736_v32  ;;  %v2183_v63 = vadd.f32 1.0, %v5749_v12 }
 0x211   :  { %v1490_v18 = vand.u32 2147483647, %v5745_v7  ;;  %v5769_v22 = vadd.f32 %v5426_v11, %v5241_v4  ;;  %v2420_v33 = vadd.f32 %v2419_v31, %v2418_v3  ;;  %v2160_v48 = vadd.f32 1.0, %v2159_v49  ;;  %v5779_v17 = vpop.permute.xlu0 %3378 }
 0x212   :  { %v2821_v13 = vsub.f32 %v7195_v26, %v3346_v61  ;;  %v2885_v47 = vand.u32 2147483647, %v2820_v6  ;;  %v6876_v36 = vmax.f32 %v5285_v40, 0.0  ;;  %3745 = vlog2.f32 %v2174_v20 }
 0x213   :  { %v1554_v46 = vsub.f32 0.0, %v1490_v18  ;;  %v1488_v8 = vand.u32 2147483647, %v5769_v22  ;;  %v5775_v61 = vadd.f32 %v5426_v11, %v5271_v34  ;;  %v2422_v4 = vadd.f32 %v5540_v27, %v2420_v33  ;;  %v5807_v38 = vpop.permute.xlu1 %3383 }
 0x214   :  { %v2964_v19 = vadd.f32 %v2963_v9, %v2962_v25  ;;  %v2886_v31 = vand.u32 2147483647, %v2821_v13  ;;  %906 = vrot.lane.b32.xlu1 %v6876_v36, %s3823_s21  ;;  %v3351_v49 = vunpack.i.h.bf16 %v5702_v1  ;;  %v2427_v45 = vsel %vm2329_vm4, %v2313_v2, 0.0 }
 0x215   :  { %7196 = vst [vmem:[#allocation52_spill] sm:$0xff] %v5775_v61  ;;  %v5788_v6 = vmul.f32 %v5731_v15, %v2178_v0  ;;  %3747 = vlog2.f32 %v2183_v63  ;;  %v1552_v34 = vsub.f32 0.0, %v1488_v8  ;;  %v2424_v3 = vadd.f32 %v5580_v62, %v2422_v4  ;;  %v5801_v63 = vpop.permute.xlu0 %3388 }
 0x216   :  { %v5790_v20 = vpop.eup %3741  ;;  %v2161_v27 = vmul.f32 %v3736_v32, %v2160_v48  ;;  %vm5793_vm12 = vcmp.lt.f32.partialorder %v2162_v50, 0.0004427343  ;;  %v2965_v9 = vsel %vm2933_vm3, %v2885_v47, 0.0  ;;  %v1676_v2 = vmul.f32 1.442695, %v1554_v46  ;;  %v7199_v32 = vld [vmem:[#allocation17_spill] sm:$0xff] }
 0x217   :  { %v3744_v33 = vpop.eup %3743  ;;  %v2165_v25 = vadd.f32 1.0, %v5790_v20  ;;  %v1491_v0 = vand.u32 2147483647, %v5775_v61  ;;  %v3350_v26 = vunpack.i.l.bf16 %v5702_v1  ;;  %v2426_v18 = vadd.f32 %v2425_v44, %v2424_v3 }
 0x218   :  { %v2158_v8 = vmul.f32 0.6931472, %v3744_v33  ;;  %v1672_v62 = vmul.f32 1.442695, %v1552_v34  ;;  %v7200_v50 = vunpack.c.h.bf16 %v7199_v32  ;;  %v2186_v4 = vmul.f32 -0.5, %v5749_v12 }
 0x219   :  { %3749 = vlog2.f32 %v2165_v25  ;;  %v2967_v47 = vsel %vm2933_vm3, %v2886_v31, 0.0  ;;  %v2966_v36 = vadd.f32 %v2965_v9, %v2964_v19  ;;  %v2428_v46 = vadd.f32 %v2427_v45, %v2426_v18  ;;  %v7202_v9 = vld [vmem:[#allocation65_spill] sm:$0xff] }
 0x21a   :  { %v2823_v48 = vsub.f32 %v7200_v50, %v3351_v49  ;;  %v2164_v1 = vsel %vm5793_vm12, %v2161_v27, %v2158_v8  ;;  %v2168_v40 = vmul.f32 -0.5, %v5790_v20  ;;  %3751 = vpow2.f32 %v1672_v62  ;;  %v5832_v50 = vpop.permute.xlu1 %3393 }
 0x21b   :  { %v2316_v44 = vadd.f32 %v2164_v1, %v5718_v28  ;;  %v2189_v34 = vand.u32 2147483647, %v5749_v12  ;;  %3753 = vpow2.f32 %v1676_v2  ;;  %v1555_v49 = vsub.f32 0.0, %v1491_v0  ;;  %v5822_v28 = vpop.permute.xlu0 %3398 }
 0x21c   :  { %v2430_v3 = vadd.f32 %v5721_v42, %v2428_v46  ;;  %v2888_v33 = vand.u32 2147483647, %v2823_v48  ;;  %v7201_v19 = vunpack.c.l.bf16 %v7199_v32  ;;  %v6879_v45 = vmax.f32 %v7202_v9, 0.0  ;;  %v3746_v25 = vpop.eup %3745  ;;  %7203 = vst [vmem:[#allocation54_spill] sm:$0xff] %v5822_v28 }
 0x21d   :  { %v2187_v13 = vadd.f32 1.0, %v2186_v4  ;;  %v2968_v27 = vadd.f32 %v2967_v47, %v2966_v36  ;;  %v1678_v18 = vmul.f32 1.442695, %v1555_v49  ;;  %v5820_v8 = vadd.f32 %v5426_v11, %v5352_v5 }
 0x21e   :  { %v2822_v31 = vsub.f32 %v7201_v19, %v3350_v26  ;;  %v2432_v2 = vadd.f32 %v5756_v35, %v2430_v3  ;;  %v2169_v0 = vadd.f32 1.0, %v2168_v40  ;;  %v2171_v42 = vand.u32 2147483647, %v5790_v20  ;;  %928 = vrot.lane.b32.xlu0 %v6879_v45, %s3823_s21 }
 0x21f   :  { %v3748_v26 = vpop.eup %3747  ;;  %v2433_v36 = vsel %vm2329_vm4, %v2316_v44, 0.0  ;;  %3755 = vpow2.f32 %v1678_v18  ;;  %v1489_v32 = vand.u32 2147483647, %v5820_v8  ;;  %v6880_v5 = vmax.f32 %v5376_v53, 0.0 }
 0x220   :  { %v2887_v62 = vand.u32 2147483647, %v2822_v31  ;;  %v2176_v48 = vmul.f32 0.6931472, %v3746_v25  ;;  %v2434_v35 = vadd.f32 %v2433_v36, %v2432_v2  ;;  %v2971_v40 = vsel %vm2933_vm3, %v2888_v33, 0.0 }
 0x221   :  { %v7204_v47 = vand.u32 2147483647, %v5731_v15  ;;  %v1359_v1 = vsub.f32 0.0, %v5650_v37  ;;  %v1553_v49 = vsub.f32 0.0, %v1489_v32  ;;  %908 = vrot.lane.b32.xlu1 %v6880_v5, %s3823_s21  ;;  %v2185_v3 = vmul.f32 0.6931472, %v3748_v26  ;;  %v5861_v26 = vpop.permute.xlu0 %846 }
 0x222   :  { %v2969_v4 = vsel %vm2933_vm3, %v2887_v62, 0.0  ;;  %v2188_v19 = vmul.f32 %v5749_v12, %v2187_v13  ;;  %v2170_v33 = vmul.f32 %v5790_v20, %v2169_v0  ;;  %v6881_v31 = vmax.f32 %v5315_v10, 0.0  ;;  %v7212_v32 = vld [vmem:[#allocation80_spill] sm:$0xff] }
 0x223   :  { %vm5838_vm13 = vcmp.lt.f32.partialorder %v7204_v47, 0.0004427343  ;;  %v2970_v44 = vadd.f32 %v2969_v4, %v2968_v27  ;;  %v3750_v15 = vpop.eup %3749  ;;  %vm5849_vm14 = vcmp.lt.f32.partialorder %v2189_v34, 0.0004427343  ;;  %v7209_v18 = vsub.f32 0.0, %v5680_v23  ;;  %v5875_v4 = vpop.permute.xlu1 %3403 }
 0x224   :  { %vm5855_vm15 = vcmp.lt.f32.partialorder %v2171_v42, 0.0004427343  ;;  %v3752_v12 = vpop.eup %3751  ;;  %v2182_v20 = vsel %vm5838_vm13, %v5788_v6, %v2176_v48  ;;  %v2167_v34 = vmul.f32 0.6931472, %v3750_v15  ;;  %v1674_v13 = vmul.f32 1.442695, %v1553_v49  ;;  %902 = vrot.lane.b32.xlu0 %v6881_v31, %s3823_s21 }
 0x225   :  { %v1421_v27 = vmax.f32 %v7209_v18, 0.0  ;;  %v5859_v62 = vadd.f32 %v2971_v40, %v2970_v44  ;;  %v5869_v0 = vpop.eup %3753  ;;  %v1423_v42 = vmax.f32 %v1359_v1, 0.0  ;;  %v2192_v36 = vadd.f32 1.0, %v3752_v12  ;;  %7213 = vst [vmem:[#allocation48_spill] sm:$0xff] %v5875_v4  ;;  %v7214_v48 = vld [vmem:[#allocation79_spill] sm:$0xff] }
 0x226   :  { %v5873_v40 = vadd.f32 %v5426_v11, %v7212_v32  ;;  %v2191_v47 = vsel %vm5849_vm14, %v2188_v19, %v2185_v3  ;;  %v2173_v6 = vsel %vm5855_vm15, %v2170_v33, %v2167_v34  ;;  %3757 = vpow2.f32 %v1674_v13  ;;  %v5891_v33 = vpop.permute.xlu0 %910 }
 0x227   :  { %v5883_v46 = vadd.f32 %v5426_v11, %v7214_v48  ;;  %v2318_v1 = vadd.f32 %v2182_v20, %v5708_v29  ;;  %v2317_v44 = vadd.f32 %v2173_v6, %v1421_v27  ;;  %3759 = vlog2.f32 %v2192_v36  ;;  %7215 = vst [vmem:[#allocation53_spill] sm:$0xff] %v5891_v33  ;;  %v5896_v27 = vpop.permute.xlu1 %850 }
 0x228   :  { %v2195_v49 = vmul.f32 -0.5, %v3752_v12  ;;  %v2319_v18 = vadd.f32 %v2191_v47, %v1423_v42  ;;  %v2210_v3 = vadd.f32 1.0, %v5869_v0  ;;  %v1492_v19 = vand.u32 2147483647, %v5873_v40 }
 0x229   :  { %v5886_v15 = vpop.eup %3755  ;;  %v2435_v32 = vsel %vm2329_vm4, %v2317_v44, 0.0  ;;  %v1494_v34 = vand.u32 2147483647, %v5883_v46  ;;  %v2437_v29 = vsel %vm2329_vm4, %v2318_v1, 0.0  ;;  %v1360_v13 = vsub.f32 0.0, %v5769_v22  ;;  %v7216_v44 = vld [vmem:[#allocation61_spill] sm:$0xff] }
 0x22a   :  { %v2436_v25 = vadd.f32 %v2435_v32, %v2434_v35  ;;  %v2219_v2 = vadd.f32 1.0, %v5886_v15  ;;  %v2196_v42 = vadd.f32 1.0, %v2195_v49  ;;  %v2439_v36 = vsel %vm2329_vm4, %v2319_v18, 0.0  ;;  %v5901_v5 = vpop.permute.xlu0 %848 }
 0x22b   :  { %3761 = vlog2.f32 %v2210_v3  ;;  %v2198_v47 = vand.u32 2147483647, %v3752_v12  ;;  %v1556_v6 = vsub.f32 0.0, %v1492_v19  ;;  %v1558_v35 = vsub.f32 0.0, %v1494_v34 }
 0x22c   :  { %v2438_v20 = vadd.f32 %v2437_v29, %v2436_v25  ;;  %3763 = vlog2.f32 %v2219_v2  ;;  %v6882_v32 = vmax.f32 %v7216_v44, 0.0  ;;  %v2197_v31 = vmul.f32 %v3752_v12, %v2196_v42  ;;  %v5907_v25 = vpop.permute.xlu1 %914 }
 0x22d   :  { %v1680_v45 = vmul.f32 1.442695, %v1556_v6  ;;  %v6883_v49 = vmax.f32 %v5416_v57, 0.0  ;;  %v1424_v3 = vmax.f32 %v1360_v13, 0.0  ;;  %vm2199_vm0 = vcmp.lt.f32.partialorder %v2198_v47, 0.0004427343 }
 0x22e   :  { %v2440_v48 = vadd.f32 %v2439_v36, %v2438_v20  ;;  %932 = vrot.lane.b32.xlu1 %v6882_v32, %s3823_s21  ;;  %7217 = vst [vmem:[#allocation60_spill] sm:$0xff] %v5907_v25  ;;  %v2213_v2 = vmul.f32 -0.5, %v5869_v0  ;;  %v1684_v29 = vmul.f32 1.442695, %v1558_v35  ;;  %v2222_v12 = vmul.f32 -0.5, %v5886_v15  ;;  %v5923_v6 = vld [vmem:[%s6697_s0 + $0xb0] sm:$0xff]  }
 0x22f   :  { %3765 = vpow2.f32 %v1680_v45  ;;  %904 = vrot.lane.b32.xlu0 %v6883_v49, %s3823_s21  ;;  %v5916_v13 = vadd.f32 %v5426_v11, %v5470_v59  ;;  %v5918_v45 = vpop.permute.xlu0 %912  ;;  %7219 = vst [vmem:[#allocation59_spill] sm:$0xff] %v5923_v6  ;;  %v6888_v11 = vunpack.c.h.bf16 %v5923_v6  ;;  %v1361_v49 = vsub.f32 0.0, %v5820_v8 }
 0x230   :  { %v3758_v1 = vpop.eup %3757  ;;  %7218 = vst [vmem:[#allocation67_spill] sm:$0xff] %v5918_v45  ;;  %v2214_v47 = vadd.f32 1.0, %v2213_v2  ;;  %v5929_v59 = vpop.permute.xlu1 %852  ;;  %v1362_v2 = vsub.f32 0.0, %v5745_v7  ;;  %v7220_v9 = vunpack.c.l.bf16 %v5923_v6  ;;  %v1363_v25 = vsub.f32 0.0, %v5775_v61 }
 0x231   :  { %v3760_v18 = vpop.eup %3759  ;;  %v2201_v19 = vadd.f32 1.0, %v3758_v1  ;;  %v2204_v42 = vmul.f32 -0.5, %v3758_v1  ;;  %v2207_v35 = vand.u32 2147483647, %v3758_v1  ;;  %v1493_v44 = vand.u32 2147483647, %v5916_v13 }
 0x232   :  { %v2194_v34 = vmul.f32 0.6931472, %v3760_v18  ;;  %v2215_v4 = vmul.f32 %v5869_v0, %v2214_v47  ;;  %vm1167_vm9 = vcmask 64512   ;;  %vm47_vm11 = vcmask 57344  }
 0x233   :  { %3767 = vlog2.f32 %v2201_v19  ;;  %v2223_v19 = vadd.f32 1.0, %v2222_v12  ;;  %v2205_v32 = vadd.f32 1.0, %v2204_v42  ;;  %v3412_v12 = vpack.i.bf16 %v6888_v11, %v7220_v9  ;;  %v5947_v28 = vpop.permute.xlu0 %858 }
 0x234   :  { %v2200_v20 = vsel %vm2199_vm0, %v2197_v31, %v2194_v34  ;;  %3769 = vpow2.f32 %v1684_v29  ;;  %v2216_v31 = vand.u32 2147483647, %v5869_v0  ;;  %v1557_v33 = vsub.f32 0.0, %v1493_v44  ;;  %v5957_v6 = vpop.permute.xlu1 %916 }
 0x235   :  { %v2320_v36 = vadd.f32 %v2200_v20, %v1424_v3  ;;  %v3762_v18 = vpop.eup %3761  ;;  %v2225_v20 = vand.u32 2147483647, %v5886_v15  ;;  %3413 = vrot.lane.b32.xlu1 %v3412_v12, %s3822_s13  ;;  %v2206_v0 = vmul.f32 %v3758_v1, %v2205_v32  ;;  %v1425_v11 = vmax.f32 %v1361_v49, 0.0  ;;  %7227 = vst [vmem:[#allocation15_spill] sm:$0xff] %v5957_v6 }
 0x236   :  { %v3764_v34 = vpop.eup %3763  ;;  %vm5941_vm1 = vcmp.lt.f32.partialorder %v2216_v31, 0.0004427343  ;;  %vm5953_vm5 = vcmp.lt.f32.partialorder %v2207_v35, 0.0004427343  ;;  %v5970_v35 = vld [vmem:[%s6697_s0 + $0xa8] sm:$0xff]   ;;  %vm49_vm12 = vcmask 0  }
 0x237   :  { %v2441_v3 = vsel %vm2329_vm4, %v2320_v36, 0.0  ;;  %v2212_v36 = vmul.f32 0.6931472, %v3762_v18  ;;  %v2221_v42 = vmul.f32 0.6931472, %v3764_v34  ;;  %v1426_v18 = vmax.f32 %v1362_v2, 0.0 }
 0x238   :  { %v2442_v29 = vadd.f32 %v2441_v3, %v2440_v48  ;;  %v2224_v3 = vmul.f32 %v5886_v15, %v2223_v19  ;;  %vm5949_vm2 = vcmp.lt.f32.partialorder %v2225_v20, 0.0004427343  ;;  %v1682_v19 = vmul.f32 1.442695, %v1557_v33  ;;  %7228 = vst [vmem:[#allocation66_spill] sm:$0xff] %v5970_v35  ;;  %v7229_v48 = vld [vmem:[#allocation78_spill] sm:$0xff] }
 0x239   :  { %v3766_v45 = vpop.eup %3765  ;;  %v2218_v15 = vsel %vm5941_vm1, %v2215_v4, %v2212_v36  ;;  %v1427_v20 = vmax.f32 %v1363_v25, 0.0  ;;  %v6893_v4 = vunpack.c.l.bf16 %v5970_v35  ;;  %v6891_v2 = vunpack.c.h.bf16 %v5970_v35  ;;  %v5974_v36 = vpop.permute.xlu0 %854  ;;  %v7239_v35 = vld [vmem:[#allocation19_spill] sm:$0xff] }
 0x23a   :  { %v2228_v34 = vadd.f32 1.0, %v3766_v45  ;;  %v2227_v12 = vsel %vm5949_vm2, %v2224_v3, %v2221_v42  ;;  %v2231_v49 = vmul.f32 -0.5, %v3766_v45  ;;  %v2322_v33 = vadd.f32 %v2218_v15, %v1426_v18 }
 0x23b   :  { %v6892_v42 = vmax.f32 %v7229_v48, 0.0  ;;  %v2323_v3 = vadd.f32 %v2227_v12, %v1427_v20  ;;  %v1364_v15 = vsub.f32 0.0, %v5873_v40  ;;  %v7231_v20 = vld [vmem:[#allocation63_spill] sm:$0xff] }
 0x23c   :  { %3771 = vlog2.f32 %v2228_v34  ;;  %v2232_v34 = vadd.f32 1.0, %v2231_v49  ;;  %v2445_v18 = vsel %vm2329_vm4, %v2322_v33, 0.0  ;;  %v6894_v12 = vmax.f32 %v7231_v20, 0.0 }
 0x23d   :  { %v3768_v47 = vpop.eup %3767  ;;  %3773 = vpow2.f32 %v1682_v19  ;;  %938 = vrot.lane.b32.xlu1 %v6892_v42, %s3823_s21 }
 0x23e   :  { %v2203_v44 = vmul.f32 0.6931472, %v3768_v47  ;;  %v5963_v32 = vpop.eup %3769  ;;  %v5979_v47 = vpop.permute.xlu1 %922  ;;  %v2233_v49 = vmul.f32 %v3766_v45, %v2232_v34 }
 0x23f   :  { %7230 = vst [vmem:[#allocation71_spill] sm:$0xff] %v5979_v47 }
 0x240   :  { %v2209_v1 = vsel %vm5953_vm5, %v2206_v0, %v2203_v44  ;;  %v2246_v0 = vadd.f32 1.0, %v5963_v32  ;;  %v2234_v44 = vand.u32 2147483647, %v3766_v45  ;;  %v3787_v45 = vld [vmem:[%s6699_s2] ss:$0 sm:$0xff] }
 0x241   :  { %v2321_v25 = vadd.f32 %v2209_v1, %v1425_v11  ;;  %v3407_v11 = vpack.i.bf16 %v6891_v2, %v6893_v4  ;;  %v5993_v1 = vpop.permute.xlu0 %918  ;;  %v1428_v4 = vmax.f32 %v1364_v15, 0.0  ;;  %940 = vrot.lane.b32.xlu1 %v6894_v12, %s3823_s21 }
 0x242   :  { %3775 = vlog2.f32 %v2246_v0  ;;  %7232 = vst [vmem:[#allocation70_spill] sm:$0xff] %v5993_v1  ;;  %vm2235_vm6 = vcmp.lt.f32.partialorder %v2234_v44, 0.0004427343  ;;  %v5999_v33 = vpop.permute.xlu1 %860  ;;  %v7234_v0 = vld [vmem:[#allocation69_spill] sm:$0xff]  ;;  %v6899_v44 = vmax.f32 %v5430_v16, 0.0 }
 0x243   :  { %v2443_v9 = vsel %vm2329_vm4, %v2321_v25, 0.0  ;;  %3408 = vrot.lane.b32.xlu0 %v3407_v11, %s3822_s13  ;;  %v6008_v34 = vadd.f32 %v3787_v45, %v7234_v0  ;;  %v3355_v45 = vunpack.i.l.bf16 %v5735_v30 }
 0x244   :  { %v2444_v31 = vadd.f32 %v2443_v9, %v2442_v29  ;;  %v2447_v29 = vsel %vm2329_vm4, %v2323_v3, 0.0  ;;  %v7233_v9 = vld [vmem:[#allocation8_spill] sm:$0xff] }
 0x245   :  { %v6895_v2 = vmax.f32 %v7233_v9, 0.0  ;;  %v6018_v12 = vpop.permute.xlu0 %920  ;;  %v3356_v9 = vunpack.i.h.bf16 %v5735_v30 }
 0x246   :  { %v2446_v19 = vadd.f32 %v2445_v18, %v2444_v31  ;;  %v3772_v42 = vpop.eup %3771  ;;  %v2249_v18 = vmul.f32 -0.5, %v5963_v32  ;;  %7236 = vst [vmem:[#allocation17_spill] sm:$0xff] %v6018_v12  ;;  %v6027_v20 = vpop.permute.xlu1 %924 }
 0x247   :  { %v3774_v31 = vpop.eup %3773  ;;  %v2230_v3 = vmul.f32 0.6931472, %v3772_v42  ;;  %934 = vrot.lane.b32.xlu0 %v6895_v2, %s3823_s21  ;;  %v6015_v42 = vld [vmem:[%s6697_s0 + $0xc0] sm:$0xff]   ;;  %v1495_v2 = vand.u32 2147483647, %v6008_v34  ;;  %7237 = vst [vmem:[#allocation80_spill] sm:$0xff] %v6027_v20 }
 0x248   :  { %v2448_v25 = vadd.f32 %v2447_v29, %v2446_v19  ;;  %v2237_v11 = vadd.f32 1.0, %v3774_v31  ;;  %7235 = vst [vmem:[#allocation16_spill] sm:$0xff] %v6015_v42  ;;  %v2240_v0 = vmul.f32 -0.5, %v3774_v31  ;;  %v2250_v19 = vadd.f32 1.0, %v2249_v18 }
 0x249   :  { %v2236_v15 = vsel %vm2235_vm6, %v2233_v49, %v2230_v3  ;;  %v6903_v49 = vunpack.c.h.bf16 %v6015_v42  ;;  %v7240_v18 = vunpack.c.l.bf16 %v7239_v35  ;;  %v1559_v30 = vsub.f32 0.0, %v1495_v2  ;;  %v6047_v47 = vpop.permute.xlu0 %866 }
 0x24a   :  { %v2324_v29 = vadd.f32 %v2236_v15, %v1428_v4  ;;  %3777 = vlog2.f32 %v2237_v11  ;;  %v7238_v11 = vunpack.c.l.bf16 %v6015_v42  ;;  %v2241_v20 = vadd.f32 1.0, %v2240_v0  ;;  %v6059_v2 = vpop.permute.xlu1 %856 }
 0x24b   :  { %936 = vrot.lane.b32.xlu0 %v6899_v44, %s3823_s21  ;;  %v2252_v44 = vand.u32 2147483647, %v5963_v32  ;;  %v2243_v42 = vand.u32 2147483647, %v3774_v31  ;;  %v2251_v1 = vmul.f32 %v5963_v32, %v2250_v19  ;;  %v6910_v0 = vmax.f32 %v5468_v24, 0.0 }
 0x24c   :  { %v2449_v3 = vsel %vm2329_vm4, %v2324_v29, 0.0  ;;  %v3422_v15 = vpack.i.bf16 %v6903_v49, %v7238_v11  ;;  %v3776_v48 = vpop.eup %3775  ;;  %v6038_v29 = vld [vmem:[%s6697_s0 + $0xb8] sm:$0xff]   ;;  %v1365_v49 = vsub.f32 0.0, %v5916_v13  ;;  %v2242_v57 = vmul.f32 %v3774_v31, %v2241_v20 }
 0x24d   :  { %v2450_v4 = vadd.f32 %v2449_v3, %v2448_v25  ;;  %v6908_v16 = vunpack.c.l.bf16 %v6038_v29  ;;  %v2824_v25 = vsub.f32 %v7240_v18, %v3355_v45  ;;  %v1366_v3 = vsub.f32 0.0, %v5883_v46  ;;  %v6072_v31 = vpop.permute.xlu0 %862 }
 0x24e   :  { %3423 = vrot.lane.b32.xlu1 %v3422_v15, %s3822_s13  ;;  %v6909_v11 = vunpack.c.h.bf16 %v6038_v29  ;;  %v2248_v12 = vmul.f32 0.6931472, %v3776_v48  ;;  %vm6055_vm7 = vcmp.lt.f32.partialorder %v2252_v44, 0.0004427343  ;;  %v7243_v18 = vunpack.c.h.bf16 %v7239_v35  ;;  %v7245_v15 = vld [vmem:[#allocation21_spill] sm:$0xff] }
 0x24f   :  { %v2889_v53 = vand.u32 2147483647, %v2824_v25  ;;  %v1430_v48 = vmax.f32 %v1366_v3, 0.0  ;;  %v1686_v19 = vmul.f32 1.442695, %v1559_v30  ;;  %v3360_v44 = vunpack.i.l.bf16 %v5724_v51  ;;  %v7244_v25 = vld [vmem:[#allocation73_spill] sm:$0xff] }
 0x250   :  { %v3417_v45 = vpack.i.bf16 %v6909_v11, %v6908_v16  ;;  %v2825_v6 = vsub.f32 %v7243_v18, %v3356_v9  ;;  %v1429_v16 = vmax.f32 %v1365_v49, 0.0  ;;  %vm2244_vm8 = vcmp.lt.f32.partialorder %v2243_v42, 0.0004427343  ;;  %v6081_v49 = vpop.permute.xlu1 %868 }
 0x251   :  { %v2254_v11 = vsel %vm6055_vm7, %v2251_v1, %v2248_v12  ;;  %v6913_v9 = vmax.f32 %v5493_v58, 0.0  ;;  %v6911_v20 = vmax.f32 %v7244_v25, 0.0  ;;  %3779 = vpow2.f32 %v1686_v19 }
 0x252   :  { %3418 = vrot.lane.b32.xlu0 %v3417_v45, %s3822_s13  ;;  %946 = vrot.lane.b32.xlu1 %v6910_v0, %s3823_s21  ;;  %v2890_v3 = vand.u32 2147483647, %v2825_v6  ;;  %v2326_v42 = vadd.f32 %v2254_v11, %v1430_v48  ;;  %v3361_v12 = vunpack.i.h.bf16 %v5724_v51  ;;  %v2973_v30 = vsel %vm2933_vm3, %v2889_v53, 0.0  ;;  %v6099_v48 = vld [vmem:[%s6697_s0 + $0xd0] sm:$0xff]  }
 0x253   :  { %v7246_v6 = vunpack.c.l.bf16 %v7245_v15  ;;  %v6912_v18 = vmax.f32 %v5555_v54, 0.0  ;;  %v7247_v53 = vunpack.c.h.bf16 %v7245_v15  ;;  %7248 = vst [vmem:[#allocation79_spill] sm:$0xff] %v6099_v48  ;;  %v6917_v19 = vunpack.c.l.bf16 %v6099_v48 }
 0x254   :  { %v3778_v32 = vpop.eup %3777  ;;  %v2453_v51 = vsel %vm2329_vm4, %v2326_v42, 0.0  ;;  %v6111_v42 = vld [vmem:[%s6697_s0 + $0xc8] sm:$0xff]  }
 0x255   :  { %v2239_v35 = vmul.f32 0.6931472, %v3778_v32  ;;  %v2827_v11 = vsub.f32 %v7247_v53, %v3361_v12  ;;  %7249 = vst [vmem:[#allocation69_spill] sm:$0xff] %v6111_v42  ;;  %v6915_v12 = vunpack.c.l.bf16 %v6111_v42 }
 0x256   :  { %942 = vrot.lane.b32.xlu0 %v6913_v9, %s3823_s21  ;;  %948 = vrot.lane.b32.xlu1 %v6911_v20, %s3823_s21 }
 0x257   :  { %v2245_v45 = vsel %vm2244_vm8, %v2242_v57, %v2239_v35  ;;  %v2826_v57 = vsub.f32 %v7246_v6, %v3360_v44  ;;  %v2975_v35 = vsel %vm2933_vm3, %v2890_v3, 0.0  ;;  %v6102_v44 = vpop.permute.xlu0 %926  ;;  %v2892_v6 = vand.u32 2147483647, %v2827_v11 }
 0x258   :  { %v2325_v1 = vadd.f32 %v2245_v45, %v1429_v16  ;;  %v2974_v16 = vadd.f32 %v2973_v30, %v5859_v62  ;;  %v3365_v45 = vunpack.i.l.bf16 %v5760_v52  ;;  %v6914_v62 = vunpack.c.h.bf16 %v6099_v48  ;;  %v7262_v48 = vld [vmem:[#allocation31_spill] sm:$0xff] }
 0x259   :  { %v6920_v11 = vmax.f32 %v5614_v43, 0.0 }
 0x25a   :  { %v2451_v32 = vsel %vm2329_vm4, %v2325_v1, 0.0  ;;  %944 = vrot.lane.b32.xlu0 %v6912_v18, %s3823_s21  ;;  %v6114_v1 = vpop.permute.xlu1 %864  ;;  %v3432_v30 = vpack.i.bf16 %v6914_v62, %v6917_v19  ;;  %v2976_v15 = vadd.f32 %v2975_v35, %v2974_v16 }
 0x25b   :  { %v2452_v0 = vadd.f32 %v2451_v32, %v2450_v4  ;;  %v2891_v4 = vand.u32 2147483647, %v2826_v57  ;;  %v3366_v57 = vunpack.i.h.bf16 %v5760_v52  ;;  %v6130_v9 = vpop.eup %3779  ;;  %v6132_v62 = vpop.permute.xlu0 %874  ;;  %v7252_v52 = vld [vmem:[#allocation29_spill] sm:$0xff] }
 0x25c   :  { %3433 = vrot.lane.b32.xlu1 %v3432_v30, %s3822_s13  ;;  %v7253_v35 = vmax.f32 %v7252_v52, 0.0  ;;  %v2255_v19 = vadd.f32 1.0, %v6130_v9 }
 0x25d   :  { %v6104_v3 = vadd.f32 %v2453_v51, %v2452_v0  ;;  %v6916_v0 = vunpack.c.h.bf16 %v6111_v42  ;;  %v2977_v32 = vsel %vm2933_vm3, %v2891_v4, 0.0  ;;  %v7250_v51 = vld [vmem:[#allocation22_spill] sm:$0xff]  ;;  %v1367_v4 = vsub.f32 0.0, %v6008_v34 }
 0x25e   :  { %v7251_v53 = vunpack.c.l.bf16 %v7250_v51  ;;  %v1038_v16 = vsub.f32 %v7253_v35, %v5861_v26  ;;  %v2978_v30 = vadd.f32 %v2977_v32, %v2976_v15  ;;  %v6921_v26 = vmax.f32 %v5629_v56, 0.0 }
 0x25f   :  { %v3427_v18 = vpack.i.bf16 %v6916_v0, %v6915_v12  ;;  %v6143_v0 = vpop.permute.xlu1 %876  ;;  %v3371_v15 = vunpack.i.h.bf16 %v5747_v14  ;;  %3781 = vlog2.f32 %v2255_v19  ;;  %v7263_v19 = vmax.f32 %v7262_v48, 0.0 }
 0x260   :  { %v2828_v20 = vsub.f32 %v7251_v53, %v3365_v45  ;;  %v2979_v45 = vsel %vm2933_vm3, %v2892_v6, 0.0  ;;  %v7254_v53 = vunpack.c.h.bf16 %v7250_v51  ;;  %954 = vrot.lane.b32.xlu1 %v6920_v11, %s3823_s21  ;;  %v7257_v6 = vld [vmem:[#allocation26_spill] sm:$0xff]  ;;  %v1103_v11 = vmul.f32 %v1038_v16, %v1038_v16 }
 0x261   :  { %3428 = vrot.lane.b32.xlu0 %v3427_v18, %s3822_s13  ;;  %v7255_v18 = vld [vmem:[#allocation32_spill] sm:$0xff]  ;;  %v1041_v25 = vsub.f32 %v7263_v19, %v5929_v59 }
 0x262   :  { %v2829_v12 = vsub.f32 %v7254_v53, %v3366_v57  ;;  %v2893_v42 = vand.u32 2147483647, %v2828_v20  ;;  %v7256_v52 = vmax.f32 %v7255_v18, 0.0  ;;  %v7258_v57 = vmax.f32 %v7257_v6, 0.0  ;;  %v6160_v20 = vld [vmem:[%s6697_s0 + $0xe0] sm:$0xff]   ;;  %v6177_v53 = vpop.permute.xlu0 %870 }
 0x263   :  { %7259 = vst [vmem:[#allocation19_spill] sm:$0xff] %v6160_v20  ;;  %v6931_v51 = vunpack.c.l.bf16 %v6160_v20  ;;  %v2258_v6 = vmul.f32 -0.5, %v6130_v9  ;;  %v6192_v54 = vpop.permute.xlu1 %872  ;;  %v1168_v24 = vsel %vm1167_vm9, %v1103_v11, 0.0 }
 0x264   :  { %v1039_v35 = vsub.f32 %v7256_v52, %v5901_v5  ;;  %v1040_v32 = vsub.f32 %v7258_v57, %v5896_v27  ;;  %v6928_v5 = vmax.f32 %v5650_v37, 0.0  ;;  %v6171_v27 = vld [vmem:[%s6697_s0 + $0xd8] sm:$0xff]   ;;  %v3370_v57 = vunpack.i.l.bf16 %v5747_v14 }
 0x265   :  { %950 = vrot.lane.b32.xlu0 %v6921_v26, %s3823_s21  ;;  %7260 = vst [vmem:[#allocation21_spill] sm:$0xff] %v6171_v27  ;;  %v7261_v52 = vunpack.c.h.bf16 %v6160_v20  ;;  %v2980_v14 = vadd.f32 %v2979_v45, %v2978_v30  ;;  %v2894_v56 = vand.u32 2147483647, %v2829_v12  ;;  %v2981_v16 = vsel %vm2933_vm3, %v2893_v42, 0.0 }
 0x266   :  { %v1104_v18 = vmul.f32 %v1039_v35, %v1039_v35  ;;  %956 = vrot.lane.b32.xlu1 %v6928_v5, %s3823_s21  ;;  %v7264_v5 = vld [vmem:[#allocation23_spill] sm:$0xff]  ;;  %v7267_v12 = vunpack.c.l.bf16 %v6171_v27  ;;  %v7268_v42 = vunpack.c.h.bf16 %v6171_v27  ;;  %v2259_v48 = vadd.f32 1.0, %v2258_v6 }
 0x267   :  { %v3442_v43 = vpack.i.bf16 %v7261_v52, %v6931_v51  ;;  %v7265_v37 = vunpack.c.h.bf16 %v7264_v5  ;;  %v7266_v52 = vmax.f32 %v5680_v23, 0.0  ;;  %v7269_v59 = vunpack.c.l.bf16 %v7264_v5 }
 0x268   :  { %v1169_v26 = vsel %vm1167_vm9, %v1104_v18, 0.0  ;;  %v1105_v18 = vmul.f32 %v1040_v32, %v1040_v32  ;;  %v3437_v45 = vpack.i.bf16 %v7268_v42, %v7267_v12  ;;  %v6208_v51 = vmax.f32 %v1367_v4, 0.0  ;;  %v6216_v12 = vpop.permute.xlu0 %882 }
 0x269   :  { %v6196_v35 = vsub.f32 %v7265_v37, %v3371_v15  ;;  %952 = vrot.lane.b32.xlu0 %v7266_v52, %s3823_s21  ;;  %v2830_v30 = vsub.f32 %v7269_v59, %v3370_v57  ;;  %v1170_v19 = vadd.f32 %v1169_v26, %v1168_v24  ;;  %v7270_v37 = vld [vmem:[#allocation45_spill] sm:$0xff]  ;;  %v2261_v32 = vand.u32 2147483647, %v6130_v9  ;;  %v6226_v57 = vpop.permute.xlu1 %884 }
 0x26a   :  { %3443 = vrot.lane.b32.xlu1 %v3442_v43, %s3822_s13  ;;  %v7271_v11 = vmax.f32 %v7270_v37, 0.0  ;;  %v2983_v52 = vsel %vm2933_vm3, %v2894_v56, 0.0  ;;  %v2982_v20 = vadd.f32 %v2981_v16, %v2980_v14  ;;  %v1106_v27 = vmul.f32 %v1041_v25, %v1041_v25  ;;  %v7272_v16 = vld [vmem:[#allocation34_spill] sm:$0xff] }
 0x26b   :  { %v2896_v5 = vand.u32 2147483647, %v6196_v35  ;;  %v1171_v24 = vsel %vm1167_vm9, %v1105_v18, 0.0  ;;  %v6936_v43 = vmax.f32 %v5745_v7, 0.0  ;;  %v6223_v26 = vmul.f32 %v6130_v9, %v2259_v48  ;;  %v6238_v9 = vld [vmem:[%s6697_s0 + $0xf0] sm:$0xff]  }
 0x26c   :  { %v1042_v15 = vsub.f32 %v7271_v11, %v5974_v36  ;;  %v2895_v36 = vand.u32 2147483647, %v2830_v30  ;;  %v3375_v6 = vunpack.i.l.bf16 %v5777_v60  ;;  %v1172_v56 = vadd.f32 %v1171_v24, %v1170_v19  ;;  %7274 = vst [vmem:[#allocation22_spill] sm:$0xff] %v6238_v9  ;;  %v7275_v30 = vld [vmem:[#allocation46_spill] sm:$0xff]  ;;  %v3782_v11 = vpop.eup %3781 }
 0x26d   :  { %3438 = vrot.lane.b32.xlu0 %v3437_v45, %s3822_s13  ;;  %v6937_v25 = vmax.f32 %v5769_v22, 0.0  ;;  %v7273_v35 = vmax.f32 %v7272_v16, 0.0  ;;  %v6938_v18 = vunpack.c.l.bf16 %v6238_v9  ;;  %v2984_v45 = vadd.f32 %v2983_v52, %v2982_v20  ;;  %v7277_v52 = vld [vmem:[#allocation49_spill] sm:$0xff] }
 0x26e   :  { %v1107_v4 = vmul.f32 %v1042_v15, %v1042_v15  ;;  %962 = vrot.lane.b32.xlu1 %v6936_v43, %s3823_s21  ;;  %v1173_v48 = vsel %vm1167_vm9, %v1106_v27, 0.0  ;;  %v6939_v59 = vmax.f32 %v5775_v61, 0.0  ;;  %v7276_v19 = vmax.f32 %v7275_v30, 0.0  ;;  %v6254_v15 = vld [vmem:[%s6697_s0 + $0xe8] sm:$0xff]   ;;  %v7279_v30 = vld [vmem:[#allocation24_spill] sm:$0xff] }
 0x26f   :  { %v1044_v14 = vsub.f32 %v7273_v35, %v5947_v28  ;;  %v7278_v24 = vmax.f32 %v7277_v52, 0.0  ;;  %v2985_v16 = vsel %vm2933_vm3, %v2895_v36, 0.0  ;;  %v3376_v35 = vunpack.i.h.bf16 %v5777_v60 }
 0x270   :  { %v1045_v37 = vsub.f32 %v7276_v19, %v5999_v33  ;;  %v1175_v28 = vsel %vm1167_vm9, %v1107_v4, 0.0  ;;  %v7280_v19 = vunpack.c.l.bf16 %v7279_v30  ;;  %v1174_v43 = vadd.f32 %v1173_v48, %v1172_v56 }
 0x271   :  { %958 = vrot.lane.b32.xlu0 %v6937_v25, %s3823_s21  ;;  %v1043_v33 = vsub.f32 %v7278_v24, %v6059_v2  ;;  %v6265_v25 = vpop.permute.xlu0 %878  ;;  %v1109_v42 = vmul.f32 %v1044_v14, %v1044_v14  ;;  %v6942_v27 = vmax.f32 %v5820_v8, 0.0  ;;  %v7281_v2 = vunpack.c.h.bf16 %v6238_v9  ;;  %v6278_v14 = vpop.permute.xlu1 %880 }
 0x272   :  { %v2832_v4 = vsub.f32 %v7280_v19, %v3375_v6  ;;  %964 = vrot.lane.b32.xlu1 %v6939_v59, %s3823_s21  ;;  %v2257_v60 = vmul.f32 0.6931472, %v3782_v11  ;;  %v1110_v24 = vmul.f32 %v1045_v37, %v1045_v37  ;;  %v1176_v20 = vadd.f32 %v1175_v28, %v1174_v43  ;;  %v7282_v6 = vld [vmem:[#allocation57_spill] sm:$0xff]  ;;  %v7288_v28 = vld [vmem:[#allocation62_spill] sm:$0xff] }
 0x273   :  { %v3452_v36 = vpack.i.bf16 %v7281_v2, %v6938_v18  ;;  %v1108_v52 = vmul.f32 %v1043_v33, %v1043_v33  ;;  %v7283_v56 = vmax.f32 %v7282_v6, 0.0  ;;  %vm6280_vm10 = vcmp.lt.f32.partialorder %v2261_v32, 0.0004427343 }
 0x274   :  { %v7286_v2 = vunpack.c.l.bf16 %v6254_v15  ;;  %v7287_v11 = vunpack.c.h.bf16 %v6254_v15  ;;  %v2987_v32 = vsel %vm2933_vm3, %v2896_v5, 0.0  ;;  %v7290_v6 = vunpack.c.h.bf16 %v7279_v30 }
 0x275   :  { %v1046_v48 = vsub.f32 %v7283_v56, %v6072_v31  ;;  %960 = vrot.lane.b32.xlu0 %v6942_v27, %s3823_s21  ;;  %v1177_v43 = vsel %vm1167_vm9, %v1108_v52, 0.0  ;;  %v7289_v31 = vmax.f32 %v7288_v28, 0.0  ;;  %v2986_v9 = vadd.f32 %v2985_v16, %v2984_v45  ;;  %v6310_v16 = vpop.permute.xlu0 %890 }
 0x276   :  { %v3447_v37 = vpack.i.bf16 %v7287_v11, %v7286_v2  ;;  %v2833_v56 = vsub.f32 %v7290_v6, %v3376_v35  ;;  %v1178_v18 = vadd.f32 %v1177_v43, %v1176_v20  ;;  %v2897_v27 = vand.u32 2147483647, %v2832_v4  ;;  %3453 = vrot.lane.b32.xlu1 %v3452_v36, %s3822_s13  ;;  %v7291_v2 = vld [vmem:[#allocation51_spill] sm:$0xff]  ;;  %v7293_v20 = vld [vmem:[#allocation58_spill] sm:$0xff] }
 0x277   :  { %v1047_v33 = vsub.f32 %v7289_v31, %v6114_v1  ;;  %v1111_v59 = vmul.f32 %v1046_v48, %v1046_v48  ;;  %v1179_v61 = vsel %vm1167_vm9, %v1109_v42, 0.0  ;;  %v7292_v52 = vmax.f32 %v7291_v2, 0.0  ;;  %v7295_v36 = vld [vmem:[#allocation38_spill] sm:$0xff] }
 0x278   :  { %v2263_v1 = vsel %vm6280_vm10, %v6223_v26, %v2257_v60  ;;  %v1181_v5 = vsel %vm1167_vm9, %v1110_v24, 0.0  ;;  %v1180_v30 = vadd.f32 %v1179_v61, %v1178_v18  ;;  %v7294_v35 = vmax.f32 %v7293_v20, 0.0  ;;  %v6318_v61 = vpop.permute.xlu1 %892 }
 0x279   :  { %v1048_v11 = vsub.f32 %v7292_v52, %v6047_v47  ;;  %3448 = vrot.lane.b32.xlu0 %v3447_v37, %s3822_s13  ;;  %v780_v42 = vmax.f32 %v5883_v46, 0.0  ;;  %v1112_v4 = vmul.f32 %v1047_v33, %v1047_v33  ;;  %v1183_v47 = vsel %vm1167_vm9, %v1111_v59, 0.0  ;;  %v7297_v33 = vld [vmem:[#allocation40_spill] sm:$0xff] }
 0x27a   :  { %v1049_v45 = vsub.f32 %v7294_v35, %v6081_v49  ;;  %v7296_v48 = vmax.f32 %v7295_v36, 0.0  ;;  %v2898_v60 = vand.u32 2147483647, %v2833_v56  ;;  %v1182_v24 = vadd.f32 %v1181_v5, %v1180_v30 }
 0x27b   :  { %v2327_v18 = vadd.f32 %v2263_v1, %v6208_v51  ;;  %v2988_v49 = vadd.f32 %v2987_v32, %v2986_v9  ;;  %970 = vrot.lane.b32.xlu1 %v780_v42, %s3823_s21  ;;  %v778_v19 = vmax.f32 %v5873_v40, 0.0  ;;  %v1113_v37 = vmul.f32 %v1048_v11, %v1048_v11  ;;  %v6333_v51 = vld [vmem:[%s6697_s0 + $0xf8] sm:$0xff]   ;;  %v887_v1 = vpop.permute.xlu0 %886 }
 0x27c   :  { %v1050_v26 = vsub.f32 %v7296_v48, %v6177_v53  ;;  %v2989_v59 = vsel %vm2933_vm3, %v2897_v27, 0.0  ;;  %v781_v43 = vmax.f32 %v6008_v34, 0.0  ;;  %v1114_v28 = vmul.f32 %v1049_v45, %v1049_v45 }
 0x27d   :  { %v1184_v53 = vadd.f32 %v1183_v47, %v1182_v24  ;;  %966 = vrot.lane.b32.xlu0 %v778_v19, %s3823_s21  ;;  %v2546_v9 = vunpack.c.l.bf16 %v6333_v51  ;;  %v1185_v31 = vsel %vm1167_vm9, %v1112_v4, 0.0  ;;  %v7298_v27 = vmax.f32 %v7297_v33, 0.0  ;;  %v7301_v47 = vld [vmem:[#allocation39_spill] sm:$0xff] }
 0x27e   :  { %v1115_v6 = vmul.f32 %v1050_v26, %v1050_v26  ;;  %v2991_v56 = vsel %vm2933_vm3, %v2898_v60, 0.0  ;;  %v3381_v2 = vunpack.i.h.bf16 %v5779_v17  ;;  %v3380_v52 = vunpack.i.l.bf16 %v5779_v17  ;;  %v889_v26 = vpop.permute.xlu1 %888 }
 0x27f   :  { %v1051_v32 = vsub.f32 %v7298_v27, %v6192_v54  ;;  %v1186_v11 = vadd.f32 %v1185_v31, %v1184_v53  ;;  %v2455_v5 = vsel %vm2329_vm4, %v2327_v18, 0.0  ;;  %v2990_v30 = vadd.f32 %v2989_v59, %v2988_v49  ;;  %972 = vrot.lane.b32.xlu1 %v781_v43, %s3823_s21  ;;  %v7299_v54 = vld [vmem:[#allocation37_spill] sm:$0xff]  ;;  %v7303_v49 = vld [vmem:[#allocation42_spill] sm:$0xff] }
 0x280   :  { %v1187_v20 = vsel %vm1167_vm9, %v1113_v37, 0.0  ;;  %v7300_v35 = vmax.f32 %v7299_v54, 0.0  ;;  %v1189_v4 = vsel %vm1167_vm9, %v1114_v28, 0.0  ;;  %v7302_v17 = vmax.f32 %v7301_v47, 0.0  ;;  %v7305_v59 = vld [vmem:[#allocation25_spill] sm:$0xff] }
 0x281   :  { %v1188_v48 = vadd.f32 %v1187_v20, %v1186_v11  ;;  %v2456_v60 = vadd.f32 %v2455_v5, %v6104_v3  ;;  %2736 = vrot.lane.b32.xlu0 %v2546_v9, %s3822_s13  ;;  %v1116_v24 = vmul.f32 %v1051_v32, %v1051_v32  ;;  %v1191_v18 = vsel %vm1167_vm9, %v1115_v6, 0.0 }
 0x282   :  { %v1052_v45 = vsub.f32 %v7300_v35, %v6132_v62  ;;  %v1053_v36 = vsub.f32 %v7302_v17, %v6143_v0  ;;  %v7304_v62 = vmax.f32 %v7303_v49, 0.0  ;;  %v7306_v28 = vunpack.c.h.bf16 %v7305_v59  ;;  %v7308_v35 = vld [vmem:[#allocation44_spill] sm:$0xff] }
 0x283   :  { %v7307_v0 = vunpack.c.l.bf16 %v7305_v59  ;;  %v1190_v33 = vadd.f32 %v1189_v4, %v1188_v48  ;;  %v2457_v27 = vrot.slane %v2456_v60, 4  ;;  %v779_v3 = vmax.f32 %v5916_v13, 0.0 }
 0x284   :  { %v1054_v37 = vsub.f32 %v7304_v62, %v6265_v25  ;;  %v2835_v53 = vsub.f32 %v7306_v28, %v3381_v2  ;;  %v1117_v11 = vmul.f32 %v1052_v45, %v1052_v45  ;;  %v3824_v5 = vmov 1966171168   ;;  %v6372_v2 = vpop.permute.xlu0 %898  ;;  %v6379_v62 = vpop.permute.xlu1 %900 }
 0x285   :  { %v2834_v31 = vsub.f32 %v7307_v0, %v3380_v52  ;;  %v2465_v20 = vunpack.c.l.s4 %v3824_v5  ;;  %v2467_v32 = vlaneseq  ;;  %v3385_v6 = vunpack.i.l.bf16 %v5807_v38  ;;  %968 = vrot.lane.b32.xlu0 %v779_v3, %s3823_s21  ;;  %v7310_v0 = vld [vmem:[#allocation43_spill] sm:$0xff]  ;;  %v7312_v5 = vld [vmem:[#allocation41_spill] sm:$0xff] }
 0x286   :  { %v1192_v54 = vadd.f32 %v1191_v18, %v1190_v33  ;;  %v7309_v25 = vmax.f32 %v7308_v35, 0.0  ;;  %v2458_v17 = vadd.f32 %v2457_v27, %v2456_v60  ;;  %v2547_v52 = vunpack.c.h.bf16 %v6333_v51 }
 0x287   :  { %v1118_v45 = vmul.f32 %v1053_v36, %v1053_v36  ;;  %v1193_v4 = vsel %vm1167_vm9, %v1116_v24, 0.0  ;;  %v1119_v48 = vmul.f32 %v1054_v37, %v1054_v37  ;;  %v2466_v59 = vunpack.c.0.s8 %v2465_v20 }
 0x288   :  { %v1055_v47 = vsub.f32 %v7309_v25, %v6278_v14  ;;  %v1194_v49 = vadd.f32 %v1193_v4, %v1192_v54  ;;  %v2459_v18 = vrot.slane %v2458_v17, 2  ;;  %v2468_v28 = vshrl.u32 %v2467_v32, 7 }
 0x289   :  { %v2899_v14 = vand.u32 2147483647, %v2834_v31  ;;  %v1195_v60 = vsel %vm1167_vm9, %v1117_v11, 0.0  ;;  %v7311_v33 = vmax.f32 %v7310_v0, 0.0  ;;  %v7313_v35 = vmax.f32 %v7312_v5, 0.0  ;;  %2738 = vrot.lane.b32.xlu0 %v2547_v52, %s3822_s13  ;;  %v7317_v5 = vld [vmem:[#allocation77_spill] sm:$0xff] }
 0x28a   :  { %v1120_v25 = vmul.f32 %v1055_v47, %v1055_v47  ;;  %v1196_v24 = vadd.f32 %v1195_v60, %v1194_v49  ;;  %v2460_v37 = vadd.f32 %v2459_v18, %v2458_v17  ;;  %v2992_v54 = vadd.f32 %v2991_v56, %v2990_v30  ;;  %v7315_v17 = vld [vmem:[#allocation6_spill] sm:$0xff] }
 0x28b   :  { %v1057_v27 = vsub.f32 %v7311_v33, %v6226_v57  ;;  %v1056_v36 = vsub.f32 %v7313_v35, %v6216_v12  ;;  %v1197_v31 = vsel %vm1167_vm9, %v1118_v45, 0.0  ;;  %v1199_v11 = vsel %vm1167_vm9, %v1119_v48, 0.0  ;;  %v895_v12 = vpop.permute.xlu0 %894 }
 0x28c   :  { %v7314_v20 = vmax.f32 %v5035_v55, 0.0  ;;  %v2900_v57 = vand.u32 2147483647, %v2835_v53  ;;  %v1198_v4 = vadd.f32 %v1197_v31, %v1196_v24  ;;  %v2461_v0 = vrot.slane %v2460_v37, 1 }
 0x28d   :  { %v2469_v33 = vsub.s32 %v2466_v59, %v2468_v28  ;;  %v2993_v47 = vsel %vm2933_vm3, %v2899_v14, 0.0  ;;  %v7316_v56 = vunpack.c.l.bf16 %v7315_v17  ;;  %v1122_v49 = vmul.f32 %v1057_v27, %v1057_v27 }
 0x28e   :  { %v1058_v32 = vsub.f32 %v7314_v20, %v887_v1  ;;  %v1121_v18 = vmul.f32 %v1056_v36, %v1056_v36  ;;  %v1201_v60 = vsel %vm1167_vm9, %v1120_v25, 0.0  ;;  %v1200_v45 = vadd.f32 %v1199_v11, %v1198_v4  ;;  %v897_v1 = vpop.permute.xlu1 %896  ;;  %v7321_v4 = vld [vmem:[#allocation76_spill] sm:$0xff] }
 0x28f   :  { %v2836_v30 = vsub.f32 %v7316_v56, %v3385_v6  ;;  %v7318_v48 = vmax.f32 %v7317_v5, 0.0  ;;  %v2462_v55 = vadd.f32 %v2461_v0, %v2460_v37  ;;  %vm45_vm4 = vcmask 286720  }
 0x290   :  { %v1123_v53 = vmul.f32 %v1058_v32, %v1058_v32  ;;  %v3386_v59 = vunpack.i.h.bf16 %v5807_v38  ;;  %v1202_v28 = vadd.f32 %v1201_v60, %v1200_v45  ;;  %v3825_v24 = vmov 0.0   ;;  %v7319_v38 = vld [vmem:[#allocation75_spill] sm:$0xff]  ;;  %v6417_v32 = vpop.permute.xlu0 %928 }
 0x291   :  { %v1059_v35 = vsub.f32 %v7318_v48, %v889_v26  ;;  %v2470_v14 = vrot.slane %v2462_v55, %v2469_v33  ;;  %46 = vst.msk [vmem:[%s6700_s3] sm:$0x1] %vm45_vm4, %v3825_v24  ;;  %v2995_v26 = vsel %vm2933_vm3, %v2900_v57, 0.0  ;;  %v2994_v6 = vadd.f32 %v2993_v47, %v2992_v54 }
 0x292   :  { %48 = vst.msk [vmem:[%s6701_s4] sm:$0x1] %vm47_vm11, %v3825_v24  ;;  %v1203_v27 = vsel %vm1167_vm9, %v1121_v18, 0.0  ;;  %v7320_v36 = vmax.f32 %v7319_v38, 0.0  ;;  %v2901_v37 = vand.u32 2147483647, %v2836_v30  ;;  %v3390_v30 = vunpack.i.l.bf16 %v5801_v63 }
 0x293   :  { %50 = vst.msk [vmem:[#allocation2] sm:$0x1] %vm49_vm12, %v3825_v24  ;;  %v1205_v31 = vsel %vm1167_vm9, %v1122_v49, 0.0  ;;  %v2477_v11 = vrot.slane %v2470_v14, %v2469_v33  ;;  %v1204_v20 = vadd.f32 %v1203_v27, %v1202_v28  ;;  %v7322_v0 = vmax.f32 %v7321_v4, 0.0  ;;  %v6428_v49 = vpop.permute.xlu1 %930  ;;  %v7326_v28 = vld [vmem:[#allocation12_spill] sm:$0xff] }
 0x294   :  { %v1060_v25 = vsub.f32 %v7320_v36, %v6310_v16  ;;  %v1124_v54 = vmul.f32 %v1059_v35, %v1059_v35  ;;  %v1207_v47 = vsel %vm1167_vm9, %v1123_v53, 0.0  ;;  %v7323_v56 = vmax.f32 %v5184_v39, 0.0 }
 0x295   :  { %v1061_v57 = vsub.f32 %v7322_v0, %v6318_v61  ;;  %v7324_v16 = vunpack.c.h.bf16 %v7315_v17  ;;  %2478 = vrot.lane.b32.xlu1 %v2477_v11, %s3826_s26  ;;  %v1206_v33 = vadd.f32 %v1205_v31, %v1204_v20  ;;  %v2996_v5 = vadd.f32 %v2995_v26, %v2994_v6 }
 0x296   :  { %v1062_v18 = vsub.f32 %v7323_v56, %v895_v12  ;;  %v1125_v45 = vmul.f32 %v1060_v25, %v1060_v25  ;;  %v2997_v61 = vsel %vm2933_vm3, %v2901_v37, 0.0  ;;  %v1209_v55 = vsel %vm1167_vm9, %v1124_v54, 0.0  ;;  %v903_v38 = vpop.permute.xlu0 %902 }
 0x297   :  { %v2837_v60 = vsub.f32 %v7324_v16, %v3386_v59  ;;  %v1208_v48 = vadd.f32 %v1207_v47, %v1206_v33  ;;  %v1126_v35 = vmul.f32 %v1061_v57, %v1061_v57  ;;  %v7325_v39 = vmax.f32 %v5239_v41, 0.0  ;;  %v7329_v41 = vld [vmem:[#allocation5_spill] sm:$0xff] }
 0x298   :  { %v1127_v17 = vmul.f32 %v1062_v18, %v1062_v18  ;;  %v3391_v59 = vunpack.i.h.bf16 %v5801_v63  ;;  %v7327_v14 = vunpack.c.l.bf16 %v7326_v28  ;;  %v1211_v26 = vsel %vm1167_vm9, %v1125_v45, 0.0  ;;  %v907_v63 = vpop.permute.xlu1 %906 }
 0x299   :  { %v1063_v12 = vsub.f32 %v7325_v39, %v897_v1  ;;  %v2902_v53 = vand.u32 2147483647, %v2837_v60  ;;  %v1210_v27 = vadd.f32 %v1209_v55, %v1208_v48  ;;  %v7328_v6 = vmax.f32 %v5152_v21, 0.0  ;;  %v7333_v60 = vld [vmem:[#allocation14_spill] sm:$0xff] }
 0x29a   :  { %v2838_v24 = vsub.f32 %v7327_v14, %v3390_v30  ;;  %v2998_v25 = vadd.f32 %v2997_v61, %v2996_v5  ;;  %v3395_v37 = vunpack.i.l.bf16 %v5832_v50  ;;  %v7330_v1 = vmax.f32 %v7329_v41, 0.0  ;;  %v7340_v41 = vld [vmem:[#allocation64_spill] sm:$0xff] }
 0x29b   :  { %v1064_v36 = vsub.f32 %v7328_v6, %v6372_v2  ;;  %v1212_v11 = vadd.f32 %v1211_v26, %v1210_v27  ;;  %v1213_v20 = vsel %vm1167_vm9, %v1126_v35, 0.0  ;;  %v1128_v4 = vmul.f32 %v1063_v12, %v1063_v12  ;;  %v7338_v26 = vld [vmem:[#allocation9_spill] sm:$0xff] }
 0x29c   :  { %v1065_v31 = vsub.f32 %v7330_v1, %v6379_v62  ;;  %v1215_v0 = vsel %vm1167_vm9, %v1127_v17, 0.0  ;;  %v7331_v57 = vmax.f32 %v5315_v10, 0.0  ;;  %v2999_v21 = vsel %vm2933_vm3, %v2902_v53, 0.0  ;;  %v909_v12 = vpop.permute.xlu1 %908  ;;  %v7335_v53 = vld [vmem:[#allocation7_spill] sm:$0xff] }
 0x29d   :  { %v7332_v2 = vunpack.c.h.bf16 %v7326_v28  ;;  %v2903_v56 = vand.u32 2147483647, %v2838_v24  ;;  %v1214_v18 = vadd.f32 %v1213_v20, %v1212_v11  ;;  %v1129_v16 = vmul.f32 %v1064_v36, %v1064_v36 }
 0x29e   :  { %v1066_v54 = vsub.f32 %v7331_v57, %v903_v38  ;;  %v3396_v62 = vunpack.i.h.bf16 %v5832_v50  ;;  %v7334_v30 = vunpack.c.l.bf16 %v7333_v60  ;;  %v3000_v5 = vadd.f32 %v2999_v21, %v2998_v25  ;;  %v7344_v21 = vld [vmem:[#allocation28_spill] sm:$0xff] }
 0x29f   :  { %v2839_v47 = vsub.f32 %v7332_v2, %v3391_v59  ;;  %v1216_v45 = vadd.f32 %v1215_v0, %v1214_v18  ;;  %v1130_v61 = vmul.f32 %v1065_v31, %v1065_v31  ;;  %v1217_v48 = vsel %vm1167_vm9, %v1128_v4, 0.0 }
 0x2a0   :  { %v2840_v33 = vsub.f32 %v7334_v30, %v3395_v37  ;;  %v1131_v10 = vmul.f32 %v1066_v54, %v1066_v54  ;;  %v3001_v55 = vsel %vm2933_vm3, %v2903_v56, 0.0  ;;  %v1219_v17 = vsel %vm1167_vm9, %v1129_v16, 0.0  ;;  %v7343_v54 = vld [vmem:[#allocation53_spill] sm:$0xff]  ;;  %v7346_v30 = vld [vmem:[#allocation67_spill] sm:$0xff] }
 0x2a1   :  { %v2904_v35 = vand.u32 2147483647, %v2839_v47  ;;  %v1218_v39 = vadd.f32 %v1217_v48, %v1216_v45  ;;  %v7336_v59 = vmax.f32 %v7335_v53, 0.0  ;;  %v905_v50 = vpop.permute.xlu0 %904  ;;  %v7337_v14 = vunpack.c.h.bf16 %v7333_v60  ;;  %v7352_v53 = vld [vmem:[#allocation27_spill] sm:$0xff] }
 0x2a2   :  { %v2905_v27 = vand.u32 2147483647, %v2840_v33  ;;  %v7339_v6 = vmax.f32 %v7338_v26, 0.0  ;;  %v3002_v25 = vadd.f32 %v3001_v55, %v3000_v5  ;;  %v1221_v37 = vsel %vm1167_vm9, %v1130_v61, 0.0  ;;  %v7347_v33 = vld [vmem:[#allocation33_spill] sm:$0xff] }
 0x2a3   :  { %v1068_v28 = vsub.f32 %v7336_v59, %v907_v63  ;;  %v2841_v24 = vsub.f32 %v7337_v14, %v3396_v62  ;;  %v1220_v38 = vadd.f32 %v1219_v17, %v1218_v39  ;;  %v7341_v1 = vmax.f32 %v7340_v41, 0.0  ;;  %v7342_v63 = vld [vmem:[#allocation54_spill] sm:$0xff]  ;;  %v7351_v17 = vld [vmem:[#allocation60_spill] sm:$0xff] }
 0x2a4   :  { %v1067_v36 = vsub.f32 %v7339_v6, %v905_v50  ;;  %v1223_v11 = vsel %vm1167_vm9, %v1131_v10, 0.0  ;;  %v3003_v20 = vsel %vm2933_vm3, %v2904_v35, 0.0  ;;  %v3400_v4 = vunpack.i.l.bf16 %v7342_v63  ;;  %v7349_v35 = vld [vmem:[#allocation18_spill] sm:$0xff] }
 0x2a5   :  { %v1069_v31 = vsub.f32 %v7341_v1, %v909_v12  ;;  %v1222_v0 = vadd.f32 %v1221_v37, %v1220_v38  ;;  %v7345_v2 = vmax.f32 %v7344_v21, 0.0  ;;  %v1133_v56 = vmul.f32 %v1068_v28, %v1068_v28  ;;  %v7354_v38 = vld [vmem:[#allocation48_spill] sm:$0xff]  ;;  %v7359_v21 = vld [vmem:[#allocation70_spill] sm:$0xff] }
 0x2a6   :  { %v1132_v57 = vmul.f32 %v1067_v36, %v1067_v36  ;;  %v2906_v62 = vand.u32 2147483647, %v2841_v24  ;;  %v3004_v60 = vadd.f32 %v3003_v20, %v3002_v25  ;;  %v7348_v45 = vmax.f32 %v7347_v33, 0.0  ;;  %v6485_v24 = vpop.permute.xlu1 %932  ;;  %v7356_v25 = vld [vmem:[#allocation30_spill] sm:$0xff] }
 0x2a7   :  { %v1070_v47 = vsub.f32 %v7345_v2, %v7343_v54  ;;  %v1224_v18 = vadd.f32 %v1223_v11, %v1222_v0  ;;  %v1134_v61 = vmul.f32 %v1069_v31, %v1069_v31  ;;  %v3005_v48 = vsel %vm2933_vm3, %v2905_v27, 0.0  ;;  %v7355_v27 = vld [vmem:[#allocation15_spill] sm:$0xff]  ;;  %v7360_v2 = vld [vmem:[#allocation36_spill] sm:$0xff] }
 0x2a8   :  { %v1225_v16 = vsel %vm1167_vm9, %v1132_v57, 0.0  ;;  %v1071_v5 = vsub.f32 %v7348_v45, %v7346_v30  ;;  %v3401_v10 = vunpack.i.h.bf16 %v7342_v63  ;;  %v7350_v55 = vunpack.c.l.bf16 %v7349_v35  ;;  %v7363_v45 = vld [vmem:[#allocation50_spill] sm:$0xff] }
 0x2a9   :  { %v1226_v12 = vadd.f32 %v1225_v16, %v1224_v18  ;;  %v7353_v59 = vmax.f32 %v7352_v53, 0.0  ;;  %v1135_v50 = vmul.f32 %v1070_v47, %v1070_v47  ;;  %v1227_v14 = vsel %vm1167_vm9, %v1133_v56, 0.0 }
 0x2aa   :  { %v2842_v39 = vsub.f32 %v7350_v55, %v3400_v4  ;;  %v3405_v26 = vunpack.i.l.bf16 %v7354_v38  ;;  %v3006_v36 = vadd.f32 %v3005_v48, %v3004_v60  ;;  %v7357_v37 = vmax.f32 %v7356_v25, 0.0  ;;  %v6504_v48 = vpop.permute.xlu1 %3413  ;;  %v7370_v25 = vld [vmem:[#allocation80_spill] sm:$0xff] }
 0x2ab   :  { %v1072_v28 = vsub.f32 %v7353_v59, %v7351_v17  ;;  %v1228_v6 = vadd.f32 %v1227_v14, %v1226_v12  ;;  %v1136_v1 = vmul.f32 %v1071_v5, %v1071_v5  ;;  %v1229_v31 = vsel %vm1167_vm9, %v1134_v61, 0.0  ;;  %v7367_v59 = vld [vmem:[#allocation71_spill] sm:$0xff] }
 0x2ac   :  { %v1073_v41 = vsub.f32 %v7357_v37, %v7355_v27  ;;  %v3007_v11 = vsel %vm2933_vm3, %v2906_v62, 0.0  ;;  %v7358_v20 = vunpack.c.h.bf16 %v7349_v35  ;;  %v2907_v4 = vand.u32 2147483647, %v2842_v39  ;;  %v7362_v62 = vld [vmem:[#allocation17_spill] sm:$0xff]  ;;  %v7371_v37 = vld [vmem:[#allocation47_spill] sm:$0xff] }
 0x2ad   :  { %v1230_v0 = vadd.f32 %v1229_v31, %v1228_v6  ;;  %v1137_v57 = vmul.f32 %v1072_v28, %v1072_v28  ;;  %v1231_v54 = vsel %vm1167_vm9, %v1135_v50, 0.0  ;;  %v7361_v47 = vmax.f32 %v7360_v2, 0.0  ;;  %v7368_v28 = vld [vmem:[#allocation35_spill] sm:$0xff] }
 0x2ae   :  { %v2843_v63 = vsub.f32 %v7358_v20, %v3401_v10  ;;  %v3406_v18 = vunpack.i.h.bf16 %v7354_v38  ;;  %v3008_v60 = vadd.f32 %v3007_v11, %v3006_v36  ;;  %v1138_v30 = vmul.f32 %v1073_v41, %v1073_v41  ;;  %v7365_v10 = vld [vmem:[#allocation20_spill] sm:$0xff] }
 0x2af   :  { %v1074_v56 = vsub.f32 %v7361_v47, %v7359_v21  ;;  %v1232_v16 = vadd.f32 %v1231_v54, %v1230_v0  ;;  %v1233_v33 = vsel %vm1167_vm9, %v1136_v1, 0.0  ;;  %v7364_v5 = vmax.f32 %v7363_v45, 0.0  ;;  %v7374_v54 = vld [vmem:[#allocation56_spill] sm:$0xff]  ;;  %v7376_v45 = vld [vmem:[#allocation65_spill] sm:$0xff] }
 0x2b0   :  { %v7366_v35 = vunpack.c.l.bf16 %v7365_v10  ;;  %v2908_v39 = vand.u32 2147483647, %v2843_v63  ;;  %v3009_v12 = vsel %vm2933_vm3, %v2907_v4, 0.0  ;;  %v1235_v53 = vsel %vm1167_vm9, %v1137_v57, 0.0 }
 0x2b1   :  { %v1075_v61 = vsub.f32 %v7364_v5, %v7362_v62  ;;  %v1234_v17 = vadd.f32 %v1233_v33, %v1232_v16  ;;  %v7369_v50 = vmax.f32 %v7368_v28, 0.0  ;;  %v1139_v38 = vmul.f32 %v1074_v56, %v1074_v56  ;;  %v939_v56 = vpop.permute.xlu1 %938 }
 0x2b2   :  { %v2844_v55 = vsub.f32 %v7366_v35, %v3405_v26  ;;  %v3010_v36 = vadd.f32 %v3009_v12, %v3008_v60  ;;  %v1237_v27 = vsel %vm1167_vm9, %v1138_v30, 0.0  ;;  %v7372_v41 = vmax.f32 %v7371_v37, 0.0 }
 0x2b3   :  { %v1076_v14 = vsub.f32 %v7369_v50, %v7367_v59  ;;  %v1236_v6 = vadd.f32 %v1235_v53, %v1234_v17  ;;  %v1140_v26 = vmul.f32 %v1075_v61, %v1075_v61  ;;  %v7373_v31 = vunpack.c.h.bf16 %v7365_v10  ;;  %v7380_v59 = vld [vmem:[#allocation55_spill] sm:$0xff] }
 0x2b4   :  { %v1077_v1 = vsub.f32 %v7372_v41, %v7370_v25  ;;  %v2909_v20 = vand.u32 2147483647, %v2844_v55  ;;  %v3011_v63 = vsel %vm2933_vm3, %v2908_v39, 0.0  ;;  %v1239_v57 = vsel %vm1167_vm9, %v1139_v38, 0.0  ;;  %v7378_v55 = vld [vmem:[#allocation66_spill] sm:$0xff] }
 0x2b5   :  { %v2845_v11 = vsub.f32 %v7373_v31, %v3406_v18  ;;  %v1238_v4 = vadd.f32 %v1237_v27, %v1236_v6  ;;  %v1141_v0 = vmul.f32 %v1076_v14, %v1076_v14  ;;  %v7375_v21 = vmax.f32 %v7374_v54, 0.0  ;;  %v3409_v47 = vpop.permute.xlu0 %3408 }
 0x2b6   :  { %v3411_v60 = vunpack.i.h.bf16 %v3409_v47  ;;  %v3410_v30 = vunpack.i.l.bf16 %v3409_v47  ;;  %v3012_v33 = vadd.f32 %v3011_v63, %v3010_v36  ;;  %v1142_v62 = vmul.f32 %v1077_v1, %v1077_v1  ;;  %v7383_v1 = vld [vmem:[#allocation61_spill] sm:$0xff]  ;;  %v7387_v47 = vld [vmem:[#allocation59_spill] sm:$0xff] }
 0x2b7   :  { %v1078_v2 = vsub.f32 %v7375_v21, %v6102_v44  ;;  %v1240_v16 = vadd.f32 %v1239_v57, %v1238_v4  ;;  %v1241_v18 = vsel %vm1167_vm9, %v1140_v26, 0.0  ;;  %v7377_v5 = vmax.f32 %v7376_v45, 0.0  ;;  %v7385_v57 = vld [vmem:[#allocation8_spill] sm:$0xff] }
 0x2b8   :  { %v2910_v10 = vand.u32 2147483647, %v2845_v11  ;;  %v3013_v35 = vsel %vm2933_vm3, %v2909_v20, 0.0  ;;  %v7379_v39 = vunpack.c.l.bf16 %v7378_v55  ;;  %v1243_v17 = vsel %vm1167_vm9, %v1141_v0, 0.0  ;;  %v941_v11 = vpop.permute.xlu1 %940 }
 0x2b9   :  { %v1079_v61 = vsub.f32 %v7377_v5, %v6417_v32  ;;  %v1242_v44 = vadd.f32 %v1241_v18, %v1240_v16  ;;  %v1143_v53 = vmul.f32 %v1078_v2, %v1078_v2  ;;  %v7381_v28 = vmax.f32 %v7380_v59, 0.0  ;;  %v935_v14 = vpop.permute.xlu0 %934  ;;  %v7389_v5 = vld [vmem:[#allocation68_spill] sm:$0xff] }
 0x2ba   :  { %v2846_v12 = vsub.f32 %v7379_v39, %v3410_v30  ;;  %v3415_v38 = vunpack.i.l.bf16 %v6504_v48  ;;  %v7382_v6 = vunpack.c.h.bf16 %v7378_v55  ;;  %v3014_v25 = vadd.f32 %v3013_v35, %v3012_v33  ;;  %v7391_v39 = vld [vmem:[#allocation78_spill] sm:$0xff] }
 0x2bb   :  { %v1080_v50 = vsub.f32 %v7381_v28, %v6428_v49  ;;  %v1244_v27 = vadd.f32 %v1243_v17, %v1242_v44  ;;  %v1245_v37 = vsel %vm1167_vm9, %v1142_v62, 0.0  ;;  %v1144_v41 = vmul.f32 %v1079_v61, %v1079_v61 }
 0x2bc   :  { %v2847_v32 = vsub.f32 %v7382_v6, %v3411_v60  ;;  %v2911_v36 = vand.u32 2147483647, %v2846_v12  ;;  %v7384_v26 = vmax.f32 %v7383_v1, 0.0  ;;  %v3015_v20 = vsel %vm2933_vm3, %v2910_v10, 0.0 }
 0x2bd   :  { %v1246_v49 = vadd.f32 %v1245_v37, %v1244_v27  ;;  %v1247_v63 = vsel %vm1167_vm9, %v1143_v53, 0.0  ;;  %v1145_v4 = vmul.f32 %v1080_v50, %v1080_v50  ;;  %v3416_v0 = vunpack.i.h.bf16 %v6504_v48  ;;  %v937_v2 = vpop.permute.xlu0 %936 }
 0x2be   :  { %v1081_v31 = vsub.f32 %v7384_v26, %v6485_v24  ;;  %v7386_v54 = vmax.f32 %v7385_v57, 0.0  ;;  %v7388_v16 = vunpack.c.l.bf16 %v7387_v47  ;;  %v2912_v30 = vand.u32 2147483647, %v2847_v32  ;;  %v7394_v32 = vld [vmem:[#allocation63_spill] sm:$0xff] }
 0x2bf   :  { %v3017_v33 = vsel %vm2933_vm3, %v2911_v36, 0.0  ;;  %v1248_v24 = vadd.f32 %v1247_v63, %v1246_v49  ;;  %v1249_v62 = vsel %vm1167_vm9, %v1144_v41, 0.0  ;;  %v3016_v45 = vadd.f32 %v3015_v20, %v3014_v25 }
 0x2c0   :  { %v1082_v21 = vsub.f32 %v7386_v54, %v935_v14  ;;  %v2848_v60 = vsub.f32 %v7388_v16, %v3415_v38  ;;  %v1146_v18 = vmul.f32 %v1081_v31, %v1081_v31  ;;  %v7390_v61 = vmax.f32 %v7389_v5, 0.0  ;;  %v3424_v53 = vpop.permute.xlu1 %3423 }
 0x2c1   :  { %v1250_v35 = vadd.f32 %v1249_v62, %v1248_v24  ;;  %v1251_v48 = vsel %vm1167_vm9, %v1145_v4, 0.0  ;;  %v3018_v55 = vadd.f32 %v3017_v33, %v3016_v45  ;;  %v7392_v12 = vmax.f32 %v7391_v39, 0.0 }
 0x2c2   :  { %v1083_v10 = vsub.f32 %v7390_v61, %v937_v2  ;;  %v1147_v17 = vmul.f32 %v1082_v21, %v1082_v21  ;;  %v7393_v59 = vunpack.c.h.bf16 %v7387_v47  ;;  %v2913_v50 = vand.u32 2147483647, %v2848_v60 }
 0x2c3   :  { %v1084_v44 = vsub.f32 %v7392_v12, %v939_v56  ;;  %v3019_v14 = vsel %vm2933_vm3, %v2912_v30, 0.0  ;;  %v1252_v38 = vadd.f32 %v1251_v48, %v1250_v35  ;;  %v1253_v6 = vsel %vm1167_vm9, %v1146_v18, 0.0  ;;  %v7399_v48 = vld [vmem:[#allocation16_spill] sm:$0xff] }
 0x2c4   :  { %v2849_v28 = vsub.f32 %v7393_v59, %v3416_v0  ;;  %v7395_v36 = vmax.f32 %v7394_v32, 0.0  ;;  %v1148_v25 = vmul.f32 %v1083_v10, %v1083_v10  ;;  %v3020_v41 = vadd.f32 %v3019_v14, %v3018_v55  ;;  %v3419_v26 = vpop.permute.xlu0 %3418  ;;  %v947_v54 = vpop.permute.xlu1 %946  ;;  %v7403_v32 = vld [vmem:[#allocation10_spill] sm:$0xff] }
 0x2c5   :  { %v1254_v37 = vadd.f32 %v1253_v6, %v1252_v38  ;;  %v1149_v1 = vmul.f32 %v1084_v44, %v1084_v44  ;;  %v1255_v56 = vsel %vm1167_vm9, %v1147_v17, 0.0  ;;  %v3021_v20 = vsel %vm2933_vm3, %v2913_v50, 0.0 }
 0x2c6   :  { %v1085_v27 = vsub.f32 %v7395_v36, %v941_v11  ;;  %v2914_v31 = vand.u32 2147483647, %v2849_v28  ;;  %v3421_v63 = vunpack.i.h.bf16 %v3419_v26  ;;  %v1257_v0 = vsel %vm1167_vm9, %v1148_v25, 0.0  ;;  %v7401_v28 = vld [vmem:[#allocation72_spill] sm:$0xff] }
 0x2c7   :  { %v1256_v49 = vadd.f32 %v1255_v56, %v1254_v37  ;;  %v3420_v57 = vunpack.i.l.bf16 %v3419_v26  ;;  %v3425_v2 = vunpack.i.l.bf16 %v3424_v53  ;;  %v7396_v11 = vunpack.c.h.bf16 %v6038_v29 }
 0x2c8   :  { %v1150_v4 = vmul.f32 %v1085_v27, %v1085_v27  ;;  %v3022_v16 = vadd.f32 %v3021_v20, %v3020_v41  ;;  %v1259_v60 = vsel %vm1167_vm9, %v1149_v1, 0.0  ;;  %v7397_v30 = vunpack.c.l.bf16 %v6038_v29  ;;  %v943_v24 = vpop.permute.xlu0 %942  ;;  %v949_v38 = vpop.permute.xlu1 %948  ;;  %v7406_v20 = vld [vmem:[#allocation73_spill] sm:$0xff] }
 0x2c9   :  { %v1258_v21 = vadd.f32 %v1257_v0, %v1256_v49  ;;  %v2851_v47 = vsub.f32 %v7396_v11, %v3421_v63  ;;  %v3023_v62 = vsel %vm2933_vm3, %v2914_v31, 0.0  ;;  %v7398_v45 = vmax.f32 %v5493_v58, 0.0 }
 0x2ca   :  { %v2850_v33 = vsub.f32 %v7397_v30, %v3420_v57  ;;  %v1261_v61 = vsel %vm1167_vm9, %v1150_v4, 0.0  ;;  %v3426_v10 = vunpack.i.h.bf16 %v3424_v53  ;;  %v7400_v55 = vunpack.c.l.bf16 %v7399_v48 }
 0x2cb   :  { %v1260_v18 = vadd.f32 %v1259_v60, %v1258_v21  ;;  %v1086_v5 = vsub.f32 %v7398_v45, %v943_v24  ;;  %v2916_v12 = vand.u32 2147483647, %v2851_v47  ;;  %v3024_v59 = vadd.f32 %v3023_v62, %v3022_v16 }
 0x2cc   :  { %v2915_v35 = vand.u32 2147483647, %v2850_v33  ;;  %v2852_v39 = vsub.f32 %v7400_v55, %v3425_v2  ;;  %v7402_v50 = vmax.f32 %v7401_v28, 0.0  ;;  %v945_v6 = vpop.permute.xlu0 %944  ;;  %v7404_v36 = vmax.f32 %v7403_v32, 0.0 }
 0x2cd   :  { %v1262_v44 = vadd.f32 %v1261_v61, %v1260_v18  ;;  %v1151_v17 = vmul.f32 %v1086_v5, %v1086_v5  ;;  %v7405_v37 = vunpack.c.h.bf16 %v7399_v48  ;;  %v3027_v56 = vsel %vm2933_vm3, %v2916_v12, 0.0  ;;  %v7408_v61 = vld [vmem:[#allocation79_spill] sm:$0xff]  ;;  %v7410_v48 = vld [vmem:[#allocation69_spill] sm:$0xff] }
 0x2ce   :  { %v3025_v29 = vsel %vm2933_vm3, %v2915_v35, 0.0  ;;  %v1088_v14 = vsub.f32 %v7402_v50, %v947_v54  ;;  %v1087_v53 = vsub.f32 %v7404_v36, %v945_v6  ;;  %v2917_v1 = vand.u32 2147483647, %v2852_v39  ;;  %v3434_v54 = vpop.permute.xlu1 %3433 }
 0x2cf   :  { %v1263_v58 = vsel %vm1167_vm9, %v1151_v17, 0.0  ;;  %v3026_v27 = vadd.f32 %v3025_v29, %v3024_v59  ;;  %v2853_v41 = vsub.f32 %v7405_v37, %v3426_v10  ;;  %v7407_v49 = vmax.f32 %v7406_v20, 0.0 }
 0x2d0   :  { %v1264_v25 = vadd.f32 %v1263_v58, %v1262_v44  ;;  %v1152_v26 = vmul.f32 %v1087_v53, %v1087_v53  ;;  %v1153_v31 = vmul.f32 %v1088_v14, %v1088_v14  ;;  %v3029_v2 = vsel %vm2933_vm3, %v2917_v1, 0.0  ;;  %v7414_v58 = vld [vmem:[#allocation11_spill] sm:$0xff] }
 0x2d1   :  { %v1089_v63 = vsub.f32 %v7407_v49, %v949_v38  ;;  %v3028_v0 = vadd.f32 %v3027_v56, %v3026_v27  ;;  %v2918_v21 = vand.u32 2147483647, %v2853_v41  ;;  %v3435_v11 = vunpack.i.l.bf16 %v3434_v54  ;;  %v7416_v41 = vld [vmem:[#allocation74_spill] sm:$0xff] }
 0x2d2   :  { %v1265_v4 = vsel %vm1167_vm9, %v1152_v26, 0.0  ;;  %v1267_v47 = vsel %vm1167_vm9, %v1153_v31, 0.0  ;;  %v3436_v30 = vunpack.i.h.bf16 %v3434_v54  ;;  %v955_v45 = vpop.permute.xlu1 %954  ;;  %v7409_v10 = vunpack.c.l.bf16 %v7408_v61  ;;  %v7419_v54 = vld [vmem:[#allocation13_spill] sm:$0xff] }
 0x2d3   :  { %v1266_v57 = vadd.f32 %v1265_v4, %v1264_v25  ;;  %v3429_v16 = vpop.permute.xlu0 %3428  ;;  %v1154_v60 = vmul.f32 %v1089_v63, %v1089_v63  ;;  %v3030_v62 = vadd.f32 %v3029_v2, %v3028_v0  ;;  %v3031_v5 = vsel %vm2933_vm3, %v2918_v21, 0.0 }
 0x2d4   :  { %v3431_v33 = vunpack.i.h.bf16 %v3429_v16  ;;  %v3430_v24 = vunpack.i.l.bf16 %v3429_v16  ;;  %v2856_v35 = vsub.f32 %v7409_v10, %v3435_v11  ;;  %v7411_v55 = vunpack.c.h.bf16 %v7410_v48 }
 0x2d5   :  { %v1268_v18 = vadd.f32 %v1267_v47, %v1266_v57  ;;  %v7412_v12 = vunpack.c.l.bf16 %v7410_v48  ;;  %v1269_v59 = vsel %vm1167_vm9, %v1154_v60, 0.0  ;;  %v7413_v29 = vunpack.c.h.bf16 %v7408_v61 }
 0x2d6   :  { %v2855_v39 = vsub.f32 %v7411_v55, %v3431_v33  ;;  %v3032_v38 = vadd.f32 %v3031_v5, %v3030_v62  ;;  %v7415_v32 = vmax.f32 %v7414_v58, 0.0  ;;  %v2921_v27 = vand.u32 2147483647, %v2856_v35 }
 0x2d7   :  { %v2854_v44 = vsub.f32 %v7412_v12, %v3430_v24  ;;  %v951_v17 = vpop.permute.xlu0 %950  ;;  %v2857_v28 = vsub.f32 %v7413_v29, %v3436_v30  ;;  %v1270_v6 = vadd.f32 %v1269_v59, %v1268_v18  ;;  %v7417_v1 = vmax.f32 %v7416_v41, 0.0 }
 0x2d8   :  { %v2920_v50 = vand.u32 2147483647, %v2855_v39  ;;  %v1090_v36 = vsub.f32 %v7415_v32, %v951_v17  ;;  %v957_v53 = vpop.permute.xlu1 %956  ;;  %v7418_v63 = vmax.f32 %v5680_v23, 0.0  ;;  %v7420_v21 = vmax.f32 %v7419_v54, 0.0  ;;  %v7421_v39 = vld [vmem:[#allocation19_spill] sm:$0xff]  ;;  %v7423_v17 = vld [vmem:[#allocation21_spill] sm:$0xff] }
 0x2d9   :  { %v2919_v14 = vand.u32 2147483647, %v2854_v44  ;;  %v1092_v56 = vsub.f32 %v7417_v1, %v955_v45  ;;  %v2922_v49 = vand.u32 2147483647, %v2857_v28  ;;  %v3037_v47 = vsel %vm2933_vm3, %v2921_v27, 0.0 }
 0x2da   :  { %v3035_v25 = vsel %vm2933_vm3, %v2920_v50, 0.0  ;;  %v1155_v31 = vmul.f32 %v1090_v36, %v1090_v36  ;;  %v1093_v2 = vsub.f32 %v7420_v21, %v957_v53  ;;  %v7422_v12 = vunpack.c.l.bf16 %v7421_v39 }
 0x2db   :  { %v3033_v37 = vsel %vm2933_vm3, %v2919_v14, 0.0  ;;  %v953_v20 = vpop.permute.xlu0 %952  ;;  %v1157_v16 = vmul.f32 %v1092_v56, %v1092_v56  ;;  %v3039_v62 = vsel %vm2933_vm3, %v2922_v49, 0.0  ;;  %v7424_v59 = vunpack.c.h.bf16 %v7423_v17 }
 0x2dc   :  { %v3034_v26 = vadd.f32 %v3033_v37, %v3032_v38  ;;  %v1091_v4 = vsub.f32 %v7418_v63, %v953_v20  ;;  %v1271_v57 = vsel %vm1167_vm9, %v1155_v31, 0.0  ;;  %v3444_v11 = vpop.permute.xlu1 %3443  ;;  %v1158_v61 = vmul.f32 %v1093_v2, %v1093_v2 }
 0x2dd   :  { %v1272_v60 = vadd.f32 %v1271_v57, %v1270_v6  ;;  %v3445_v33 = vunpack.i.l.bf16 %v3444_v11  ;;  %v3446_v35 = vunpack.i.h.bf16 %v3444_v11  ;;  %v1275_v55 = vsel %vm1167_vm9, %v1157_v16, 0.0 }
 0x2de   :  { %v3036_v0 = vadd.f32 %v3035_v25, %v3034_v26  ;;  %v1156_v30 = vmul.f32 %v1091_v4, %v1091_v4  ;;  %v7425_v28 = vunpack.c.l.bf16 %v7423_v17  ;;  %v1277_v32 = vsel %vm1167_vm9, %v1158_v61, 0.0 }
 0x2df   :  { %v3439_v24 = vpop.permute.xlu0 %3438  ;;  %v2860_v44 = vsub.f32 %v7422_v12, %v3445_v33  ;;  %v7426_v36 = vunpack.c.h.bf16 %v7421_v39  ;;  %v7427_v25 = vmax.f32 %v5769_v22, 0.0  ;;  %v7428_v49 = vmax.f32 %v5745_v7, 0.0  ;;  %v7430_v7 = vld [vmem:[#allocation52_spill] sm:$0xff] }
 0x2e0   :  { %v1273_v18 = vsel %vm1167_vm9, %v1156_v30, 0.0  ;;  %v3441_v23 = vunpack.i.h.bf16 %v3439_v24  ;;  %v3440_v45 = vunpack.i.l.bf16 %v3439_v24  ;;  %v3038_v5 = vadd.f32 %v3037_v47, %v3036_v0  ;;  %v963_v48 = vpop.permute.xlu1 %962 }
 0x2e1   :  { %v1274_v10 = vadd.f32 %v1273_v18, %v1272_v60  ;;  %v2861_v53 = vsub.f32 %v7426_v36, %v3446_v35  ;;  %v2925_v1 = vand.u32 2147483647, %v2860_v44  ;;  %v1096_v63 = vsub.f32 %v7428_v49, %v963_v48  ;;  %v7432_v35 = vld [vmem:[#allocation22_spill] sm:$0xff] }
 0x2e2   :  { %v2859_v29 = vsub.f32 %v7424_v59, %v3441_v23  ;;  %v2858_v50 = vsub.f32 %v7425_v28, %v3440_v45  ;;  %v3040_v27 = vadd.f32 %v3039_v62, %v3038_v5  ;;  %v7429_v57 = vmax.f32 %v5820_v8, 0.0 }
 0x2e3   :  { %v1276_v14 = vadd.f32 %v1275_v55, %v1274_v10  ;;  %v959_v38 = vpop.permute.xlu0 %958  ;;  %v2926_v11 = vand.u32 2147483647, %v2861_v53  ;;  %v3045_v47 = vsel %vm2933_vm3, %v2925_v1, 0.0  ;;  %v1161_v30 = vmul.f32 %v1096_v63, %v1096_v63 }
 0x2e4   :  { %v2924_v6 = vand.u32 2147483647, %v2859_v29  ;;  %v2923_v58 = vand.u32 2147483647, %v2858_v50  ;;  %v1094_v37 = vsub.f32 %v7427_v25, %v959_v38  ;;  %v965_v41 = vpop.permute.xlu1 %964  ;;  %v7431_v18 = vmax.f32 %v7430_v7, 0.0 }
 0x2e5   :  { %v1278_v31 = vadd.f32 %v1277_v32, %v1276_v14  ;;  %v7433_v48 = vunpack.c.l.bf16 %v7432_v35  ;;  %v3047_v39 = vsel %vm2933_vm3, %v2926_v11, 0.0  ;;  %v7434_v12 = vunpack.c.h.bf16 %v6254_v15 }
 0x2e6   :  { %v3043_v56 = vsel %vm2933_vm3, %v2924_v6, 0.0  ;;  %v3041_v26 = vsel %vm2933_vm3, %v2923_v58, 0.0  ;;  %v1159_v4 = vmul.f32 %v1094_v37, %v1094_v37  ;;  %v1097_v23 = vsub.f32 %v7431_v18, %v965_v41 }
 0x2e7   :  { %v3042_v20 = vadd.f32 %v3041_v26, %v3040_v27  ;;  %v961_v0 = vpop.permute.xlu0 %960  ;;  %v7435_v17 = vunpack.c.l.bf16 %v6254_v15  ;;  %v1283_v29 = vsel %vm1167_vm9, %v1161_v30, 0.0  ;;  %v7436_v28 = vunpack.c.h.bf16 %v7432_v35 }
 0x2e8   :  { %v1095_v54 = vsub.f32 %v7429_v57, %v961_v0  ;;  %v1279_v22 = vsel %vm1167_vm9, %v1159_v4, 0.0  ;;  %v3454_v2 = vpop.permute.xlu1 %3453  ;;  %v1162_v6 = vmul.f32 %v1097_v23, %v1097_v23 }
 0x2e9   :  { %v3044_v21 = vadd.f32 %v3043_v56, %v3042_v20  ;;  %v1280_v16 = vadd.f32 %v1279_v22, %v1278_v31  ;;  %v3456_v33 = vunpack.i.h.bf16 %v3454_v2  ;;  %v3455_v24 = vunpack.i.l.bf16 %v3454_v2 }
 0x2ea   :  { %v1160_v60 = vmul.f32 %v1095_v54, %v1095_v54  ;;  %v1285_v26 = vsel %vm1167_vm9, %v1162_v6, 0.0 }
 0x2eb   :  { %v3449_v62 = vpop.permute.xlu0 %3448  ;;  %v3046_v61 = vadd.f32 %v3045_v47, %v3044_v21  ;;  %v2864_v55 = vsub.f32 %v7433_v48, %v3455_v24  ;;  %v2865_v50 = vsub.f32 %v7436_v28, %v3456_v33 }
 0x2ec   :  { %v1281_v45 = vsel %vm1167_vm9, %v1160_v60, 0.0  ;;  %v3451_v8 = vunpack.i.h.bf16 %v3449_v62  ;;  %v3450_v5 = vunpack.i.l.bf16 %v3449_v62 }
 0x2ed   :  { %v1282_v10 = vadd.f32 %v1281_v45, %v1280_v16  ;;  %v971_v14 = vpop.permute.xlu1 %970  ;;  %v2929_v58 = vand.u32 2147483647, %v2864_v55  ;;  %v3048_v27 = vadd.f32 %v3047_v39, %v3046_v61  ;;  %v2930_v41 = vand.u32 2147483647, %v2865_v50 }
 0x2ee   :  { %v2863_v44 = vsub.f32 %v7434_v12, %v3451_v8  ;;  %v2862_v59 = vsub.f32 %v7435_v17, %v3450_v5  ;;  %v1100_v40 = vsub.f32 %v780_v42, %v971_v14  ;;  %v2328_v8 = vld [vmem:[#allocation2] sm:$0x1] }
 0x2ef   :  { %v967_v38 = vpop.permute.xlu0 %966  ;;  %v1284_v53 = vadd.f32 %v1283_v29, %v1282_v10  ;;  %v3053_v31 = vsel %vm2933_vm3, %v2929_v58, 0.0 }
 0x2f0   :  { %v2928_v32 = vand.u32 2147483647, %v2863_v44  ;;  %v2927_v36 = vand.u32 2147483647, %v2862_v59  ;;  %v1098_v25 = vsub.f32 %v778_v19, %v967_v38  ;;  %v3055_v19 = vsel %vm2933_vm3, %v2930_v41, 0.0 }
 0x2f1   :  { %v1286_v4 = vadd.f32 %v1285_v26, %v1284_v53  ;;  %v973_v0 = vpop.permute.xlu1 %972  ;;  %v1165_v47 = vmul.f32 %v1100_v40, %v1100_v40 }
 0x2f2   :  { %v3051_v37 = vsel %vm2933_vm3, %v2928_v32, 0.0  ;;  %v3049_v15 = vsel %vm2933_vm3, %v2927_v36, 0.0  ;;  %v1163_v20 = vmul.f32 %v1098_v25, %v1098_v25  ;;  %v1101_v22 = vsub.f32 %v781_v43, %v973_v0 }
 0x2f3   :  { %v3050_v1 = vadd.f32 %v3049_v15, %v3048_v27  ;;  %v2737_v56 = vpop.permute.xlu0 %2736  ;;  %v1291_v34 = vsel %vm1167_vm9, %v1165_v47, 0.0 }
 0x2f4   :  { %v2866_v49 = vsub.f32 %v2546_v9, %v2737_v56  ;;  %v1287_v21 = vsel %vm1167_vm9, %v1163_v20, 0.0  ;;  %v1166_v46 = vmul.f32 %v1101_v22, %v1101_v22 }
 0x2f5   :  { %v3052_v63 = vadd.f32 %v3051_v37, %v3050_v1  ;;  %v1288_v9 = vadd.f32 %v1287_v21, %v1286_v4 }
 0x2f6   :  { %v2931_v2 = vand.u32 2147483647, %v2866_v49 }
 0x2f7   :  { %v3054_v57 = vadd.f32 %v3053_v31, %v3052_v63  ;;  %v969_v54 = vpop.permute.xlu0 %968 }
 0x2f8   :  { %v1099_v11 = vsub.f32 %v779_v3, %v969_v54  ;;  %v3057_v42 = vsel %vm2933_vm3, %v2931_v2, 0.0  ;;  %v1293_v3 = vsel %vm1167_vm9, %v1166_v46, 0.0 }
 0x2f9   :  { %v3056_v60 = vadd.f32 %v3055_v19, %v3054_v57 }
 0x2fa   :  { %v1164_v16 = vmul.f32 %v1099_v11, %v1099_v11 }
 0x2fb   :  { %v2739_v30 = vpop.permute.xlu0 %2738  ;;  %v3058_v7 = vadd.f32 %v3057_v42, %v3056_v60 }
 0x2fc   :  { %v1289_v33 = vsel %vm1167_vm9, %v1164_v16, 0.0  ;;  %v2867_v24 = vsub.f32 %v2547_v52, %v2739_v30 }
 0x2fd   :  { %v1290_v62 = vadd.f32 %v1289_v33, %v1288_v9 }
 0x2fe   :  { %v2932_v43 = vand.u32 2147483647, %v2867_v24 }
 0x2ff   :  { %v1292_v13 = vadd.f32 %v1291_v34, %v1290_v62 }
 0x300   :  { %v3059_v18 = vsel %vm2933_vm3, %v2932_v43, 0.0 }
 0x301   :  { %v1294_v23 = vadd.f32 %v1293_v3, %v1292_v13  ;;  %v3060_v45 = vadd.f32 %v3059_v18, %v3058_v7 }
 0x303   :  { %v1295_v5 = vrot.slane %v1294_v23, 4  ;;  %v3061_v61 = vrot.slane %v3060_v45, 4 }
 0x305   :  { %v1296_v51 = vadd.f32 %v1295_v5, %v1294_v23  ;;  %v3062_v52 = vadd.f32 %v3061_v61, %v3060_v45 }
 0x307   :  { %v2479_v10 = vpop.permute.xlu1 %2478  ;;  %v1297_v48 = vrot.slane %v1296_v51, 2  ;;  %v3063_v55 = vrot.slane %v3062_v52, 2 }
 0x308   :  { %v2481_v35 = vadd.f32 %v2479_v10, %v2328_v8 }
 0x30a   :  { %2483 = vst.msk [vmem:[#allocation2] sm:$0x1] %vm49_vm12, %v2481_v35 }
 0x30b   :  { %3808 = shalt.err (!%p3805_p4)
}
 0x30c   :  { %s3809_s8 = scalar_lea.hbm %s6702_s5, 16 }
 0x30d   :  { %p3810_p5 = scmp.ne.s32.totalorder %s6702_s5, %s3809_s8  ;;  %p3813_p6 = scmp.lt.u32.totalorder %s3809_s8, %s6702_s5 }
 0x30f   :  { %p3815_p7 = pnand %p3813_p6, %p3810_p5 }
 0x311   :  { %3818 = shalt.err (!%p3815_p7)
}
 0x312   :  { %3083 = dma.vmem_to_hbm [thread:$0]  %s3081_s28, 16, %s6702_s5, [#allocation3]   ;;  %v1298_v39 = vadd.f32 %v1297_v48, %v1296_v51  ;;  %v3064_v12 = vadd.f32 %v3063_v55, %v3062_v52  ;;  %v1102_v59 = vld [vmem:[%s6701_s4] sm:$0x1] }
 0x313   :  { %v2868_v29 = vld [vmem:[%s6700_s3] sm:$0x1] }
 0x314   :  { %v1299_v44 = vrot.slane %v1298_v39, 1  ;;  %v3065_v17 = vrot.slane %v3064_v12, 1 }
 0x316   :  { %v1300_v28 = vadd.f32 %v1299_v44, %v1298_v39  ;;  %v3066_v50 = vadd.f32 %v3065_v17, %v3064_v12 }
 0x318   :  { %v1301_v14 = vadd.f32 %v1300_v28, %v1102_v59  ;;  %v3067_v38 = vadd.f32 %v3066_v50, %v2868_v29 }
 0x31a   :  { %1303 = vst.msk [vmem:[%s6701_s4] sm:$0x1] %vm47_vm11, %v1301_v14 }
 0x31b   :  { %3069 = vst.msk [vmem:[%s6700_s3] sm:$0x1] %vm45_vm4, %v3067_v38 }
 0x31c   :  { %3819 = dma.done.wait [#allocation3], 16  }
 0x31d   :  { %3820 = vsyncadd [#allocation3], 4294967280 }
 0x31e   :  { %3091 = vsyncpa [#allocation3], 1 }

</bundles_post_ra>
